<compile_context>
chip_gen: v7x
topology: tpu7x:2x2x1
jax: 0.10.0
libtpu: 0.0.40
codegen_flags: <defaults>
</compile_context>

<pallas_src>
import functools
import math

import jax
import jax.numpy as jnp
from jax.experimental import pallas as pl
from jax.experimental.pallas import tpu as pltpu

# ----------------------------- model config ---------------------------------
D_MODEL = 32
D_KV = 8
N_HEADS = 4
D_FF = 64
N_LAYERS = 2
VOCAB = 128
NUM_BUCKETS = 32
MAX_DISTANCE = 128
EPS = 1e-6
NEG = -1e9
INNER = N_HEADS * D_KV


# ----------------------------- in-kernel helpers ------------------------------
def _rmsnorm(x, w_row):
    # x: (T, D) f32, w_row: (1, D) f32.  T5 RMSNorm: no mean subtraction.
    var = jnp.mean(x * x, axis=-1, keepdims=True)
    return x * jax.lax.rsqrt(var + EPS) * w_row


def _mha(q, k, v, bias):
    """T5 multi-head attention for one batch element; everything in registers.

    q: (Tq, INNER), k/v: (Tk, INNER), bias broadcastable to (N_HEADS*Tq, Tk).
    All heads' scores are stacked along the sublane axis so the bias add /
    softmax path runs once on a full tile.  T5 attention: NO 1/sqrt(d) scaling.
    """
    tq = q.shape[0]
    s = jnp.concatenate(
        [jax.lax.dot_general(
            q[:, h * D_KV:(h + 1) * D_KV],
            k[:, h * D_KV:(h + 1) * D_KV],
            (((1,), (1,)), ((), ())),
            preferred_element_type=jnp.float32)
         for h in range(N_HEADS)],
        axis=0)                                          # (H*Tq, Tk)
    s = s + bias
    m = jnp.max(s, axis=-1, keepdims=True)
    p = jnp.exp(s - m)
    p = p * pl.reciprocal(jnp.sum(p, axis=-1, keepdims=True), approx=True)
    ctx = jnp.concatenate(
        [jnp.dot(p[h * tq:(h + 1) * tq, :], v[:, h * D_KV:(h + 1) * D_KV],
                 preferred_element_type=jnp.float32)
         for h in range(N_HEADS)],
        axis=1)                                          # (Tq, INNER)
    return ctx


# ----------------------------- fused T5 kernel --------------------------------
def _t5_kernel(
    # per-grid-step activations / per-batch mask
    xe_ref, yd_ref, emask_ref,
    # shared (batch-independent) biases
    ebias_ref, sbias_ref,
    # encoder weights
    e_wqkv_ref, e_wo_ref, e_wi_ref, e_woff_ref, e_lns_ref,
    # decoder weights
    d_sqkv_ref, d_so_ref, d_cq_ref, d_ckv_ref, d_co_ref,
    d_wi_ref, d_woff_ref, d_lns_ref,
    # pre-transposed tied embedding (D_MODEL, VOCAB)
    embT_ref,
    # output
    logits_ref,
    *, bb, t_enc, t_dec,
):
    ebias = ebias_ref[...]           # (H*Te, Te) shared encoder rel-pos bias
    sbias = sbias_ref[...]           # (H*Td, Td) shared decoder rel-pos + causal

    # ---------------- encoder stack ----------------
    x = xe_ref[...]                  # (bb*Te, D)
    for l in range(N_LAYERS):
        h = _rmsnorm(x, e_lns_ref[pl.ds(2 * l, 1), :])
        qkv = jnp.dot(h, e_wqkv_ref[pl.ds(l * D_MODEL, D_MODEL), :],
                      preferred_element_type=jnp.float32)      # (bb*Te, 3*INNER)
        ctxs = []
        for b in range(bb):
            blk = qkv[b * t_enc:(b + 1) * t_enc, :]
            ctxs.append(_mha(blk[:, 0:INNER], blk[:, INNER:2 * INNER],
                             blk[:, 2 * INNER:3 * INNER],
                             ebias + emask_ref[b]))
        ctx = ctxs[0] if bb == 1 else jnp.concatenate(ctxs, axis=0)
        x = x + jnp.dot(ctx, e_wo_ref[pl.ds(l * INNER, INNER), :],
                        preferred_element_type=jnp.float32)
        h = _rmsnorm(x, e_lns_ref[pl.ds(2 * l + 1, 1), :])
        ff = jnp.maximum(
            jnp.dot(h, e_wi_ref[pl.ds(l * D_MODEL, D_MODEL), :],
                    preferred_element_type=jnp.float32), 0.0)
        x = x + jnp.dot(ff, e_woff_ref[pl.ds(l * D_FF, D_FF), :],
                        preferred_element_type=jnp.float32)
    enc = _rmsnorm(x, e_lns_ref[pl.ds(2 * N_LAYERS, 1), :])     # (bb*Te, D), registers only

    # ---------------- decoder stack ----------------
    y = yd_ref[...]                  # (bb*Td, D)
    for l in range(N_LAYERS):
        # -- self attention (causal + rel-pos; shared across batch) --
        h = _rmsnorm(y, d_lns_ref[pl.ds(3 * l, 1), :])
        qkv = jnp.dot(h, d_sqkv_ref[pl.ds(l * D_MODEL, D_MODEL), :],
                      preferred_element_type=jnp.float32)
        ctxs = []
        for b in range(bb):
            blk = qkv[b * t_dec:(b + 1) * t_dec, :]
            ctxs.append(_mha(blk[:, 0:INNER], blk[:, INNER:2 * INNER],
                             blk[:, 2 * INNER:3 * INNER], sbias))
        ctx = ctxs[0] if bb == 1 else jnp.concatenate(ctxs, axis=0)
        y = y + jnp.dot(ctx, d_so_ref[pl.ds(l * INNER, INNER), :],
                        preferred_element_type=jnp.float32)

        # -- cross attention (no position bias, encoder padding mask) --
        h = _rmsnorm(y, d_lns_ref[pl.ds(3 * l + 1, 1), :])
        qx = jnp.dot(h, d_cq_ref[pl.ds(l * D_MODEL, D_MODEL), :],
                     preferred_element_type=jnp.float32)        # (bb*Td, INNER)
        kvx = jnp.dot(enc, d_ckv_ref[pl.ds(l * D_MODEL, D_MODEL), :],
                      preferred_element_type=jnp.float32)       # (bb*Te, 2*INNER)
        ctxs = []
        for b in range(bb):
            qb = qx[b * t_dec:(b + 1) * t_dec, :]
            kvb = kvx[b * t_enc:(b + 1) * t_enc, :]
            ctxs.append(_mha(qb, kvb[:, 0:INNER], kvb[:, INNER:2 * INNER],
                             emask_ref[b]))
        ctx = ctxs[0] if bb == 1 else jnp.concatenate(ctxs, axis=0)
        y = y + jnp.dot(ctx, d_co_ref[pl.ds(l * INNER, INNER), :],
                        preferred_element_type=jnp.float32)

        # -- FFN --
        h = _rmsnorm(y, d_lns_ref[pl.ds(3 * l + 2, 1), :])
        ff = jnp.maximum(
            jnp.dot(h, d_wi_ref[pl.ds(l * D_MODEL, D_MODEL), :],
                    preferred_element_type=jnp.float32), 0.0)
        y = y + jnp.dot(ff, d_woff_ref[pl.ds(l * D_FF, D_FF), :],
                        preferred_element_type=jnp.float32)

    # ---------------- tied lm_head ----------------
    # d_model**-0.5 scale folded into the packed final-LN row (glue side);
    # embedding pre-transposed so this is a plain MXU matmul into the
    # lane-dense (bb*Td, 128) logits tile.
    yf = _rmsnorm(y, d_lns_ref[pl.ds(3 * N_LAYERS, 1), :])
    logits_ref[...] = jnp.dot(
        yf, embT_ref[...], preferred_element_type=jnp.float32
    ).astype(logits_ref.dtype)


# ----------------------------- T5 glue (plain JAX) ----------------------------
def _relative_position_bucket(relative_position, bidirectional,
                              num_buckets=NUM_BUCKETS, max_distance=MAX_DISTANCE):
    relative_buckets = jnp.zeros_like(relative_position)
    if bidirectional:
        num_buckets = num_buckets // 2
        relative_buckets += (relative_position > 0).astype(jnp.int32) * num_buckets
        relative_position = jnp.abs(relative_position)
    else:
        relative_position = -jnp.minimum(relative_position, jnp.zeros_like(relative_position))
    max_exact = num_buckets // 2
    is_small = relative_position < max_exact
    rp_f = jnp.maximum(relative_position, 1).astype(jnp.float32)
    rp_large = max_exact + (
        jnp.log(rp_f / max_exact)
        / math.log(max_distance / max_exact)
        * (num_buckets - max_exact)
    ).astype(jnp.int32)
    rp_large = jnp.minimum(rp_large, num_buckets - 1)
    relative_buckets += jnp.where(is_small, relative_position, rp_large)
    return relative_buckets


def compute_position_bias(rel_emb, q_len, k_len, bidirectional):
    context_position = jnp.arange(q_len, dtype=jnp.int32)[:, None]
    memory_position = jnp.arange(k_len, dtype=jnp.int32)[None, :]
    relative_position = memory_position - context_position
    buckets = _relative_position_bucket(relative_position, bidirectional)
    values = rel_emb[buckets]                       # (q, k, H)
    return jnp.transpose(values, (2, 0, 1))         # (H, q, k)


def t5_forward(params, input_ids, attention_mask, decoder_input_ids,
               *, batch_block=None):
    B, Te = input_ids.shape
    Td = decoder_input_ids.shape[1]
    E = params["embed"]

    # Batch packing: process `batch_block` batch elements per grid step to
    # amortize per-step overhead / raise matmul M, while keeping >=2 grid
    # steps when possible so megacore (v7x) can shard the batch axis.
    if batch_block is None:
        batch_block = B // 2 if (B % 2 == 0 and B >= 2) else B
    assert B % batch_block == 0
    steps = B // batch_block

    # per-batch encoder padding mask as an additive row: (B, 1, Te)
    enc_mask_row = ((1.0 - attention_mask.astype(jnp.float32)) * NEG)[:, None, :]

    # shared (batch-independent) biases -- passed once, held resident in VMEM
    pos_bias_enc = compute_position_bias(params["enc_rel_bias"], Te, Te, True)
    pos_bias_dec = compute_position_bias(params["dec_rel_bias"], Td, Td, False)
    causal_add = (1.0 - jnp.tril(jnp.ones((Td, Td), jnp.float32))) * NEG
    enc_bias = pos_bias_enc.reshape(N_HEADS * Te, Te)
    dec_sbias = (pos_bias_dec + causal_add[None, :, :]).reshape(N_HEADS * Td, Td)

    # TODO(synk): embedding gather stays in JAX glue (no clean Pallas gather here).
    x_emb = E[input_ids].reshape(B * Te, D_MODEL)
    y_emb = E[decoder_input_ids].reshape(B * Td, D_MODEL)

    # --- pack per-layer weights: fused QKV / KV, row-stacked over layers ---
    # TODO(synk): lane-packing weight slabs to 128 lanes skipped (small win at D_MODEL=32).
    ew = params["enc_layers"]
    e_wqkv = jnp.concatenate(
        [jnp.concatenate([l["wq"], l["wk"], l["wv"]], 1) for l in ew], 0)
    e_wo = jnp.concatenate([l["wo"] for l in ew], 0)
    e_wi = jnp.concatenate([l["wi"] for l in ew], 0)
    e_woff = jnp.concatenate([l["wo_ff"] for l in ew], 0)
    e_lns = jnp.stack([w for l in ew for w in (l["ln1"], l["ln2"])]
                      + [params["enc_final_ln"]], 0)

    dw = params["dec_layers"]
    d_sqkv = jnp.concatenate(
        [jnp.concatenate([l["sq"], l["sk"], l["sv"]], 1) for l in dw], 0)
    d_so = jnp.concatenate([l["so"] for l in dw], 0)
    d_cq = jnp.concatenate([l["cq"] for l in dw], 0)
    d_ckv = jnp.concatenate(
        [jnp.concatenate([l["ck"], l["cv"]], 1) for l in dw], 0)
    d_co = jnp.concatenate([l["co"] for l in dw], 0)
    d_wi = jnp.concatenate([l["wi"] for l in dw], 0)
    d_woff = jnp.concatenate([l["wo_ff"] for l in dw], 0)
    # fold the tied-head d_model**-0.5 scale into the final decoder LN row
    d_lns = jnp.stack([w for l in dw for w in (l["ln1"], l["ln2"], l["ln3"])]
                      + [params["dec_final_ln"] * (D_MODEL ** -0.5)], 0)

    emb_t = E.T                                      # (D_MODEL, VOCAB) lane-dense RHS

    weights = (e_wqkv, e_wo, e_wi, e_woff, e_lns,
               d_sqkv, d_so, d_cq, d_ckv, d_co, d_wi, d_woff, d_lns, emb_t)

    in_specs = [
        pl.BlockSpec((batch_block * Te, D_MODEL), lambda b: (b, 0)),   # enc tokens
        pl.BlockSpec((batch_block * Td, D_MODEL), lambda b: (b, 0)),   # dec tokens
        pl.BlockSpec((batch_block, 1, Te), lambda b: (b, 0, 0)),       # enc pad-mask rows
        pl.BlockSpec((N_HEADS * Te, Te), lambda b: (0, 0)),            # shared enc rel bias
        pl.BlockSpec((N_HEADS * Td, Td), lambda b: (0, 0)),            # shared dec self bias
    ] + [pl.BlockSpec(w.shape, lambda b: (0, 0)) for w in weights]

    # rough advisory cost estimate
    def _attn_flops(tq, tk):
        return 4 * tq * tk * D_KV * N_HEADS
    flops_pb = 0
    for _ in range(N_LAYERS):
        flops_pb += (2 * Te * D_MODEL * 3 * INNER + _attn_flops(Te, Te)
                     + 2 * Te * INNER * D_MODEL + 4 * Te * D_MODEL * D_FF)
        flops_pb += (2 * Td * D_MODEL * 3 * INNER + _attn_flops(Td, Td)
                     + 2 * Td * INNER * D_MODEL
                     + 2 * Td * D_MODEL * INNER + 2 * Te * D_MODEL * 2 * INNER
                     + _attn_flops(Td, Te) + 2 * Td * INNER * D_MODEL
                     + 4 * Td * D_MODEL * D_FF)
    flops_pb += 2 * Td * D_MODEL * VOCAB
    flops = B * flops_pb
    trans = B * N_LAYERS * N_HEADS * (Te * Te + Td * Td + Td * Te) + B * 8 * (Te + Td)
    bytes_acc = 4 * (x_emb.size + y_emb.size + enc_mask_row.size
                     + enc_bias.size + dec_sbias.size
                     + sum(int(w.size) for w in weights) + B * Td * VOCAB)

    kernel = functools.partial(_t5_kernel, bb=batch_block, t_enc=Te, t_dec=Td)
    logits = pl.pallas_call(
        kernel,
        out_shape=jax.ShapeDtypeStruct((B * Td, VOCAB), jnp.float32),
        grid=(steps,),
        in_specs=in_specs,
        out_specs=pl.BlockSpec((batch_block * Td, VOCAB), lambda b: (b, 0)),
        compiler_params=pltpu.CompilerParams(
            # TODO(synk): on v7x an explicit CORE_PARALLEL / core_map split of
            # this axis would guarantee 2-way TC sharding; "parallel" kept for
            # portability across v5e/v6e/v7x.
            dimension_semantics=("parallel",),
            vmem_limit_bytes=8 * 1024 * 1024,
        ),
        cost_estimate=pl.CostEstimate(
            flops=int(flops), transcendentals=int(trans),
            bytes_accessed=int(bytes_acc)),
    )(x_emb, y_emb, enc_mask_row, enc_bias, dec_sbias, *weights)

    return logits.reshape(B, Td, VOCAB)


# ----------------------------- deterministic params ---------------------------
def init_params(key):
    keys = iter(jax.random.split(key, 256))

    def nrm(shape, scale=0.02):
        return jax.random.normal(next(keys), shape, jnp.float32) * scale

    params = {
        "embed": nrm((VOCAB, D_MODEL)),
        "enc_rel_bias": nrm((NUM_BUCKETS, N_HEADS)),
        "dec_rel_bias": nrm((NUM_BUCKETS, N_HEADS)),
        "enc_final_ln": jnp.ones((D_MODEL,), jnp.float32),
        "dec_final_ln": jnp.ones((D_MODEL,), jnp.float32),
        "enc_layers": [],
        "dec_layers": [],
    }
    for _ in range(N_LAYERS):
        params["enc_layers"].append(dict(
            ln1=jnp.ones((D_MODEL,), jnp.float32),
            wq=nrm((D_MODEL, INNER)), wk=nrm((D_MODEL, INNER)),
            wv=nrm((D_MODEL, INNER)), wo=nrm((INNER, D_MODEL)),
            ln2=jnp.ones((D_MODEL,), jnp.float32),
            wi=nrm((D_MODEL, D_FF)), wo_ff=nrm((D_FF, D_MODEL)),
        ))
    for _ in range(N_LAYERS):
        params["dec_layers"].append(dict(
            ln1=jnp.ones((D_MODEL,), jnp.float32),
            sq=nrm((D_MODEL, INNER)), sk=nrm((D_MODEL, INNER)),
            sv=nrm((D_MODEL, INNER)), so=nrm((INNER, D_MODEL)),
            ln2=jnp.ones((D_MODEL,), jnp.float32),
            cq=nrm((D_MODEL, INNER)), ck=nrm((D_MODEL, INNER)),
            cv=nrm((D_MODEL, INNER)), co=nrm((INNER, D_MODEL)),
            ln3=jnp.ones((D_MODEL,), jnp.float32),
            wi=nrm((D_MODEL, D_FF)), wo_ff=nrm((D_FF, D_MODEL)),
        ))
    return params


# ----------------------------- main -------------------------------------------
if __name__ == "__main__":
    B, T_ENC, T_DEC = 2, 8, 8
    root = jax.random.PRNGKey(0)
    kp, ki, kd = jax.random.split(root, 3)

    params = init_params(kp)
    input_ids = jax.random.randint(ki, (B, T_ENC), 0, VOCAB, dtype=jnp.int32)
    decoder_input_ids = jax.random.randint(kd, (B, T_DEC), 0, VOCAB, dtype=jnp.int32)
    # pad the tail of the second example to exercise the encoder attention mask
    attention_mask = jnp.ones((B, T_ENC), jnp.int32).at[1, -2:].set(0)

    fwd = jax.jit(t5_forward)
    logits = fwd(params, input_ids, attention_mask, decoder_input_ids)
    logits = jax.block_until_ready(logits)

    assert logits.shape == (B, T_DEC, VOCAB), logits.shape
    assert bool(jnp.isfinite(logits).all())
    print("KERNEL_OK")
</pallas_src>

<mosaic_0001>
module attributes {stable_mosaic.version = 11 : i64} {
  func.func @_t5_kernel(%arg0: i32, %arg1: memref<8x32xf32, #tpu.memory_space<vmem>>, %arg2: memref<8x32xf32, #tpu.memory_space<vmem>>, %arg3: memref<1x1x8xf32, #tpu.memory_space<vmem>>, %arg4: memref<32x8xf32, #tpu.memory_space<vmem>>, %arg5: memref<32x8xf32, #tpu.memory_space<vmem>>, %arg6: memref<64x96xf32, #tpu.memory_space<vmem>>, %arg7: memref<64x32xf32, #tpu.memory_space<vmem>>, %arg8: memref<64x64xf32, #tpu.memory_space<vmem>>, %arg9: memref<128x32xf32, #tpu.memory_space<vmem>>, %arg10: memref<5x32xf32, #tpu.memory_space<vmem>>, %arg11: memref<64x96xf32, #tpu.memory_space<vmem>>, %arg12: memref<64x32xf32, #tpu.memory_space<vmem>>, %arg13: memref<64x32xf32, #tpu.memory_space<vmem>>, %arg14: memref<64x64xf32, #tpu.memory_space<vmem>>, %arg15: memref<64x32xf32, #tpu.memory_space<vmem>>, %arg16: memref<64x64xf32, #tpu.memory_space<vmem>>, %arg17: memref<128x32xf32, #tpu.memory_space<vmem>>, %arg18: memref<7x32xf32, #tpu.memory_space<vmem>>, %arg19: memref<32x128xf32, #tpu.memory_space<vmem>>, %arg20: memref<8x128xf32, #tpu.memory_space<vmem>>) attributes {dimension_semantics = [#tpu.dimension_semantics<parallel>], iteration_bounds = array<i64: 2>, scalar_prefetch = 0 : i64, scratch_operands = 0 : i64, tpu.core_type = #tpu.core_type<tc>, window_params = [{transform_indices = @transform_0, window_bounds = array<i64: 8, 32>}, {transform_indices = @transform_1, window_bounds = array<i64: 8, 32>}, {transform_indices = @transform_2, window_bounds = array<i64: 1, 1, 8>}, {pipeline_mode = #tpu.pipeline_mode<synchronous>, transform_indices = @transform_3, window_bounds = array<i64: 32, 8>}, {pipeline_mode = #tpu.pipeline_mode<synchronous>, transform_indices = @transform_4, window_bounds = array<i64: 32, 8>}, {pipeline_mode = #tpu.pipeline_mode<synchronous>, transform_indices = @transform_5, window_bounds = array<i64: 64, 96>}, {pipeline_mode = #tpu.pipeline_mode<synchronous>, transform_indices = @transform_6, window_bounds = array<i64: 64, 32>}, {pipeline_mode = #tpu.pipeline_mode<synchronous>, transform_indices = @transform_7, window_bounds = array<i64: 64, 64>}, {pipeline_mode = #tpu.pipeline_mode<synchronous>, transform_indices = @transform_8, window_bounds = array<i64: 128, 32>}, {pipeline_mode = #tpu.pipeline_mode<synchronous>, transform_indices = @transform_9, window_bounds = array<i64: 5, 32>}, {pipeline_mode = #tpu.pipeline_mode<synchronous>, transform_indices = @transform_10, window_bounds = array<i64: 64, 96>}, {pipeline_mode = #tpu.pipeline_mode<synchronous>, transform_indices = @transform_11, window_bounds = array<i64: 64, 32>}, {pipeline_mode = #tpu.pipeline_mode<synchronous>, transform_indices = @transform_12, window_bounds = array<i64: 64, 32>}, {pipeline_mode = #tpu.pipeline_mode<synchronous>, transform_indices = @transform_13, window_bounds = array<i64: 64, 64>}, {pipeline_mode = #tpu.pipeline_mode<synchronous>, transform_indices = @transform_14, window_bounds = array<i64: 64, 32>}, {pipeline_mode = #tpu.pipeline_mode<synchronous>, transform_indices = @transform_15, window_bounds = array<i64: 64, 64>}, {pipeline_mode = #tpu.pipeline_mode<synchronous>, transform_indices = @transform_16, window_bounds = array<i64: 128, 32>}, {pipeline_mode = #tpu.pipeline_mode<synchronous>, transform_indices = @transform_17, window_bounds = array<i64: 7, 32>}, {pipeline_mode = #tpu.pipeline_mode<synchronous>, transform_indices = @transform_18, window_bounds = array<i64: 32, 128>}, {transform_indices = @transform_19, window_bounds = array<i64: 8, 128>}]} {
    %c0 = arith.constant 0 : index
    %c0_0 = arith.constant 0 : index
    %0 = vector.load %arg4[%c0, %c0_0] : memref<32x8xf32, #tpu.memory_space<vmem>>, vector<32x8xf32>
    %c0_1 = arith.constant 0 : index
    %c0_2 = arith.constant 0 : index
    %1 = vector.load %arg5[%c0_1, %c0_2] : memref<32x8xf32, #tpu.memory_space<vmem>>, vector<32x8xf32>
    %c0_3 = arith.constant 0 : index
    %c0_4 = arith.constant 0 : index
    %2 = vector.load %arg1[%c0_3, %c0_4] : memref<8x32xf32, #tpu.memory_space<vmem>>, vector<8x32xf32>
    %c0_5 = arith.constant 0 : index
    %c0_6 = arith.constant 0 : index
    %3 = vector.load %arg10[%c0_5, %c0_6] : memref<5x32xf32, #tpu.memory_space<vmem>>, vector<1x32xf32>
    %4 = arith.mulf %2, %2 : vector<8x32xf32>
    %cst = arith.constant dense<0.000000e+00> : vector<8xf32>
    %5 = vector.multi_reduction <add>, %4, %cst [1] : vector<8x32xf32> to vector<8xf32>
    %6 = vector.shape_cast %5 : vector<8xf32> to vector<8x1xf32>
    %cst_7 = arith.constant 3.200000e+01 : f32
    %7 = vector.broadcast %cst_7 : f32 to vector<8x1xf32>
    %8 = arith.divf %6, %7 : vector<8x1xf32>
    %cst_8 = arith.constant 9.99999997E-7 : f32
    %9 = vector.broadcast %cst_8 : f32 to vector<8x1xf32>
    %10 = arith.addf %8, %9 : vector<8x1xf32>
    %11 = math.rsqrt %10 : vector<8x1xf32>
    %12 = vector.broadcast %11 : vector<8x1xf32> to vector<8x32xf32>
    %13 = arith.mulf %2, %12 : vector<8x32xf32>
    %14 = vector.broadcast %3 : vector<1x32xf32> to vector<8x32xf32>
    %15 = arith.mulf %13, %14 : vector<8x32xf32>
    %c0_9 = arith.constant 0 : index
    %c0_10 = arith.constant 0 : index
    %16 = vector.load %arg6[%c0_9, %c0_10] : memref<64x96xf32, #tpu.memory_space<vmem>>, vector<32x96xf32>
    %cst_11 = arith.constant dense<0.000000e+00> : vector<8x96xf32>
    %17 = tpu.matmul %15, %16, %cst_11 {dimension_numbers = #tpu.dot_dimension_numbers<[1], [0], [0], [1], [0, 0, 1, 1], [], []>} : vector<8x32xf32>, vector<32x96xf32>, vector<8x96xf32> -> vector<8x96xf32>
    %18 = vector.extract_strided_slice %17 {offsets = [0, 0], sizes = [8, 32], strides = [1, 1]} : vector<8x96xf32> to vector<8x32xf32>
    %19 = vector.extract_strided_slice %17 {offsets = [0, 32], sizes = [8, 32], strides = [1, 1]} : vector<8x96xf32> to vector<8x32xf32>
    %20 = vector.extract_strided_slice %17 {offsets = [0, 64], sizes = [8, 32], strides = [1, 1]} : vector<8x96xf32> to vector<8x32xf32>
    %c0_12 = arith.constant 0 : index
    %c0_13 = arith.constant 0 : index
    %c0_14 = arith.constant 0 : index
    %21 = vector.load %arg3[%c0_12, %c0_13, %c0_14] : memref<1x1x8xf32, #tpu.memory_space<vmem>>, vector<1x1x8xf32>
    %22 = vector.shape_cast %21 : vector<1x1x8xf32> to vector<1x8xf32>
    %23 = vector.broadcast %22 : vector<1x8xf32> to vector<32x8xf32>
    %24 = arith.addf %0, %23 : vector<32x8xf32>
    %25 = vector.extract_strided_slice %18 {offsets = [0, 0], sizes = [8, 8], strides = [1, 1]} : vector<8x32xf32> to vector<8x8xf32>
    %26 = vector.extract_strided_slice %19 {offsets = [0, 0], sizes = [8, 8], strides = [1, 1]} : vector<8x32xf32> to vector<8x8xf32>
    %cst_15 = arith.constant dense<0.000000e+00> : vector<8x8xf32>
    %27 = tpu.matmul %25, %26, %cst_15 {dimension_numbers = #tpu.dot_dimension_numbers<[1], [1], [0], [0], [0, 0, 1, 0], [], []>} : vector<8x8xf32>, vector<8x8xf32>, vector<8x8xf32> -> vector<8x8xf32>
    %28 = vector.extract_strided_slice %18 {offsets = [0, 8], sizes = [8, 8], strides = [1, 1]} : vector<8x32xf32> to vector<8x8xf32>
    %29 = vector.extract_strided_slice %19 {offsets = [0, 8], sizes = [8, 8], strides = [1, 1]} : vector<8x32xf32> to vector<8x8xf32>
    %cst_16 = arith.constant dense<0.000000e+00> : vector<8x8xf32>
    %30 = tpu.matmul %28, %29, %cst_16 {dimension_numbers = #tpu.dot_dimension_numbers<[1], [1], [0], [0], [0, 0, 1, 0], [], []>} : vector<8x8xf32>, vector<8x8xf32>, vector<8x8xf32> -> vector<8x8xf32>
    %31 = vector.extract_strided_slice %18 {offsets = [0, 16], sizes = [8, 8], strides = [1, 1]} : vector<8x32xf32> to vector<8x8xf32>
    %32 = vector.extract_strided_slice %19 {offsets = [0, 16], sizes = [8, 8], strides = [1, 1]} : vector<8x32xf32> to vector<8x8xf32>
    %cst_17 = arith.constant dense<0.000000e+00> : vector<8x8xf32>
    %33 = tpu.matmul %31, %32, %cst_17 {dimension_numbers = #tpu.dot_dimension_numbers<[1], [1], [0], [0], [0, 0, 1, 0], [], []>} : vector<8x8xf32>, vector<8x8xf32>, vector<8x8xf32> -> vector<8x8xf32>
    %34 = vector.extract_strided_slice %18 {offsets = [0, 24], sizes = [8, 8], strides = [1, 1]} : vector<8x32xf32> to vector<8x8xf32>
    %35 = vector.extract_strided_slice %19 {offsets = [0, 24], sizes = [8, 8], strides = [1, 1]} : vector<8x32xf32> to vector<8x8xf32>
    %cst_18 = arith.constant dense<0.000000e+00> : vector<8x8xf32>
    %36 = tpu.matmul %34, %35, %cst_18 {dimension_numbers = #tpu.dot_dimension_numbers<[1], [1], [0], [0], [0, 0, 1, 0], [], []>} : vector<8x8xf32>, vector<8x8xf32>, vector<8x8xf32> -> vector<8x8xf32>
    %37 = tpu.concatenate %27, %30, %33, %36 in 0 : vector<8x8xf32>, vector<8x8xf32>, vector<8x8xf32>, vector<8x8xf32> -> vector<32x8xf32>
    %38 = arith.addf %37, %24 : vector<32x8xf32>
    %cst_19 = arith.constant dense<0xFF800000> : vector<32xf32>
    %39 = vector.multi_reduction <maximumf>, %38, %cst_19 [1] : vector<32x8xf32> to vector<32xf32>
    %40 = vector.shape_cast %39 : vector<32xf32> to vector<32x1xf32>
    %41 = vector.broadcast %40 : vector<32x1xf32> to vector<32x8xf32>
    %42 = arith.subf %38, %41 : vector<32x8xf32>
    %43 = math.exp %42 : vector<32x8xf32>
    %cst_20 = arith.constant dense<0.000000e+00> : vector<32xf32>
    %44 = vector.multi_reduction <add>, %43, %cst_20 [1] : vector<32x8xf32> to vector<32xf32>
    %45 = vector.shape_cast %44 : vector<32xf32> to vector<32x1xf32>
    %46 = tpu.reciprocal %45 {approx = true} : vector<32x1xf32> -> vector<32x1xf32>
    %47 = vector.broadcast %46 : vector<32x1xf32> to vector<32x8xf32>
    %48 = arith.mulf %43, %47 : vector<32x8xf32>
    %49 = vector.extract_strided_slice %48 {offsets = [0, 0], sizes = [8, 8], strides = [1, 1]} : vector<32x8xf32> to vector<8x8xf32>
    %50 = vector.extract_strided_slice %20 {offsets = [0, 0], sizes = [8, 8], strides = [1, 1]} : vector<8x32xf32> to vector<8x8xf32>
    %cst_21 = arith.constant dense<0.000000e+00> : vector<8x8xf32>
    %51 = tpu.matmul %49, %50, %cst_21 {dimension_numbers = #tpu.dot_dimension_numbers<[1], [0], [0], [1], [0, 0, 1, 1], [], []>} : vector<8x8xf32>, vector<8x8xf32>, vector<8x8xf32> -> vector<8x8xf32>
    %52 = vector.extract_strided_slice %48 {offsets = [8, 0], sizes = [8, 8], strides = [1, 1]} : vector<32x8xf32> to vector<8x8xf32>
    %53 = vector.extract_strided_slice %20 {offsets = [0, 8], sizes = [8, 8], strides = [1, 1]} : vector<8x32xf32> to vector<8x8xf32>
    %cst_22 = arith.constant dense<0.000000e+00> : vector<8x8xf32>
    %54 = tpu.matmul %52, %53, %cst_22 {dimension_numbers = #tpu.dot_dimension_numbers<[1], [0], [0], [1], [0, 0, 1, 1], [], []>} : vector<8x8xf32>, vector<8x8xf32>, vector<8x8xf32> -> vector<8x8xf32>
    %55 = vector.extract_strided_slice %48 {offsets = [16, 0], sizes = [8, 8], strides = [1, 1]} : vector<32x8xf32> to vector<8x8xf32>
    %56 = vector.extract_strided_slice %20 {offsets = [0, 16], sizes = [8, 8], strides = [1, 1]} : vector<8x32xf32> to vector<8x8xf32>
    %cst_23 = arith.constant dense<0.000000e+00> : vector<8x8xf32>
    %57 = tpu.matmul %55, %56, %cst_23 {dimension_numbers = #tpu.dot_dimension_numbers<[1], [0], [0], [1], [0, 0, 1, 1], [], []>} : vector<8x8xf32>, vector<8x8xf32>, vector<8x8xf32> -> vector<8x8xf32>
    %58 = vector.extract_strided_slice %48 {offsets = [24, 0], sizes = [8, 8], strides = [1, 1]} : vector<32x8xf32> to vector<8x8xf32>
    %59 = vector.extract_strided_slice %20 {offsets = [0, 24], sizes = [8, 8], strides = [1, 1]} : vector<8x32xf32> to vector<8x8xf32>
    %cst_24 = arith.constant dense<0.000000e+00> : vector<8x8xf32>
    %60 = tpu.matmul %58, %59, %cst_24 {dimension_numbers = #tpu.dot_dimension_numbers<[1], [0], [0], [1], [0, 0, 1, 1], [], []>} : vector<8x8xf32>, vector<8x8xf32>, vector<8x8xf32> -> vector<8x8xf32>
    %61 = tpu.concatenate %51, %54, %57, %60 in 1 : vector<8x8xf32>, vector<8x8xf32>, vector<8x8xf32>, vector<8x8xf32> -> vector<8x32xf32>
    %c0_25 = arith.constant 0 : index
    %c0_26 = arith.constant 0 : index
    %62 = vector.load %arg7[%c0_25, %c0_26] : memref<64x32xf32, #tpu.memory_space<vmem>>, vector<32x32xf32>
    %cst_27 = arith.constant dense<0.000000e+00> : vector<8x32xf32>
    %63 = tpu.matmul %61, %62, %cst_27 {dimension_numbers = #tpu.dot_dimension_numbers<[1], [0], [0], [1], [0, 0, 1, 1], [], []>} : vector<8x32xf32>, vector<32x32xf32>, vector<8x32xf32> -> vector<8x32xf32>
    %64 = arith.addf %2, %63 : vector<8x32xf32>
    %c1 = arith.constant 1 : index
    %c0_28 = arith.constant 0 : index
    %65 = vector.load %arg10[%c1, %c0_28] : memref<5x32xf32, #tpu.memory_space<vmem>>, vector<1x32xf32>
    %66 = arith.mulf %64, %64 : vector<8x32xf32>
    %cst_29 = arith.constant dense<0.000000e+00> : vector<8xf32>
    %67 = vector.multi_reduction <add>, %66, %cst_29 [1] : vector<8x32xf32> to vector<8xf32>
    %68 = vector.shape_cast %67 : vector<8xf32> to vector<8x1xf32>
    %cst_30 = arith.constant 3.200000e+01 : f32
    %69 = vector.broadcast %cst_30 : f32 to vector<8x1xf32>
    %70 = arith.divf %68, %69 : vector<8x1xf32>
    %cst_31 = arith.constant 9.99999997E-7 : f32
    %71 = vector.broadcast %cst_31 : f32 to vector<8x1xf32>
    %72 = arith.addf %70, %71 : vector<8x1xf32>
    %73 = math.rsqrt %72 : vector<8x1xf32>
    %74 = vector.broadcast %73 : vector<8x1xf32> to vector<8x32xf32>
    %75 = arith.mulf %64, %74 : vector<8x32xf32>
    %76 = vector.broadcast %65 : vector<1x32xf32> to vector<8x32xf32>
    %77 = arith.mulf %75, %76 : vector<8x32xf32>
    %c0_32 = arith.constant 0 : index
    %c0_33 = arith.constant 0 : index
    %78 = vector.load %arg8[%c0_32, %c0_33] : memref<64x64xf32, #tpu.memory_space<vmem>>, vector<32x64xf32>
    %cst_34 = arith.constant dense<0.000000e+00> : vector<8x64xf32>
    %79 = tpu.matmul %77, %78, %cst_34 {dimension_numbers = #tpu.dot_dimension_numbers<[1], [0], [0], [1], [0, 0, 1, 1], [], []>} : vector<8x32xf32>, vector<32x64xf32>, vector<8x64xf32> -> vector<8x64xf32>
    %cst_35 = arith.constant 0.000000e+00 : f32
    %80 = vector.broadcast %cst_35 : f32 to vector<8x64xf32>
    %81 = arith.maximumf %79, %80 : vector<8x64xf32>
    %c0_36 = arith.constant 0 : index
    %c0_37 = arith.constant 0 : index
    %82 = vector.load %arg9[%c0_36, %c0_37] : memref<128x32xf32, #tpu.memory_space<vmem>>, vector<64x32xf32>
    %cst_38 = arith.constant dense<0.000000e+00> : vector<8x32xf32>
    %83 = tpu.matmul %81, %82, %cst_38 {dimension_numbers = #tpu.dot_dimension_numbers<[1], [0], [0], [1], [0, 0, 1, 1], [], []>} : vector<8x64xf32>, vector<64x32xf32>, vector<8x32xf32> -> vector<8x32xf32>
    %84 = arith.addf %64, %83 : vector<8x32xf32>
    %c2 = arith.constant 2 : index
    %c0_39 = arith.constant 0 : index
    %85 = vector.load %arg10[%c2, %c0_39] : memref<5x32xf32, #tpu.memory_space<vmem>>, vector<1x32xf32>
    %86 = arith.mulf %84, %84 : vector<8x32xf32>
    %cst_40 = arith.constant dense<0.000000e+00> : vector<8xf32>
    %87 = vector.multi_reduction <add>, %86, %cst_40 [1] : vector<8x32xf32> to vector<8xf32>
    %88 = vector.shape_cast %87 : vector<8xf32> to vector<8x1xf32>
    %cst_41 = arith.constant 3.200000e+01 : f32
    %89 = vector.broadcast %cst_41 : f32 to vector<8x1xf32>
    %90 = arith.divf %88, %89 : vector<8x1xf32>
    %cst_42 = arith.constant 9.99999997E-7 : f32
    %91 = vector.broadcast %cst_42 : f32 to vector<8x1xf32>
    %92 = arith.addf %90, %91 : vector<8x1xf32>
    %93 = math.rsqrt %92 : vector<8x1xf32>
    %94 = vector.broadcast %93 : vector<8x1xf32> to vector<8x32xf32>
    %95 = arith.mulf %84, %94 : vector<8x32xf32>
    %96 = vector.broadcast %85 : vector<1x32xf32> to vector<8x32xf32>
    %97 = arith.mulf %95, %96 : vector<8x32xf32>
    %c32 = arith.constant 32 : index
    %c0_43 = arith.constant 0 : index
    %98 = vector.load %arg6[%c32, %c0_43] : memref<64x96xf32, #tpu.memory_space<vmem>>, vector<32x96xf32>
    %cst_44 = arith.constant dense<0.000000e+00> : vector<8x96xf32>
    %99 = tpu.matmul %97, %98, %cst_44 {dimension_numbers = #tpu.dot_dimension_numbers<[1], [0], [0], [1], [0, 0, 1, 1], [], []>} : vector<8x32xf32>, vector<32x96xf32>, vector<8x96xf32> -> vector<8x96xf32>
    %100 = vector.extract_strided_slice %99 {offsets = [0, 0], sizes = [8, 32], strides = [1, 1]} : vector<8x96xf32> to vector<8x32xf32>
    %101 = vector.extract_strided_slice %99 {offsets = [0, 32], sizes = [8, 32], strides = [1, 1]} : vector<8x96xf32> to vector<8x32xf32>
    %102 = vector.extract_strided_slice %99 {offsets = [0, 64], sizes = [8, 32], strides = [1, 1]} : vector<8x96xf32> to vector<8x32xf32>
    %c0_45 = arith.constant 0 : index
    %c0_46 = arith.constant 0 : index
    %c0_47 = arith.constant 0 : index
    %103 = vector.load %arg3[%c0_45, %c0_46, %c0_47] : memref<1x1x8xf32, #tpu.memory_space<vmem>>, vector<1x1x8xf32>
    %104 = vector.shape_cast %103 : vector<1x1x8xf32> to vector<1x8xf32>
    %105 = vector.broadcast %104 : vector<1x8xf32> to vector<32x8xf32>
    %106 = arith.addf %0, %105 : vector<32x8xf32>
    %107 = vector.extract_strided_slice %100 {offsets = [0, 0], sizes = [8, 8], strides = [1, 1]} : vector<8x32xf32> to vector<8x8xf32>
    %108 = vector.extract_strided_slice %101 {offsets = [0, 0], sizes = [8, 8], strides = [1, 1]} : vector<8x32xf32> to vector<8x8xf32>
    %cst_48 = arith.constant dense<0.000000e+00> : vector<8x8xf32>
    %109 = tpu.matmul %107, %108, %cst_48 {dimension_numbers = #tpu.dot_dimension_numbers<[1], [1], [0], [0], [0, 0, 1, 0], [], []>} : vector<8x8xf32>, vector<8x8xf32>, vector<8x8xf32> -> vector<8x8xf32>
    %110 = vector.extract_strided_slice %100 {offsets = [0, 8], sizes = [8, 8], strides = [1, 1]} : vector<8x32xf32> to vector<8x8xf32>
    %111 = vector.extract_strided_slice %101 {offsets = [0, 8], sizes = [8, 8], strides = [1, 1]} : vector<8x32xf32> to vector<8x8xf32>
    %cst_49 = arith.constant dense<0.000000e+00> : vector<8x8xf32>
    %112 = tpu.matmul %110, %111, %cst_49 {dimension_numbers = #tpu.dot_dimension_numbers<[1], [1], [0], [0], [0, 0, 1, 0], [], []>} : vector<8x8xf32>, vector<8x8xf32>, vector<8x8xf32> -> vector<8x8xf32>
    %113 = vector.extract_strided_slice %100 {offsets = [0, 16], sizes = [8, 8], strides = [1, 1]} : vector<8x32xf32> to vector<8x8xf32>
    %114 = vector.extract_strided_slice %101 {offsets = [0, 16], sizes = [8, 8], strides = [1, 1]} : vector<8x32xf32> to vector<8x8xf32>
    %cst_50 = arith.constant dense<0.000000e+00> : vector<8x8xf32>
    %115 = tpu.matmul %113, %114, %cst_50 {dimension_numbers = #tpu.dot_dimension_numbers<[1], [1], [0], [0], [0, 0, 1, 0], [], []>} : vector<8x8xf32>, vector<8x8xf32>, vector<8x8xf32> -> vector<8x8xf32>
    %116 = vector.extract_strided_slice %100 {offsets = [0, 24], sizes = [8, 8], strides = [1, 1]} : vector<8x32xf32> to vector<8x8xf32>
    %117 = vector.extract_strided_slice %101 {offsets = [0, 24], sizes = [8, 8], strides = [1, 1]} : vector<8x32xf32> to vector<8x8xf32>
    %cst_51 = arith.constant dense<0.000000e+00> : vector<8x8xf32>
    %118 = tpu.matmul %116, %117, %cst_51 {dimension_numbers = #tpu.dot_dimension_numbers<[1], [1], [0], [0], [0, 0, 1, 0], [], []>} : vector<8x8xf32>, vector<8x8xf32>, vector<8x8xf32> -> vector<8x8xf32>
    %119 = tpu.concatenate %109, %112, %115, %118 in 0 : vector<8x8xf32>, vector<8x8xf32>, vector<8x8xf32>, vector<8x8xf32> -> vector<32x8xf32>
    %120 = arith.addf %119, %106 : vector<32x8xf32>
    %cst_52 = arith.constant dense<0xFF800000> : vector<32xf32>
    %121 = vector.multi_reduction <maximumf>, %120, %cst_52 [1] : vector<32x8xf32> to vector<32xf32>
    %122 = vector.shape_cast %121 : vector<32xf32> to vector<32x1xf32>
    %123 = vector.broadcast %122 : vector<32x1xf32> to vector<32x8xf32>
    %124 = arith.subf %120, %123 : vector<32x8xf32>
    %125 = math.exp %124 : vector<32x8xf32>
    %cst_53 = arith.constant dense<0.000000e+00> : vector<32xf32>
    %126 = vector.multi_reduction <add>, %125, %cst_53 [1] : vector<32x8xf32> to vector<32xf32>
    %127 = vector.shape_cast %126 : vector<32xf32> to vector<32x1xf32>
    %128 = tpu.reciprocal %127 {approx = true} : vector<32x1xf32> -> vector<32x1xf32>
    %129 = vector.broadcast %128 : vector<32x1xf32> to vector<32x8xf32>
    %130 = arith.mulf %125, %129 : vector<32x8xf32>
    %131 = vector.extract_strided_slice %130 {offsets = [0, 0], sizes = [8, 8], strides = [1, 1]} : vector<32x8xf32> to vector<8x8xf32>
    %132 = vector.extract_strided_slice %102 {offsets = [0, 0], sizes = [8, 8], strides = [1, 1]} : vector<8x32xf32> to vector<8x8xf32>
    %cst_54 = arith.constant dense<0.000000e+00> : vector<8x8xf32>
    %133 = tpu.matmul %131, %132, %cst_54 {dimension_numbers = #tpu.dot_dimension_numbers<[1], [0], [0], [1], [0, 0, 1, 1], [], []>} : vector<8x8xf32>, vector<8x8xf32>, vector<8x8xf32> -> vector<8x8xf32>
    %134 = vector.extract_strided_slice %130 {offsets = [8, 0], sizes = [8, 8], strides = [1, 1]} : vector<32x8xf32> to vector<8x8xf32>
    %135 = vector.extract_strided_slice %102 {offsets = [0, 8], sizes = [8, 8], strides = [1, 1]} : vector<8x32xf32> to vector<8x8xf32>
    %cst_55 = arith.constant dense<0.000000e+00> : vector<8x8xf32>
    %136 = tpu.matmul %134, %135, %cst_55 {dimension_numbers = #tpu.dot_dimension_numbers<[1], [0], [0], [1], [0, 0, 1, 1], [], []>} : vector<8x8xf32>, vector<8x8xf32>, vector<8x8xf32> -> vector<8x8xf32>
    %137 = vector.extract_strided_slice %130 {offsets = [16, 0], sizes = [8, 8], strides = [1, 1]} : vector<32x8xf32> to vector<8x8xf32>
    %138 = vector.extract_strided_slice %102 {offsets = [0, 16], sizes = [8, 8], strides = [1, 1]} : vector<8x32xf32> to vector<8x8xf32>
    %cst_56 = arith.constant dense<0.000000e+00> : vector<8x8xf32>
    %139 = tpu.matmul %137, %138, %cst_56 {dimension_numbers = #tpu.dot_dimension_numbers<[1], [0], [0], [1], [0, 0, 1, 1], [], []>} : vector<8x8xf32>, vector<8x8xf32>, vector<8x8xf32> -> vector<8x8xf32>
    %140 = vector.extract_strided_slice %130 {offsets = [24, 0], sizes = [8, 8], strides = [1, 1]} : vector<32x8xf32> to vector<8x8xf32>
    %141 = vector.extract_strided_slice %102 {offsets = [0, 24], sizes = [8, 8], strides = [1, 1]} : vector<8x32xf32> to vector<8x8xf32>
    %cst_57 = arith.constant dense<0.000000e+00> : vector<8x8xf32>
    %142 = tpu.matmul %140, %141, %cst_57 {dimension_numbers = #tpu.dot_dimension_numbers<[1], [0], [0], [1], [0, 0, 1, 1], [], []>} : vector<8x8xf32>, vector<8x8xf32>, vector<8x8xf32> -> vector<8x8xf32>
    %143 = tpu.concatenate %133, %136, %139, %142 in 1 : vector<8x8xf32>, vector<8x8xf32>, vector<8x8xf32>, vector<8x8xf32> -> vector<8x32xf32>
    %c32_58 = arith.constant 32 : index
    %c0_59 = arith.constant 0 : index
    %144 = vector.load %arg7[%c32_58, %c0_59] : memref<64x32xf32, #tpu.memory_space<vmem>>, vector<32x32xf32>
    %cst_60 = arith.constant dense<0.000000e+00> : vector<8x32xf32>
    %145 = tpu.matmul %143, %144, %cst_60 {dimension_numbers = #tpu.dot_dimension_numbers<[1], [0], [0], [1], [0, 0, 1, 1], [], []>} : vector<8x32xf32>, vector<32x32xf32>, vector<8x32xf32> -> vector<8x32xf32>
    %146 = arith.addf %84, %145 : vector<8x32xf32>
    %c3 = arith.constant 3 : index
    %c0_61 = arith.constant 0 : index
    %147 = vector.load %arg10[%c3, %c0_61] : memref<5x32xf32, #tpu.memory_space<vmem>>, vector<1x32xf32>
    %148 = arith.mulf %146, %146 : vector<8x32xf32>
    %cst_62 = arith.constant dense<0.000000e+00> : vector<8xf32>
    %149 = vector.multi_reduction <add>, %148, %cst_62 [1] : vector<8x32xf32> to vector<8xf32>
    %150 = vector.shape_cast %149 : vector<8xf32> to vector<8x1xf32>
    %cst_63 = arith.constant 3.200000e+01 : f32
    %151 = vector.broadcast %cst_63 : f32 to vector<8x1xf32>
    %152 = arith.divf %150, %151 : vector<8x1xf32>
    %cst_64 = arith.constant 9.99999997E-7 : f32
    %153 = vector.broadcast %cst_64 : f32 to vector<8x1xf32>
    %154 = arith.addf %152, %153 : vector<8x1xf32>
    %155 = math.rsqrt %154 : vector<8x1xf32>
    %156 = vector.broadcast %155 : vector<8x1xf32> to vector<8x32xf32>
    %157 = arith.mulf %146, %156 : vector<8x32xf32>
    %158 = vector.broadcast %147 : vector<1x32xf32> to vector<8x32xf32>
    %159 = arith.mulf %157, %158 : vector<8x32xf32>
    %c32_65 = arith.constant 32 : index
    %c0_66 = arith.constant 0 : index
    %160 = vector.load %arg8[%c32_65, %c0_66] : memref<64x64xf32, #tpu.memory_space<vmem>>, vector<32x64xf32>
    %cst_67 = arith.constant dense<0.000000e+00> : vector<8x64xf32>
    %161 = tpu.matmul %159, %160, %cst_67 {dimension_numbers = #tpu.dot_dimension_numbers<[1], [0], [0], [1], [0, 0, 1, 1], [], []>} : vector<8x32xf32>, vector<32x64xf32>, vector<8x64xf32> -> vector<8x64xf32>
    %cst_68 = arith.constant 0.000000e+00 : f32
    %162 = vector.broadcast %cst_68 : f32 to vector<8x64xf32>
    %163 = arith.maximumf %161, %162 : vector<8x64xf32>
    %c64 = arith.constant 64 : index
    %c0_69 = arith.constant 0 : index
    %164 = vector.load %arg9[%c64, %c0_69] : memref<128x32xf32, #tpu.memory_space<vmem>>, vector<64x32xf32>
    %cst_70 = arith.constant dense<0.000000e+00> : vector<8x32xf32>
    %165 = tpu.matmul %163, %164, %cst_70 {dimension_numbers = #tpu.dot_dimension_numbers<[1], [0], [0], [1], [0, 0, 1, 1], [], []>} : vector<8x64xf32>, vector<64x32xf32>, vector<8x32xf32> -> vector<8x32xf32>
    %166 = arith.addf %146, %165 : vector<8x32xf32>
    %c4 = arith.constant 4 : index
    %c0_71 = arith.constant 0 : index
    %167 = vector.load %arg10[%c4, %c0_71] : memref<5x32xf32, #tpu.memory_space<vmem>>, vector<1x32xf32>
    %168 = arith.mulf %166, %166 : vector<8x32xf32>
    %cst_72 = arith.constant dense<0.000000e+00> : vector<8xf32>
    %169 = vector.multi_reduction <add>, %168, %cst_72 [1] : vector<8x32xf32> to vector<8xf32>
    %170 = vector.shape_cast %169 : vector<8xf32> to vector<8x1xf32>
    %cst_73 = arith.constant 3.200000e+01 : f32
    %171 = vector.broadcast %cst_73 : f32 to vector<8x1xf32>
    %172 = arith.divf %170, %171 : vector<8x1xf32>
    %cst_74 = arith.constant 9.99999997E-7 : f32
    %173 = vector.broadcast %cst_74 : f32 to vector<8x1xf32>
    %174 = arith.addf %172, %173 : vector<8x1xf32>
    %175 = math.rsqrt %174 : vector<8x1xf32>
    %176 = vector.broadcast %175 : vector<8x1xf32> to vector<8x32xf32>
    %177 = arith.mulf %166, %176 : vector<8x32xf32>
    %178 = vector.broadcast %167 : vector<1x32xf32> to vector<8x32xf32>
    %179 = arith.mulf %177, %178 : vector<8x32xf32>
    %c0_75 = arith.constant 0 : index
    %c0_76 = arith.constant 0 : index
    %180 = vector.load %arg2[%c0_75, %c0_76] : memref<8x32xf32, #tpu.memory_space<vmem>>, vector<8x32xf32>
    %c0_77 = arith.constant 0 : index
    %c0_78 = arith.constant 0 : index
    %181 = vector.load %arg18[%c0_77, %c0_78] : memref<7x32xf32, #tpu.memory_space<vmem>>, vector<1x32xf32>
    %182 = arith.mulf %180, %180 : vector<8x32xf32>
    %cst_79 = arith.constant dense<0.000000e+00> : vector<8xf32>
    %183 = vector.multi_reduction <add>, %182, %cst_79 [1] : vector<8x32xf32> to vector<8xf32>
    %184 = vector.shape_cast %183 : vector<8xf32> to vector<8x1xf32>
    %cst_80 = arith.constant 3.200000e+01 : f32
    %185 = vector.broadcast %cst_80 : f32 to vector<8x1xf32>
    %186 = arith.divf %184, %185 : vector<8x1xf32>
    %cst_81 = arith.constant 9.99999997E-7 : f32
    %187 = vector.broadcast %cst_81 : f32 to vector<8x1xf32>
    %188 = arith.addf %186, %187 : vector<8x1xf32>
    %189 = math.rsqrt %188 : vector<8x1xf32>
    %190 = vector.broadcast %189 : vector<8x1xf32> to vector<8x32xf32>
    %191 = arith.mulf %180, %190 : vector<8x32xf32>
    %192 = vector.broadcast %181 : vector<1x32xf32> to vector<8x32xf32>
    %193 = arith.mulf %191, %192 : vector<8x32xf32>
    %c0_82 = arith.constant 0 : index
    %c0_83 = arith.constant 0 : index
    %194 = vector.load %arg11[%c0_82, %c0_83] : memref<64x96xf32, #tpu.memory_space<vmem>>, vector<32x96xf32>
    %cst_84 = arith.constant dense<0.000000e+00> : vector<8x96xf32>
    %195 = tpu.matmul %193, %194, %cst_84 {dimension_numbers = #tpu.dot_dimension_numbers<[1], [0], [0], [1], [0, 0, 1, 1], [], []>} : vector<8x32xf32>, vector<32x96xf32>, vector<8x96xf32> -> vector<8x96xf32>
    %196 = vector.extract_strided_slice %195 {offsets = [0, 0], sizes = [8, 32], strides = [1, 1]} : vector<8x96xf32> to vector<8x32xf32>
    %197 = vector.extract_strided_slice %195 {offsets = [0, 32], sizes = [8, 32], strides = [1, 1]} : vector<8x96xf32> to vector<8x32xf32>
    %198 = vector.extract_strided_slice %195 {offsets = [0, 64], sizes = [8, 32], strides = [1, 1]} : vector<8x96xf32> to vector<8x32xf32>
    %199 = vector.extract_strided_slice %196 {offsets = [0, 0], sizes = [8, 8], strides = [1, 1]} : vector<8x32xf32> to vector<8x8xf32>
    %200 = vector.extract_strided_slice %197 {offsets = [0, 0], sizes = [8, 8], strides = [1, 1]} : vector<8x32xf32> to vector<8x8xf32>
    %cst_85 = arith.constant dense<0.000000e+00> : vector<8x8xf32>
    %201 = tpu.matmul %199, %200, %cst_85 {dimension_numbers = #tpu.dot_dimension_numbers<[1], [1], [0], [0], [0, 0, 1, 0], [], []>} : vector<8x8xf32>, vector<8x8xf32>, vector<8x8xf32> -> vector<8x8xf32>
    %202 = vector.extract_strided_slice %196 {offsets = [0, 8], sizes = [8, 8], strides = [1, 1]} : vector<8x32xf32> to vector<8x8xf32>
    %203 = vector.extract_strided_slice %197 {offsets = [0, 8], sizes = [8, 8], strides = [1, 1]} : vector<8x32xf32> to vector<8x8xf32>
    %cst_86 = arith.constant dense<0.000000e+00> : vector<8x8xf32>
    %204 = tpu.matmul %202, %203, %cst_86 {dimension_numbers = #tpu.dot_dimension_numbers<[1], [1], [0], [0], [0, 0, 1, 0], [], []>} : vector<8x8xf32>, vector<8x8xf32>, vector<8x8xf32> -> vector<8x8xf32>
    %205 = vector.extract_strided_slice %196 {offsets = [0, 16], sizes = [8, 8], strides = [1, 1]} : vector<8x32xf32> to vector<8x8xf32>
    %206 = vector.extract_strided_slice %197 {offsets = [0, 16], sizes = [8, 8], strides = [1, 1]} : vector<8x32xf32> to vector<8x8xf32>
    %cst_87 = arith.constant dense<0.000000e+00> : vector<8x8xf32>
    %207 = tpu.matmul %205, %206, %cst_87 {dimension_numbers = #tpu.dot_dimension_numbers<[1], [1], [0], [0], [0, 0, 1, 0], [], []>} : vector<8x8xf32>, vector<8x8xf32>, vector<8x8xf32> -> vector<8x8xf32>
    %208 = vector.extract_strided_slice %196 {offsets = [0, 24], sizes = [8, 8], strides = [1, 1]} : vector<8x32xf32> to vector<8x8xf32>
    %209 = vector.extract_strided_slice %197 {offsets = [0, 24], sizes = [8, 8], strides = [1, 1]} : vector<8x32xf32> to vector<8x8xf32>
    %cst_88 = arith.constant dense<0.000000e+00> : vector<8x8xf32>
    %210 = tpu.matmul %208, %209, %cst_88 {dimension_numbers = #tpu.dot_dimension_numbers<[1], [1], [0], [0], [0, 0, 1, 0], [], []>} : vector<8x8xf32>, vector<8x8xf32>, vector<8x8xf32> -> vector<8x8xf32>
    %211 = tpu.concatenate %201, %204, %207, %210 in 0 : vector<8x8xf32>, vector<8x8xf32>, vector<8x8xf32>, vector<8x8xf32> -> vector<32x8xf32>
    %212 = arith.addf %211, %1 : vector<32x8xf32>
    %cst_89 = arith.constant dense<0xFF800000> : vector<32xf32>
    %213 = vector.multi_reduction <maximumf>, %212, %cst_89 [1] : vector<32x8xf32> to vector<32xf32>
    %214 = vector.shape_cast %213 : vector<32xf32> to vector<32x1xf32>
    %215 = vector.broadcast %214 : vector<32x1xf32> to vector<32x8xf32>
    %216 = arith.subf %212, %215 : vector<32x8xf32>
    %217 = math.exp %216 : vector<32x8xf32>
    %cst_90 = arith.constant dense<0.000000e+00> : vector<32xf32>
    %218 = vector.multi_reduction <add>, %217, %cst_90 [1] : vector<32x8xf32> to vector<32xf32>
    %219 = vector.shape_cast %218 : vector<32xf32> to vector<32x1xf32>
    %220 = tpu.reciprocal %219 {approx = true} : vector<32x1xf32> -> vector<32x1xf32>
    %221 = vector.broadcast %220 : vector<32x1xf32> to vector<32x8xf32>
    %222 = arith.mulf %217, %221 : vector<32x8xf32>
    %223 = vector.extract_strided_slice %222 {offsets = [0, 0], sizes = [8, 8], strides = [1, 1]} : vector<32x8xf32> to vector<8x8xf32>
    %224 = vector.extract_strided_slice %198 {offsets = [0, 0], sizes = [8, 8], strides = [1, 1]} : vector<8x32xf32> to vector<8x8xf32>
    %cst_91 = arith.constant dense<0.000000e+00> : vector<8x8xf32>
    %225 = tpu.matmul %223, %224, %cst_91 {dimension_numbers = #tpu.dot_dimension_numbers<[1], [0], [0], [1], [0, 0, 1, 1], [], []>} : vector<8x8xf32>, vector<8x8xf32>, vector<8x8xf32> -> vector<8x8xf32>
    %226 = vector.extract_strided_slice %222 {offsets = [8, 0], sizes = [8, 8], strides = [1, 1]} : vector<32x8xf32> to vector<8x8xf32>
    %227 = vector.extract_strided_slice %198 {offsets = [0, 8], sizes = [8, 8], strides = [1, 1]} : vector<8x32xf32> to vector<8x8xf32>
    %cst_92 = arith.constant dense<0.000000e+00> : vector<8x8xf32>
    %228 = tpu.matmul %226, %227, %cst_92 {dimension_numbers = #tpu.dot_dimension_numbers<[1], [0], [0], [1], [0, 0, 1, 1], [], []>} : vector<8x8xf32>, vector<8x8xf32>, vector<8x8xf32> -> vector<8x8xf32>
    %229 = vector.extract_strided_slice %222 {offsets = [16, 0], sizes = [8, 8], strides = [1, 1]} : vector<32x8xf32> to vector<8x8xf32>
    %230 = vector.extract_strided_slice %198 {offsets = [0, 16], sizes = [8, 8], strides = [1, 1]} : vector<8x32xf32> to vector<8x8xf32>
    %cst_93 = arith.constant dense<0.000000e+00> : vector<8x8xf32>
    %231 = tpu.matmul %229, %230, %cst_93 {dimension_numbers = #tpu.dot_dimension_numbers<[1], [0], [0], [1], [0, 0, 1, 1], [], []>} : vector<8x8xf32>, vector<8x8xf32>, vector<8x8xf32> -> vector<8x8xf32>
    %232 = vector.extract_strided_slice %222 {offsets = [24, 0], sizes = [8, 8], strides = [1, 1]} : vector<32x8xf32> to vector<8x8xf32>
    %233 = vector.extract_strided_slice %198 {offsets = [0, 24], sizes = [8, 8], strides = [1, 1]} : vector<8x32xf32> to vector<8x8xf32>
    %cst_94 = arith.constant dense<0.000000e+00> : vector<8x8xf32>
    %234 = tpu.matmul %232, %233, %cst_94 {dimension_numbers = #tpu.dot_dimension_numbers<[1], [0], [0], [1], [0, 0, 1, 1], [], []>} : vector<8x8xf32>, vector<8x8xf32>, vector<8x8xf32> -> vector<8x8xf32>
    %235 = tpu.concatenate %225, %228, %231, %234 in 1 : vector<8x8xf32>, vector<8x8xf32>, vector<8x8xf32>, vector<8x8xf32> -> vector<8x32xf32>
    %c0_95 = arith.constant 0 : index
    %c0_96 = arith.constant 0 : index
    %236 = vector.load %arg12[%c0_95, %c0_96] : memref<64x32xf32, #tpu.memory_space<vmem>>, vector<32x32xf32>
    %cst_97 = arith.constant dense<0.000000e+00> : vector<8x32xf32>
    %237 = tpu.matmul %235, %236, %cst_97 {dimension_numbers = #tpu.dot_dimension_numbers<[1], [0], [0], [1], [0, 0, 1, 1], [], []>} : vector<8x32xf32>, vector<32x32xf32>, vector<8x32xf32> -> vector<8x32xf32>
    %238 = arith.addf %180, %237 : vector<8x32xf32>
    %c1_98 = arith.constant 1 : index
    %c0_99 = arith.constant 0 : index
    %239 = vector.load %arg18[%c1_98, %c0_99] : memref<7x32xf32, #tpu.memory_space<vmem>>, vector<1x32xf32>
    %240 = arith.mulf %238, %238 : vector<8x32xf32>
    %cst_100 = arith.constant dense<0.000000e+00> : vector<8xf32>
    %241 = vector.multi_reduction <add>, %240, %cst_100 [1] : vector<8x32xf32> to vector<8xf32>
    %242 = vector.shape_cast %241 : vector<8xf32> to vector<8x1xf32>
    %cst_101 = arith.constant 3.200000e+01 : f32
    %243 = vector.broadcast %cst_101 : f32 to vector<8x1xf32>
    %244 = arith.divf %242, %243 : vector<8x1xf32>
    %cst_102 = arith.constant 9.99999997E-7 : f32
    %245 = vector.broadcast %cst_102 : f32 to vector<8x1xf32>
    %246 = arith.addf %244, %245 : vector<8x1xf32>
    %247 = math.rsqrt %246 : vector<8x1xf32>
    %248 = vector.broadcast %247 : vector<8x1xf32> to vector<8x32xf32>
    %249 = arith.mulf %238, %248 : vector<8x32xf32>
    %250 = vector.broadcast %239 : vector<1x32xf32> to vector<8x32xf32>
    %251 = arith.mulf %249, %250 : vector<8x32xf32>
    %c0_103 = arith.constant 0 : index
    %c0_104 = arith.constant 0 : index
    %252 = vector.load %arg13[%c0_103, %c0_104] : memref<64x32xf32, #tpu.memory_space<vmem>>, vector<32x32xf32>
    %cst_105 = arith.constant dense<0.000000e+00> : vector<8x32xf32>
    %253 = tpu.matmul %251, %252, %cst_105 {dimension_numbers = #tpu.dot_dimension_numbers<[1], [0], [0], [1], [0, 0, 1, 1], [], []>} : vector<8x32xf32>, vector<32x32xf32>, vector<8x32xf32> -> vector<8x32xf32>
    %c0_106 = arith.constant 0 : index
    %c0_107 = arith.constant 0 : index
    %254 = vector.load %arg14[%c0_106, %c0_107] : memref<64x64xf32, #tpu.memory_space<vmem>>, vector<32x64xf32>
    %cst_108 = arith.constant dense<0.000000e+00> : vector<8x64xf32>
    %255 = tpu.matmul %179, %254, %cst_108 {dimension_numbers = #tpu.dot_dimension_numbers<[1], [0], [0], [1], [0, 0, 1, 1], [], []>} : vector<8x32xf32>, vector<32x64xf32>, vector<8x64xf32> -> vector<8x64xf32>
    %256 = vector.extract_strided_slice %255 {offsets = [0, 0], sizes = [8, 32], strides = [1, 1]} : vector<8x64xf32> to vector<8x32xf32>
    %257 = vector.extract_strided_slice %255 {offsets = [0, 32], sizes = [8, 32], strides = [1, 1]} : vector<8x64xf32> to vector<8x32xf32>
    %c0_109 = arith.constant 0 : index
    %c0_110 = arith.constant 0 : index
    %c0_111 = arith.constant 0 : index
    %258 = vector.load %arg3[%c0_109, %c0_110, %c0_111] : memref<1x1x8xf32, #tpu.memory_space<vmem>>, vector<1x1x8xf32>
    %259 = vector.shape_cast %258 : vector<1x1x8xf32> to vector<1x8xf32>
    %260 = vector.extract_strided_slice %253 {offsets = [0, 0], sizes = [8, 8], strides = [1, 1]} : vector<8x32xf32> to vector<8x8xf32>
    %261 = vector.extract_strided_slice %256 {offsets = [0, 0], sizes = [8, 8], strides = [1, 1]} : vector<8x32xf32> to vector<8x8xf32>
    %cst_112 = arith.constant dense<0.000000e+00> : vector<8x8xf32>
    %262 = tpu.matmul %260, %261, %cst_112 {dimension_numbers = #tpu.dot_dimension_numbers<[1], [1], [0], [0], [0, 0, 1, 0], [], []>} : vector<8x8xf32>, vector<8x8xf32>, vector<8x8xf32> -> vector<8x8xf32>
    %263 = vector.extract_strided_slice %253 {offsets = [0, 8], sizes = [8, 8], strides = [1, 1]} : vector<8x32xf32> to vector<8x8xf32>
    %264 = vector.extract_strided_slice %256 {offsets = [0, 8], sizes = [8, 8], strides = [1, 1]} : vector<8x32xf32> to vector<8x8xf32>
    %cst_113 = arith.constant dense<0.000000e+00> : vector<8x8xf32>
    %265 = tpu.matmul %263, %264, %cst_113 {dimension_numbers = #tpu.dot_dimension_numbers<[1], [1], [0], [0], [0, 0, 1, 0], [], []>} : vector<8x8xf32>, vector<8x8xf32>, vector<8x8xf32> -> vector<8x8xf32>
    %266 = vector.extract_strided_slice %253 {offsets = [0, 16], sizes = [8, 8], strides = [1, 1]} : vector<8x32xf32> to vector<8x8xf32>
    %267 = vector.extract_strided_slice %256 {offsets = [0, 16], sizes = [8, 8], strides = [1, 1]} : vector<8x32xf32> to vector<8x8xf32>
    %cst_114 = arith.constant dense<0.000000e+00> : vector<8x8xf32>
    %268 = tpu.matmul %266, %267, %cst_114 {dimension_numbers = #tpu.dot_dimension_numbers<[1], [1], [0], [0], [0, 0, 1, 0], [], []>} : vector<8x8xf32>, vector<8x8xf32>, vector<8x8xf32> -> vector<8x8xf32>
    %269 = vector.extract_strided_slice %253 {offsets = [0, 24], sizes = [8, 8], strides = [1, 1]} : vector<8x32xf32> to vector<8x8xf32>
    %270 = vector.extract_strided_slice %256 {offsets = [0, 24], sizes = [8, 8], strides = [1, 1]} : vector<8x32xf32> to vector<8x8xf32>
    %cst_115 = arith.constant dense<0.000000e+00> : vector<8x8xf32>
    %271 = tpu.matmul %269, %270, %cst_115 {dimension_numbers = #tpu.dot_dimension_numbers<[1], [1], [0], [0], [0, 0, 1, 0], [], []>} : vector<8x8xf32>, vector<8x8xf32>, vector<8x8xf32> -> vector<8x8xf32>
    %272 = tpu.concatenate %262, %265, %268, %271 in 0 : vector<8x8xf32>, vector<8x8xf32>, vector<8x8xf32>, vector<8x8xf32> -> vector<32x8xf32>
    %273 = vector.broadcast %259 : vector<1x8xf32> to vector<32x8xf32>
    %274 = arith.addf %272, %273 : vector<32x8xf32>
    %cst_116 = arith.constant dense<0xFF800000> : vector<32xf32>
    %275 = vector.multi_reduction <maximumf>, %274, %cst_116 [1] : vector<32x8xf32> to vector<32xf32>
    %276 = vector.shape_cast %275 : vector<32xf32> to vector<32x1xf32>
    %277 = vector.broadcast %276 : vector<32x1xf32> to vector<32x8xf32>
    %278 = arith.subf %274, %277 : vector<32x8xf32>
    %279 = math.exp %278 : vector<32x8xf32>
    %cst_117 = arith.constant dense<0.000000e+00> : vector<32xf32>
    %280 = vector.multi_reduction <add>, %279, %cst_117 [1] : vector<32x8xf32> to vector<32xf32>
    %281 = vector.shape_cast %280 : vector<32xf32> to vector<32x1xf32>
    %282 = tpu.reciprocal %281 {approx = true} : vector<32x1xf32> -> vector<32x1xf32>
    %283 = vector.broadcast %282 : vector<32x1xf32> to vector<32x8xf32>
    %284 = arith.mulf %279, %283 : vector<32x8xf32>
    %285 = vector.extract_strided_slice %284 {offsets = [0, 0], sizes = [8, 8], strides = [1, 1]} : vector<32x8xf32> to vector<8x8xf32>
    %286 = vector.extract_strided_slice %257 {offsets = [0, 0], sizes = [8, 8], strides = [1, 1]} : vector<8x32xf32> to vector<8x8xf32>
    %cst_118 = arith.constant dense<0.000000e+00> : vector<8x8xf32>
    %287 = tpu.matmul %285, %286, %cst_118 {dimension_numbers = #tpu.dot_dimension_numbers<[1], [0], [0], [1], [0, 0, 1, 1], [], []>} : vector<8x8xf32>, vector<8x8xf32>, vector<8x8xf32> -> vector<8x8xf32>
    %288 = vector.extract_strided_slice %284 {offsets = [8, 0], sizes = [8, 8], strides = [1, 1]} : vector<32x8xf32> to vector<8x8xf32>
    %289 = vector.extract_strided_slice %257 {offsets = [0, 8], sizes = [8, 8], strides = [1, 1]} : vector<8x32xf32> to vector<8x8xf32>
    %cst_119 = arith.constant dense<0.000000e+00> : vector<8x8xf32>
    %290 = tpu.matmul %288, %289, %cst_119 {dimension_numbers = #tpu.dot_dimension_numbers<[1], [0], [0], [1], [0, 0, 1, 1], [], []>} : vector<8x8xf32>, vector<8x8xf32>, vector<8x8xf32> -> vector<8x8xf32>
    %291 = vector.extract_strided_slice %284 {offsets = [16, 0], sizes = [8, 8], strides = [1, 1]} : vector<32x8xf32> to vector<8x8xf32>
    %292 = vector.extract_strided_slice %257 {offsets = [0, 16], sizes = [8, 8], strides = [1, 1]} : vector<8x32xf32> to vector<8x8xf32>
    %cst_120 = arith.constant dense<0.000000e+00> : vector<8x8xf32>
    %293 = tpu.matmul %291, %292, %cst_120 {dimension_numbers = #tpu.dot_dimension_numbers<[1], [0], [0], [1], [0, 0, 1, 1], [], []>} : vector<8x8xf32>, vector<8x8xf32>, vector<8x8xf32> -> vector<8x8xf32>
    %294 = vector.extract_strided_slice %284 {offsets = [24, 0], sizes = [8, 8], strides = [1, 1]} : vector<32x8xf32> to vector<8x8xf32>
    %295 = vector.extract_strided_slice %257 {offsets = [0, 24], sizes = [8, 8], strides = [1, 1]} : vector<8x32xf32> to vector<8x8xf32>
    %cst_121 = arith.constant dense<0.000000e+00> : vector<8x8xf32>
    %296 = tpu.matmul %294, %295, %cst_121 {dimension_numbers = #tpu.dot_dimension_numbers<[1], [0], [0], [1], [0, 0, 1, 1], [], []>} : vector<8x8xf32>, vector<8x8xf32>, vector<8x8xf32> -> vector<8x8xf32>
    %297 = tpu.concatenate %287, %290, %293, %296 in 1 : vector<8x8xf32>, vector<8x8xf32>, vector<8x8xf32>, vector<8x8xf32> -> vector<8x32xf32>
    %c0_122 = arith.constant 0 : index
    %c0_123 = arith.constant 0 : index
    %298 = vector.load %arg15[%c0_122, %c0_123] : memref<64x32xf32, #tpu.memory_space<vmem>>, vector<32x32xf32>
    %cst_124 = arith.constant dense<0.000000e+00> : vector<8x32xf32>
    %299 = tpu.matmul %297, %298, %cst_124 {dimension_numbers = #tpu.dot_dimension_numbers<[1], [0], [0], [1], [0, 0, 1, 1], [], []>} : vector<8x32xf32>, vector<32x32xf32>, vector<8x32xf32> -> vector<8x32xf32>
    %300 = arith.addf %238, %299 : vector<8x32xf32>
    %c2_125 = arith.constant 2 : index
    %c0_126 = arith.constant 0 : index
    %301 = vector.load %arg18[%c2_125, %c0_126] : memref<7x32xf32, #tpu.memory_space<vmem>>, vector<1x32xf32>
    %302 = arith.mulf %300, %300 : vector<8x32xf32>
    %cst_127 = arith.constant dense<0.000000e+00> : vector<8xf32>
    %303 = vector.multi_reduction <add>, %302, %cst_127 [1] : vector<8x32xf32> to vector<8xf32>
    %304 = vector.shape_cast %303 : vector<8xf32> to vector<8x1xf32>
    %cst_128 = arith.constant 3.200000e+01 : f32
    %305 = vector.broadcast %cst_128 : f32 to vector<8x1xf32>
    %306 = arith.divf %304, %305 : vector<8x1xf32>
    %cst_129 = arith.constant 9.99999997E-7 : f32
    %307 = vector.broadcast %cst_129 : f32 to vector<8x1xf32>
    %308 = arith.addf %306, %307 : vector<8x1xf32>
    %309 = math.rsqrt %308 : vector<8x1xf32>
    %310 = vector.broadcast %309 : vector<8x1xf32> to vector<8x32xf32>
    %311 = arith.mulf %300, %310 : vector<8x32xf32>
    %312 = vector.broadcast %301 : vector<1x32xf32> to vector<8x32xf32>
    %313 = arith.mulf %311, %312 : vector<8x32xf32>
    %c0_130 = arith.constant 0 : index
    %c0_131 = arith.constant 0 : index
    %314 = vector.load %arg16[%c0_130, %c0_131] : memref<64x64xf32, #tpu.memory_space<vmem>>, vector<32x64xf32>
    %cst_132 = arith.constant dense<0.000000e+00> : vector<8x64xf32>
    %315 = tpu.matmul %313, %314, %cst_132 {dimension_numbers = #tpu.dot_dimension_numbers<[1], [0], [0], [1], [0, 0, 1, 1], [], []>} : vector<8x32xf32>, vector<32x64xf32>, vector<8x64xf32> -> vector<8x64xf32>
    %cst_133 = arith.constant 0.000000e+00 : f32
    %316 = vector.broadcast %cst_133 : f32 to vector<8x64xf32>
    %317 = arith.maximumf %315, %316 : vector<8x64xf32>
    %c0_134 = arith.constant 0 : index
    %c0_135 = arith.constant 0 : index
    %318 = vector.load %arg17[%c0_134, %c0_135] : memref<128x32xf32, #tpu.memory_space<vmem>>, vector<64x32xf32>
    %cst_136 = arith.constant dense<0.000000e+00> : vector<8x32xf32>
    %319 = tpu.matmul %317, %318, %cst_136 {dimension_numbers = #tpu.dot_dimension_numbers<[1], [0], [0], [1], [0, 0, 1, 1], [], []>} : vector<8x64xf32>, vector<64x32xf32>, vector<8x32xf32> -> vector<8x32xf32>
    %320 = arith.addf %300, %319 : vector<8x32xf32>
    %c3_137 = arith.constant 3 : index
    %c0_138 = arith.constant 0 : index
    %321 = vector.load %arg18[%c3_137, %c0_138] : memref<7x32xf32, #tpu.memory_space<vmem>>, vector<1x32xf32>
    %322 = arith.mulf %320, %320 : vector<8x32xf32>
    %cst_139 = arith.constant dense<0.000000e+00> : vector<8xf32>
    %323 = vector.multi_reduction <add>, %322, %cst_139 [1] : vector<8x32xf32> to vector<8xf32>
    %324 = vector.shape_cast %323 : vector<8xf32> to vector<8x1xf32>
    %cst_140 = arith.constant 3.200000e+01 : f32
    %325 = vector.broadcast %cst_140 : f32 to vector<8x1xf32>
    %326 = arith.divf %324, %325 : vector<8x1xf32>
    %cst_141 = arith.constant 9.99999997E-7 : f32
    %327 = vector.broadcast %cst_141 : f32 to vector<8x1xf32>
    %328 = arith.addf %326, %327 : vector<8x1xf32>
    %329 = math.rsqrt %328 : vector<8x1xf32>
    %330 = vector.broadcast %329 : vector<8x1xf32> to vector<8x32xf32>
    %331 = arith.mulf %320, %330 : vector<8x32xf32>
    %332 = vector.broadcast %321 : vector<1x32xf32> to vector<8x32xf32>
    %333 = arith.mulf %331, %332 : vector<8x32xf32>
    %c32_142 = arith.constant 32 : index
    %c0_143 = arith.constant 0 : index
    %334 = vector.load %arg11[%c32_142, %c0_143] : memref<64x96xf32, #tpu.memory_space<vmem>>, vector<32x96xf32>
    %cst_144 = arith.constant dense<0.000000e+00> : vector<8x96xf32>
    %335 = tpu.matmul %333, %334, %cst_144 {dimension_numbers = #tpu.dot_dimension_numbers<[1], [0], [0], [1], [0, 0, 1, 1], [], []>} : vector<8x32xf32>, vector<32x96xf32>, vector<8x96xf32> -> vector<8x96xf32>
    %336 = vector.extract_strided_slice %335 {offsets = [0, 0], sizes = [8, 32], strides = [1, 1]} : vector<8x96xf32> to vector<8x32xf32>
    %337 = vector.extract_strided_slice %335 {offsets = [0, 32], sizes = [8, 32], strides = [1, 1]} : vector<8x96xf32> to vector<8x32xf32>
    %338 = vector.extract_strided_slice %335 {offsets = [0, 64], sizes = [8, 32], strides = [1, 1]} : vector<8x96xf32> to vector<8x32xf32>
    %339 = vector.extract_strided_slice %336 {offsets = [0, 0], sizes = [8, 8], strides = [1, 1]} : vector<8x32xf32> to vector<8x8xf32>
    %340 = vector.extract_strided_slice %337 {offsets = [0, 0], sizes = [8, 8], strides = [1, 1]} : vector<8x32xf32> to vector<8x8xf32>
    %cst_145 = arith.constant dense<0.000000e+00> : vector<8x8xf32>
    %341 = tpu.matmul %339, %340, %cst_145 {dimension_numbers = #tpu.dot_dimension_numbers<[1], [1], [0], [0], [0, 0, 1, 0], [], []>} : vector<8x8xf32>, vector<8x8xf32>, vector<8x8xf32> -> vector<8x8xf32>
    %342 = vector.extract_strided_slice %336 {offsets = [0, 8], sizes = [8, 8], strides = [1, 1]} : vector<8x32xf32> to vector<8x8xf32>
    %343 = vector.extract_strided_slice %337 {offsets = [0, 8], sizes = [8, 8], strides = [1, 1]} : vector<8x32xf32> to vector<8x8xf32>
    %cst_146 = arith.constant dense<0.000000e+00> : vector<8x8xf32>
    %344 = tpu.matmul %342, %343, %cst_146 {dimension_numbers = #tpu.dot_dimension_numbers<[1], [1], [0], [0], [0, 0, 1, 0], [], []>} : vector<8x8xf32>, vector<8x8xf32>, vector<8x8xf32> -> vector<8x8xf32>
    %345 = vector.extract_strided_slice %336 {offsets = [0, 16], sizes = [8, 8], strides = [1, 1]} : vector<8x32xf32> to vector<8x8xf32>
    %346 = vector.extract_strided_slice %337 {offsets = [0, 16], sizes = [8, 8], strides = [1, 1]} : vector<8x32xf32> to vector<8x8xf32>
    %cst_147 = arith.constant dense<0.000000e+00> : vector<8x8xf32>
    %347 = tpu.matmul %345, %346, %cst_147 {dimension_numbers = #tpu.dot_dimension_numbers<[1], [1], [0], [0], [0, 0, 1, 0], [], []>} : vector<8x8xf32>, vector<8x8xf32>, vector<8x8xf32> -> vector<8x8xf32>
    %348 = vector.extract_strided_slice %336 {offsets = [0, 24], sizes = [8, 8], strides = [1, 1]} : vector<8x32xf32> to vector<8x8xf32>
    %349 = vector.extract_strided_slice %337 {offsets = [0, 24], sizes = [8, 8], strides = [1, 1]} : vector<8x32xf32> to vector<8x8xf32>
    %cst_148 = arith.constant dense<0.000000e+00> : vector<8x8xf32>
    %350 = tpu.matmul %348, %349, %cst_148 {dimension_numbers = #tpu.dot_dimension_numbers<[1], [1], [0], [0], [0, 0, 1, 0], [], []>} : vector<8x8xf32>, vector<8x8xf32>, vector<8x8xf32> -> vector<8x8xf32>
    %351 = tpu.concatenate %341, %344, %347, %350 in 0 : vector<8x8xf32>, vector<8x8xf32>, vector<8x8xf32>, vector<8x8xf32> -> vector<32x8xf32>
    %352 = arith.addf %351, %1 : vector<32x8xf32>
    %cst_149 = arith.constant dense<0xFF800000> : vector<32xf32>
    %353 = vector.multi_reduction <maximumf>, %352, %cst_149 [1] : vector<32x8xf32> to vector<32xf32>
    %354 = vector.shape_cast %353 : vector<32xf32> to vector<32x1xf32>
    %355 = vector.broadcast %354 : vector<32x1xf32> to vector<32x8xf32>
    %356 = arith.subf %352, %355 : vector<32x8xf32>
    %357 = math.exp %356 : vector<32x8xf32>
    %cst_150 = arith.constant dense<0.000000e+00> : vector<32xf32>
    %358 = vector.multi_reduction <add>, %357, %cst_150 [1] : vector<32x8xf32> to vector<32xf32>
    %359 = vector.shape_cast %358 : vector<32xf32> to vector<32x1xf32>
    %360 = tpu.reciprocal %359 {approx = true} : vector<32x1xf32> -> vector<32x1xf32>
    %361 = vector.broadcast %360 : vector<32x1xf32> to vector<32x8xf32>
    %362 = arith.mulf %357, %361 : vector<32x8xf32>
    %363 = vector.extract_strided_slice %362 {offsets = [0, 0], sizes = [8, 8], strides = [1, 1]} : vector<32x8xf32> to vector<8x8xf32>
    %364 = vector.extract_strided_slice %338 {offsets = [0, 0], sizes = [8, 8], strides = [1, 1]} : vector<8x32xf32> to vector<8x8xf32>
    %cst_151 = arith.constant dense<0.000000e+00> : vector<8x8xf32>
    %365 = tpu.matmul %363, %364, %cst_151 {dimension_numbers = #tpu.dot_dimension_numbers<[1], [0], [0], [1], [0, 0, 1, 1], [], []>} : vector<8x8xf32>, vector<8x8xf32>, vector<8x8xf32> -> vector<8x8xf32>
    %366 = vector.extract_strided_slice %362 {offsets = [8, 0], sizes = [8, 8], strides = [1, 1]} : vector<32x8xf32> to vector<8x8xf32>
    %367 = vector.extract_strided_slice %338 {offsets = [0, 8], sizes = [8, 8], strides = [1, 1]} : vector<8x32xf32> to vector<8x8xf32>
    %cst_152 = arith.constant dense<0.000000e+00> : vector<8x8xf32>
    %368 = tpu.matmul %366, %367, %cst_152 {dimension_numbers = #tpu.dot_dimension_numbers<[1], [0], [0], [1], [0, 0, 1, 1], [], []>} : vector<8x8xf32>, vector<8x8xf32>, vector<8x8xf32> -> vector<8x8xf32>
    %369 = vector.extract_strided_slice %362 {offsets = [16, 0], sizes = [8, 8], strides = [1, 1]} : vector<32x8xf32> to vector<8x8xf32>
    %370 = vector.extract_strided_slice %338 {offsets = [0, 16], sizes = [8, 8], strides = [1, 1]} : vector<8x32xf32> to vector<8x8xf32>
    %cst_153 = arith.constant dense<0.000000e+00> : vector<8x8xf32>
    %371 = tpu.matmul %369, %370, %cst_153 {dimension_numbers = #tpu.dot_dimension_numbers<[1], [0], [0], [1], [0, 0, 1, 1], [], []>} : vector<8x8xf32>, vector<8x8xf32>, vector<8x8xf32> -> vector<8x8xf32>
    %372 = vector.extract_strided_slice %362 {offsets = [24, 0], sizes = [8, 8], strides = [1, 1]} : vector<32x8xf32> to vector<8x8xf32>
    %373 = vector.extract_strided_slice %338 {offsets = [0, 24], sizes = [8, 8], strides = [1, 1]} : vector<8x32xf32> to vector<8x8xf32>
    %cst_154 = arith.constant dense<0.000000e+00> : vector<8x8xf32>
    %374 = tpu.matmul %372, %373, %cst_154 {dimension_numbers = #tpu.dot_dimension_numbers<[1], [0], [0], [1], [0, 0, 1, 1], [], []>} : vector<8x8xf32>, vector<8x8xf32>, vector<8x8xf32> -> vector<8x8xf32>
    %375 = tpu.concatenate %365, %368, %371, %374 in 1 : vector<8x8xf32>, vector<8x8xf32>, vector<8x8xf32>, vector<8x8xf32> -> vector<8x32xf32>
    %c32_155 = arith.constant 32 : index
    %c0_156 = arith.constant 0 : index
    %376 = vector.load %arg12[%c32_155, %c0_156] : memref<64x32xf32, #tpu.memory_space<vmem>>, vector<32x32xf32>
    %cst_157 = arith.constant dense<0.000000e+00> : vector<8x32xf32>
    %377 = tpu.matmul %375, %376, %cst_157 {dimension_numbers = #tpu.dot_dimension_numbers<[1], [0], [0], [1], [0, 0, 1, 1], [], []>} : vector<8x32xf32>, vector<32x32xf32>, vector<8x32xf32> -> vector<8x32xf32>
    %378 = arith.addf %320, %377 : vector<8x32xf32>
    %c4_158 = arith.constant 4 : index
    %c0_159 = arith.constant 0 : index
    %379 = vector.load %arg18[%c4_158, %c0_159] : memref<7x32xf32, #tpu.memory_space<vmem>>, vector<1x32xf32>
    %380 = arith.mulf %378, %378 : vector<8x32xf32>
    %cst_160 = arith.constant dense<0.000000e+00> : vector<8xf32>
    %381 = vector.multi_reduction <add>, %380, %cst_160 [1] : vector<8x32xf32> to vector<8xf32>
    %382 = vector.shape_cast %381 : vector<8xf32> to vector<8x1xf32>
    %cst_161 = arith.constant 3.200000e+01 : f32
    %383 = vector.broadcast %cst_161 : f32 to vector<8x1xf32>
    %384 = arith.divf %382, %383 : vector<8x1xf32>
    %cst_162 = arith.constant 9.99999997E-7 : f32
    %385 = vector.broadcast %cst_162 : f32 to vector<8x1xf32>
    %386 = arith.addf %384, %385 : vector<8x1xf32>
    %387 = math.rsqrt %386 : vector<8x1xf32>
    %388 = vector.broadcast %387 : vector<8x1xf32> to vector<8x32xf32>
    %389 = arith.mulf %378, %388 : vector<8x32xf32>
    %390 = vector.broadcast %379 : vector<1x32xf32> to vector<8x32xf32>
    %391 = arith.mulf %389, %390 : vector<8x32xf32>
    %c32_163 = arith.constant 32 : index
    %c0_164 = arith.constant 0 : index
    %392 = vector.load %arg13[%c32_163, %c0_164] : memref<64x32xf32, #tpu.memory_space<vmem>>, vector<32x32xf32>
    %cst_165 = arith.constant dense<0.000000e+00> : vector<8x32xf32>
    %393 = tpu.matmul %391, %392, %cst_165 {dimension_numbers = #tpu.dot_dimension_numbers<[1], [0], [0], [1], [0, 0, 1, 1], [], []>} : vector<8x32xf32>, vector<32x32xf32>, vector<8x32xf32> -> vector<8x32xf32>
    %c32_166 = arith.constant 32 : index
    %c0_167 = arith.constant 0 : index
    %394 = vector.load %arg14[%c32_166, %c0_167] : memref<64x64xf32, #tpu.memory_space<vmem>>, vector<32x64xf32>
    %cst_168 = arith.constant dense<0.000000e+00> : vector<8x64xf32>
    %395 = tpu.matmul %179, %394, %cst_168 {dimension_numbers = #tpu.dot_dimension_numbers<[1], [0], [0], [1], [0, 0, 1, 1], [], []>} : vector<8x32xf32>, vector<32x64xf32>, vector<8x64xf32> -> vector<8x64xf32>
    %396 = vector.extract_strided_slice %395 {offsets = [0, 0], sizes = [8, 32], strides = [1, 1]} : vector<8x64xf32> to vector<8x32xf32>
    %397 = vector.extract_strided_slice %395 {offsets = [0, 32], sizes = [8, 32], strides = [1, 1]} : vector<8x64xf32> to vector<8x32xf32>
    %c0_169 = arith.constant 0 : index
    %c0_170 = arith.constant 0 : index
    %c0_171 = arith.constant 0 : index
    %398 = vector.load %arg3[%c0_169, %c0_170, %c0_171] : memref<1x1x8xf32, #tpu.memory_space<vmem>>, vector<1x1x8xf32>
    %399 = vector.shape_cast %398 : vector<1x1x8xf32> to vector<1x8xf32>
    %400 = vector.extract_strided_slice %393 {offsets = [0, 0], sizes = [8, 8], strides = [1, 1]} : vector<8x32xf32> to vector<8x8xf32>
    %401 = vector.extract_strided_slice %396 {offsets = [0, 0], sizes = [8, 8], strides = [1, 1]} : vector<8x32xf32> to vector<8x8xf32>
    %cst_172 = arith.constant dense<0.000000e+00> : vector<8x8xf32>
    %402 = tpu.matmul %400, %401, %cst_172 {dimension_numbers = #tpu.dot_dimension_numbers<[1], [1], [0], [0], [0, 0, 1, 0], [], []>} : vector<8x8xf32>, vector<8x8xf32>, vector<8x8xf32> -> vector<8x8xf32>
    %403 = vector.extract_strided_slice %393 {offsets = [0, 8], sizes = [8, 8], strides = [1, 1]} : vector<8x32xf32> to vector<8x8xf32>
    %404 = vector.extract_strided_slice %396 {offsets = [0, 8], sizes = [8, 8], strides = [1, 1]} : vector<8x32xf32> to vector<8x8xf32>
    %cst_173 = arith.constant dense<0.000000e+00> : vector<8x8xf32>
    %405 = tpu.matmul %403, %404, %cst_173 {dimension_numbers = #tpu.dot_dimension_numbers<[1], [1], [0], [0], [0, 0, 1, 0], [], []>} : vector<8x8xf32>, vector<8x8xf32>, vector<8x8xf32> -> vector<8x8xf32>
    %406 = vector.extract_strided_slice %393 {offsets = [0, 16], sizes = [8, 8], strides = [1, 1]} : vector<8x32xf32> to vector<8x8xf32>
    %407 = vector.extract_strided_slice %396 {offsets = [0, 16], sizes = [8, 8], strides = [1, 1]} : vector<8x32xf32> to vector<8x8xf32>
    %cst_174 = arith.constant dense<0.000000e+00> : vector<8x8xf32>
    %408 = tpu.matmul %406, %407, %cst_174 {dimension_numbers = #tpu.dot_dimension_numbers<[1], [1], [0], [0], [0, 0, 1, 0], [], []>} : vector<8x8xf32>, vector<8x8xf32>, vector<8x8xf32> -> vector<8x8xf32>
    %409 = vector.extract_strided_slice %393 {offsets = [0, 24], sizes = [8, 8], strides = [1, 1]} : vector<8x32xf32> to vector<8x8xf32>
    %410 = vector.extract_strided_slice %396 {offsets = [0, 24], sizes = [8, 8], strides = [1, 1]} : vector<8x32xf32> to vector<8x8xf32>
    %cst_175 = arith.constant dense<0.000000e+00> : vector<8x8xf32>
    %411 = tpu.matmul %409, %410, %cst_175 {dimension_numbers = #tpu.dot_dimension_numbers<[1], [1], [0], [0], [0, 0, 1, 0], [], []>} : vector<8x8xf32>, vector<8x8xf32>, vector<8x8xf32> -> vector<8x8xf32>
    %412 = tpu.concatenate %402, %405, %408, %411 in 0 : vector<8x8xf32>, vector<8x8xf32>, vector<8x8xf32>, vector<8x8xf32> -> vector<32x8xf32>
    %413 = vector.broadcast %399 : vector<1x8xf32> to vector<32x8xf32>
    %414 = arith.addf %412, %413 : vector<32x8xf32>
    %cst_176 = arith.constant dense<0xFF800000> : vector<32xf32>
    %415 = vector.multi_reduction <maximumf>, %414, %cst_176 [1] : vector<32x8xf32> to vector<32xf32>
    %416 = vector.shape_cast %415 : vector<32xf32> to vector<32x1xf32>
    %417 = vector.broadcast %416 : vector<32x1xf32> to vector<32x8xf32>
    %418 = arith.subf %414, %417 : vector<32x8xf32>
    %419 = math.exp %418 : vector<32x8xf32>
    %cst_177 = arith.constant dense<0.000000e+00> : vector<32xf32>
    %420 = vector.multi_reduction <add>, %419, %cst_177 [1] : vector<32x8xf32> to vector<32xf32>
    %421 = vector.shape_cast %420 : vector<32xf32> to vector<32x1xf32>
    %422 = tpu.reciprocal %421 {approx = true} : vector<32x1xf32> -> vector<32x1xf32>
    %423 = vector.broadcast %422 : vector<32x1xf32> to vector<32x8xf32>
    %424 = arith.mulf %419, %423 : vector<32x8xf32>
    %425 = vector.extract_strided_slice %424 {offsets = [0, 0], sizes = [8, 8], strides = [1, 1]} : vector<32x8xf32> to vector<8x8xf32>
    %426 = vector.extract_strided_slice %397 {offsets = [0, 0], sizes = [8, 8], strides = [1, 1]} : vector<8x32xf32> to vector<8x8xf32>
    %cst_178 = arith.constant dense<0.000000e+00> : vector<8x8xf32>
    %427 = tpu.matmul %425, %426, %cst_178 {dimension_numbers = #tpu.dot_dimension_numbers<[1], [0], [0], [1], [0, 0, 1, 1], [], []>} : vector<8x8xf32>, vector<8x8xf32>, vector<8x8xf32> -> vector<8x8xf32>
    %428 = vector.extract_strided_slice %424 {offsets = [8, 0], sizes = [8, 8], strides = [1, 1]} : vector<32x8xf32> to vector<8x8xf32>
    %429 = vector.extract_strided_slice %397 {offsets = [0, 8], sizes = [8, 8], strides = [1, 1]} : vector<8x32xf32> to vector<8x8xf32>
    %cst_179 = arith.constant dense<0.000000e+00> : vector<8x8xf32>
    %430 = tpu.matmul %428, %429, %cst_179 {dimension_numbers = #tpu.dot_dimension_numbers<[1], [0], [0], [1], [0, 0, 1, 1], [], []>} : vector<8x8xf32>, vector<8x8xf32>, vector<8x8xf32> -> vector<8x8xf32>
    %431 = vector.extract_strided_slice %424 {offsets = [16, 0], sizes = [8, 8], strides = [1, 1]} : vector<32x8xf32> to vector<8x8xf32>
    %432 = vector.extract_strided_slice %397 {offsets = [0, 16], sizes = [8, 8], strides = [1, 1]} : vector<8x32xf32> to vector<8x8xf32>
    %cst_180 = arith.constant dense<0.000000e+00> : vector<8x8xf32>
    %433 = tpu.matmul %431, %432, %cst_180 {dimension_numbers = #tpu.dot_dimension_numbers<[1], [0], [0], [1], [0, 0, 1, 1], [], []>} : vector<8x8xf32>, vector<8x8xf32>, vector<8x8xf32> -> vector<8x8xf32>
    %434 = vector.extract_strided_slice %424 {offsets = [24, 0], sizes = [8, 8], strides = [1, 1]} : vector<32x8xf32> to vector<8x8xf32>
    %435 = vector.extract_strided_slice %397 {offsets = [0, 24], sizes = [8, 8], strides = [1, 1]} : vector<8x32xf32> to vector<8x8xf32>
    %cst_181 = arith.constant dense<0.000000e+00> : vector<8x8xf32>
    %436 = tpu.matmul %434, %435, %cst_181 {dimension_numbers = #tpu.dot_dimension_numbers<[1], [0], [0], [1], [0, 0, 1, 1], [], []>} : vector<8x8xf32>, vector<8x8xf32>, vector<8x8xf32> -> vector<8x8xf32>
    %437 = tpu.concatenate %427, %430, %433, %436 in 1 : vector<8x8xf32>, vector<8x8xf32>, vector<8x8xf32>, vector<8x8xf32> -> vector<8x32xf32>
    %c32_182 = arith.constant 32 : index
    %c0_183 = arith.constant 0 : index
    %438 = vector.load %arg15[%c32_182, %c0_183] : memref<64x32xf32, #tpu.memory_space<vmem>>, vector<32x32xf32>
    %cst_184 = arith.constant dense<0.000000e+00> : vector<8x32xf32>
    %439 = tpu.matmul %437, %438, %cst_184 {dimension_numbers = #tpu.dot_dimension_numbers<[1], [0], [0], [1], [0, 0, 1, 1], [], []>} : vector<8x32xf32>, vector<32x32xf32>, vector<8x32xf32> -> vector<8x32xf32>
    %440 = arith.addf %378, %439 : vector<8x32xf32>
    %c5 = arith.constant 5 : index
    %c0_185 = arith.constant 0 : index
    %441 = vector.load %arg18[%c5, %c0_185] : memref<7x32xf32, #tpu.memory_space<vmem>>, vector<1x32xf32>
    %442 = arith.mulf %440, %440 : vector<8x32xf32>
    %cst_186 = arith.constant dense<0.000000e+00> : vector<8xf32>
    %443 = vector.multi_reduction <add>, %442, %cst_186 [1] : vector<8x32xf32> to vector<8xf32>
    %444 = vector.shape_cast %443 : vector<8xf32> to vector<8x1xf32>
    %cst_187 = arith.constant 3.200000e+01 : f32
    %445 = vector.broadcast %cst_187 : f32 to vector<8x1xf32>
    %446 = arith.divf %444, %445 : vector<8x1xf32>
    %cst_188 = arith.constant 9.99999997E-7 : f32
    %447 = vector.broadcast %cst_188 : f32 to vector<8x1xf32>
    %448 = arith.addf %446, %447 : vector<8x1xf32>
    %449 = math.rsqrt %448 : vector<8x1xf32>
    %450 = vector.broadcast %449 : vector<8x1xf32> to vector<8x32xf32>
    %451 = arith.mulf %440, %450 : vector<8x32xf32>
    %452 = vector.broadcast %441 : vector<1x32xf32> to vector<8x32xf32>
    %453 = arith.mulf %451, %452 : vector<8x32xf32>
    %c32_189 = arith.constant 32 : index
    %c0_190 = arith.constant 0 : index
    %454 = vector.load %arg16[%c32_189, %c0_190] : memref<64x64xf32, #tpu.memory_space<vmem>>, vector<32x64xf32>
    %cst_191 = arith.constant dense<0.000000e+00> : vector<8x64xf32>
    %455 = tpu.matmul %453, %454, %cst_191 {dimension_numbers = #tpu.dot_dimension_numbers<[1], [0], [0], [1], [0, 0, 1, 1], [], []>} : vector<8x32xf32>, vector<32x64xf32>, vector<8x64xf32> -> vector<8x64xf32>
    %cst_192 = arith.constant 0.000000e+00 : f32
    %456 = vector.broadcast %cst_192 : f32 to vector<8x64xf32>
    %457 = arith.maximumf %455, %456 : vector<8x64xf32>
    %c64_193 = arith.constant 64 : index
    %c0_194 = arith.constant 0 : index
    %458 = vector.load %arg17[%c64_193, %c0_194] : memref<128x32xf32, #tpu.memory_space<vmem>>, vector<64x32xf32>
    %cst_195 = arith.constant dense<0.000000e+00> : vector<8x32xf32>
    %459 = tpu.matmul %457, %458, %cst_195 {dimension_numbers = #tpu.dot_dimension_numbers<[1], [0], [0], [1], [0, 0, 1, 1], [], []>} : vector<8x64xf32>, vector<64x32xf32>, vector<8x32xf32> -> vector<8x32xf32>
    %460 = arith.addf %440, %459 : vector<8x32xf32>
    %c6 = arith.constant 6 : index
    %c0_196 = arith.constant 0 : index
    %461 = vector.load %arg18[%c6, %c0_196] : memref<7x32xf32, #tpu.memory_space<vmem>>, vector<1x32xf32>
    %462 = arith.mulf %460, %460 : vector<8x32xf32>
    %cst_197 = arith.constant dense<0.000000e+00> : vector<8xf32>
    %463 = vector.multi_reduction <add>, %462, %cst_197 [1] : vector<8x32xf32> to vector<8xf32>
    %464 = vector.shape_cast %463 : vector<8xf32> to vector<8x1xf32>
    %cst_198 = arith.constant 3.200000e+01 : f32
    %465 = vector.broadcast %cst_198 : f32 to vector<8x1xf32>
    %466 = arith.divf %464, %465 : vector<8x1xf32>
    %cst_199 = arith.constant 9.99999997E-7 : f32
    %467 = vector.broadcast %cst_199 : f32 to vector<8x1xf32>
    %468 = arith.addf %466, %467 : vector<8x1xf32>
    %469 = math.rsqrt %468 : vector<8x1xf32>
    %470 = vector.broadcast %469 : vector<8x1xf32> to vector<8x32xf32>
    %471 = arith.mulf %460, %470 : vector<8x32xf32>
    %472 = vector.broadcast %461 : vector<1x32xf32> to vector<8x32xf32>
    %473 = arith.mulf %471, %472 : vector<8x32xf32>
    %c0_200 = arith.constant 0 : index
    %c0_201 = arith.constant 0 : index
    %474 = vector.load %arg19[%c0_200, %c0_201] : memref<32x128xf32, #tpu.memory_space<vmem>>, vector<32x128xf32>
    %cst_202 = arith.constant dense<0.000000e+00> : vector<8x128xf32>
    %475 = tpu.matmul %473, %474, %cst_202 {dimension_numbers = #tpu.dot_dimension_numbers<[1], [0], [0], [1], [0, 0, 1, 1], [], []>} : vector<8x32xf32>, vector<32x128xf32>, vector<8x128xf32> -> vector<8x128xf32>
    %c0_203 = arith.constant 0 : index
    %c0_204 = arith.constant 0 : index
    %476 = vector.load %arg20[%c0_203, %c0_204] : memref<8x128xf32, #tpu.memory_space<vmem>>, vector<8x128xf32>
    tpu.vector_store %arg20[%c0_203, %c0_204], %475 {strides = array<i32>} : memref<8x128xf32, #tpu.memory_space<vmem>>, vector<8x128xf32>,
    return
  }
  func.func @transform_0(%arg0: i32) -> (i32, i32) {
    %c0_i32 = arith.constant 0 : i32
    %c0_i32_0 = arith.constant 0 : i32
    return %arg0, %c0_i32 : i32, i32
  }
  func.func @transform_1(%arg0: i32) -> (i32, i32) {
    %c0_i32 = arith.constant 0 : i32
    %c0_i32_0 = arith.constant 0 : i32
    return %arg0, %c0_i32 : i32, i32
  }
  func.func @transform_2(%arg0: i32) -> (i32, i32, i32) {
    %c0_i32 = arith.constant 0 : i32
    %c0_i32_0 = arith.constant 0 : i32
    %c0_i32_1 = arith.constant 0 : i32
    return %arg0, %c0_i32, %c0_i32_0 : i32, i32, i32
  }
  func.func @transform_3(%arg0: i32) -> (i32, i32) {
    %c0_i32 = arith.constant 0 : i32
    %c0_i32_0 = arith.constant 0 : i32
    %c0_i32_1 = arith.constant 0 : i32
    return %c0_i32, %c0_i32_0 : i32, i32
  }
  func.func @transform_4(%arg0: i32) -> (i32, i32) {
    %c0_i32 = arith.constant 0 : i32
    %c0_i32_0 = arith.constant 0 : i32
    %c0_i32_1 = arith.constant 0 : i32
    return %c0_i32, %c0_i32_0 : i32, i32
  }
  func.func @transform_5(%arg0: i32) -> (i32, i32) {
    %c0_i32 = arith.constant 0 : i32
    %c0_i32_0 = arith.constant 0 : i32
    %c0_i32_1 = arith.constant 0 : i32
    return %c0_i32, %c0_i32_0 : i32, i32
  }
  func.func @transform_6(%arg0: i32) -> (i32, i32) {
    %c0_i32 = arith.constant 0 : i32
    %c0_i32_0 = arith.constant 0 : i32
    %c0_i32_1 = arith.constant 0 : i32
    return %c0_i32, %c0_i32_0 : i32, i32
  }
  func.func @transform_7(%arg0: i32) -> (i32, i32) {
    %c0_i32 = arith.constant 0 : i32
    %c0_i32_0 = arith.constant 0 : i32
    %c0_i32_1 = arith.constant 0 : i32
    return %c0_i32, %c0_i32_0 : i32, i32
  }
  func.func @transform_8(%arg0: i32) -> (i32, i32) {
    %c0_i32 = arith.constant 0 : i32
    %c0_i32_0 = arith.constant 0 : i32
    %c0_i32_1 = arith.constant 0 : i32
    return %c0_i32, %c0_i32_0 : i32, i32
  }
  func.func @transform_9(%arg0: i32) -> (i32, i32) {
    %c0_i32 = arith.constant 0 : i32
    %c0_i32_0 = arith.constant 0 : i32
    %c0_i32_1 = arith.constant 0 : i32
    return %c0_i32, %c0_i32_0 : i32, i32
  }
  func.func @transform_10(%arg0: i32) -> (i32, i32) {
    %c0_i32 = arith.constant 0 : i32
    %c0_i32_0 = arith.constant 0 : i32
    %c0_i32_1 = arith.constant 0 : i32
    return %c0_i32, %c0_i32_0 : i32, i32
  }
  func.func @transform_11(%arg0: i32) -> (i32, i32) {
    %c0_i32 = arith.constant 0 : i32
    %c0_i32_0 = arith.constant 0 : i32
    %c0_i32_1 = arith.constant 0 : i32
    return %c0_i32, %c0_i32_0 : i32, i32
  }
  func.func @transform_12(%arg0: i32) -> (i32, i32) {
    %c0_i32 = arith.constant 0 : i32
    %c0_i32_0 = arith.constant 0 : i32
    %c0_i32_1 = arith.constant 0 : i32
    return %c0_i32, %c0_i32_0 : i32, i32
  }
  func.func @transform_13(%arg0: i32) -> (i32, i32) {
    %c0_i32 = arith.constant 0 : i32
    %c0_i32_0 = arith.constant 0 : i32
    %c0_i32_1 = arith.constant 0 : i32
    return %c0_i32, %c0_i32_0 : i32, i32
  }
  func.func @transform_14(%arg0: i32) -> (i32, i32) {
    %c0_i32 = arith.constant 0 : i32
    %c0_i32_0 = arith.constant 0 : i32
    %c0_i32_1 = arith.constant 0 : i32
    return %c0_i32, %c0_i32_0 : i32, i32
  }
  func.func @transform_15(%arg0: i32) -> (i32, i32) {
    %c0_i32 = arith.constant 0 : i32
    %c0_i32_0 = arith.constant 0 : i32
    %c0_i32_1 = arith.constant 0 : i32
    return %c0_i32, %c0_i32_0 : i32, i32
  }
  func.func @transform_16(%arg0: i32) -> (i32, i32) {
    %c0_i32 = arith.constant 0 : i32
    %c0_i32_0 = arith.constant 0 : i32
    %c0_i32_1 = arith.constant 0 : i32
    return %c0_i32, %c0_i32_0 : i32, i32
  }
  func.func @transform_17(%arg0: i32) -> (i32, i32) {
    %c0_i32 = arith.constant 0 : i32
    %c0_i32_0 = arith.constant 0 : i32
    %c0_i32_1 = arith.constant 0 : i32
    return %c0_i32, %c0_i32_0 : i32, i32
  }
  func.func @transform_18(%arg0: i32) -> (i32, i32) {
    %c0_i32 = arith.constant 0 : i32
    %c0_i32_0 = arith.constant 0 : i32
    %c0_i32_1 = arith.constant 0 : i32
    return %c0_i32, %c0_i32_0 : i32, i32
  }
  func.func @transform_19(%arg0: i32) -> (i32, i32) {
    %c0_i32 = arith.constant 0 : i32
    %c0_i32_0 = arith.constant 0 : i32
    return %arg0, %c0_i32 : i32, i32
  }
}

</mosaic_0001>

<bundles_post_ra>
// kernel: t5_forward.1
= control target key start
LH: loop header
LB: loop body
LE: loop exit
PB: predicated region body
PF: predicated region fallthrough
CT: control target
= control target key end

     0   :  { %s9343_s0 = inlined_call_operand.vmem [shape: f32[16,32], index: 0, kind: input, shape index: {}]   ;;  %s9344_s1 = inlined_call_operand.vmem [shape: f32[16,32], index: 1, kind: input, shape index: {}]   ;;  %s9345_s2 = inlined_call_operand.vmem [shape: f32[2,1,8], index: 2, kind: input, shape index: {}]   ;;  %s9346_s3 = inlined_call_operand.vmem [shape: f32[32,8], index: 3, kind: input, shape index: {}]   ;;  %s9347_s4 = inlined_call_operand.vmem [shape: f32[32,8], index: 4, kind: input, shape index: {}]   ;;  %s9348_s5 = inlined_call_operand.vmem [shape: f32[64,96], index: 5, kind: input, shape index: {}]   ;;  %s9349_s6 = inlined_call_operand.vmem [shape: f32[64,32], index: 6, kind: input, shape index: {}]   ;;  %s9350_s7 = inlined_call_operand.vmem [shape: f32[64,64], index: 7, kind: input, shape index: {}]   ;;  %s9351_s8 = inlined_call_operand.vmem [shape: f32[128,32], index: 8, kind: input, shape index: {}]   ;;  %s9352_s9 = inlined_call_operand.vmem [shape: f32[5,32], index: 9, kind: input, shape index: {}]   ;;  %s9353_s10 = inlined_call_operand.vmem [shape: f32[64,96], index: 10, kind: input, shape index: {}]   ;;  %s9354_s11 = inlined_call_operand.vmem [shape: f32[64,32], index: 11, kind: input, shape index: {}]   ;;  %s9355_s12 = inlined_call_operand.vmem [shape: f32[64,32], index: 12, kind: input, shape index: {}]   ;;  %s9356_s13 = inlined_call_operand.vmem [shape: f32[64,64], index: 13, kind: input, shape index: {}]   ;;  %s9357_s14 = inlined_call_operand.vmem [shape: f32[64,32], index: 14, kind: input, shape index: {}]   ;;  %s9358_s15 = inlined_call_operand.vmem [shape: f32[64,64], index: 15, kind: input, shape index: {}]   ;;  %s9359_s16 = inlined_call_operand.vmem [shape: f32[128,32], index: 16, kind: input, shape index: {}]   ;;  %s9360_s17 = inlined_call_operand.vmem [shape: f32[7,32], index: 17, kind: input, shape index: {}]   ;;  %s9361_s18 = inlined_call_operand.vmem [shape: f32[32,128], index: 18, kind: input, shape index: {}]   ;;  %s9362_s19 = inlined_call_operand.hbm [shape: f32[16,128], index: 19, kind: output, shape index: {}]  }
   0x1   :  { %9413 = sst [smem:[#allocation15_spill]] %s9343_s0 }
   0x2   :  { %9414 = sst [smem:[#allocation16_spill]] %s9344_s1 }
   0x3   :  { %9415 = sst [smem:[#allocation17_spill]] %s9345_s2 }
   0x4   :  { %9416 = sst [smem:[#allocation18_spill]] %s9346_s3 }
   0x5   :  { %9417 = sst [smem:[#allocation19_spill]] %s9347_s4 }
   0x6   :  { %9418 = sst [smem:[#allocation20_spill]] %s9348_s5 }
   0x7   :  { %9419 = sst [smem:[#allocation21_spill]] %s9349_s6 }
   0x8   :  { %9420 = sst [smem:[#allocation22_spill]] %s9350_s7 }
   0x9   :  { %9421 = sst [smem:[#allocation23_spill]] %s9351_s8 }
   0xa   :  { %9422 = sst [smem:[#allocation24_spill]] %s9352_s9 }
   0xb   :  { %9423 = sst [smem:[#allocation25_spill]] %s9355_s12 }
   0xc   :  { %9424 = sst [smem:[#allocation26_spill]] %s9356_s13 }
   0xd   :  { %9425 = sst [smem:[#allocation27_spill]] %s9357_s14 }
   0xe   :  { %9426 = sst [smem:[#allocation28_spill]] %s9358_s15 }
   0xf   :  { %9427 = sst [smem:[#allocation29_spill]] %s9359_s16 }
  0x10   :  { %9428 = sst [smem:[#allocation30_spill]] %s9361_s18 }
  0x11   :  { %9429 = sst [smem:[#allocation31_spill]] %s9362_s19 }
  0x12   :  { %24 = vsyncpa [#allocation3], 0 }
  0x13   :  { %26 = vsyncpa [#allocation3 + $0x1], 0  ;;  %s8175_s0 = smov 0   ;;  %s8177_s30 = smov 0  }
  0x14   :  { %s8179_s20 = smov 0   ;;  %s8181_s21 = smov 0  }
  0x15 LB: > { %9430 = sst [smem:[#allocation5_spill]] %s8043_s0  ;;  %s8196_s1 = sadd.s32 4294967295, %s8055_s21   ;;  %s8055_s21 = sphi %s8181_s21, %s9482_s21   ;;  %s8051_s20 = sphi %s8179_s20, %s9485_s20   ;;  %s8047_s30 = sphi %s8177_s30, %s9484_s30   ;;  %s8043_s0 = sphi %s8175_s0, %s9483_s0  }
  0x16   : > { %9431 = sst [smem:[#allocation6_spill]] %s8047_s30  ;;  %s6783_s22 = sadd.s32 4294967294, %s8055_s21  }
  0x17   : > { %9432 = sst [smem:[#allocation7_spill]] %s8051_s20  ;;  %s8200_s2 = sadd.s32 1, %s8055_s21  }
  0x18   : > { %9433 = sst [smem:[#allocation8_spill]] %s8055_s21  ;;  %s453_s23 = sadd.s32 1, %s8051_s20 }
  0x19   : > { %9434 = sst [smem:[#allocation9_spill]] %s8196_s1  ;;  %s450_s24 = ssub.s32 %s8055_s21, %s8200_s2 }
  0x1a   : > { %9435 = sst [smem:[#allocation10_spill]] %s8200_s2  ;;  %p463_p0 = scmp.ne.s32.totalorder %s8051_s20, %s8047_s30 }
  0x1b   : > { %p451_p1 = scmp.eq.s32.totalorder %s450_s24, 0  ;;  %p464_p2 = scmp.eq.s32.totalorder %s8196_s1, 1 }
  0x1c   : > { %p469_p3 = scmp.ne.s32.totalorder %s8047_s30, %s8043_s0  ;;  %p470_p4 = scmp.eq.s32.totalorder %s6783_s22, 1 }
  0x1d   : > { %s8211_s25 = scalar_select %p451_p1, %s8051_s20, %s453_s23  }
  0x1e   : > { %p8213_p5 = por %p464_p2, %p463_p0  ;;  %p8217_p6 = por %p470_p4, %p469_p3 }
  0x1f   : > { %9436 = sst [smem:[#allocation11_spill]] %s8211_s25  ;;  %p6786_p7 = scmp.ge.s32.totalorder %s8055_s21, 1 }
  0x20   : > { %s9437_s3 = scalar_select %p8213_p5, 1, 0 }
  0x21   : > { %s9439_s26 = scalar_select %p8217_p6, 1, 0 }
  0x22   : > { %9438 = sst [smem:[#allocation12_spill]] %s9437_s3  ;;  %p556_p8 = scmp.lt.s32.totalorder %s8055_s21, 3 }
  0x23   : > { %9440 = sst [smem:[#allocation13_spill]] %s9439_s26 }
  0x24   : > { %p557_p9 = pnand %p6786_p7, %p556_p8 }
  0x26   : > { %560 = sbr.rel (%p557_p9) target bundleno = 11661 (0x2d8d), region = 96 }
  0x2d   : > { %p618_p10 = scmp.lt.s32.totalorder %s8196_s1, 1  ;;  %s9441_s23 = sld [smem:[#allocation15_spill]]  ;;  %vm640_vm0 = vcmask 261120   ;;  %v8057_v6 = vmov 0.0|0.0   ;;  %vm8058_vm1 = vmmov 0   ;;  %v8059_v9 = vmov 0.0  }
  0x2e   : > { %s9442_s5 = sld [smem:[#allocation20_spill]]  ;;  %7654 = vmatprep.subr.bf16.mxu0 %v8057_v6  ;;  %7137 = vmatprep.mubr.msk.f32.mxu0 %vm8058_vm1, %v8059_v9  ;;  %s9443_s9 = sld [smem:[#allocation24_spill]]  ;;  %vm745_vm2 = vcmask 64512   ;;  %vm1419_vm3 = vcmask 130048   ;;  %vm1421_vm4 = vcmask 195584   ;;  %vm1601_vm5 = vcmask 523264  }
  0x2f   : > { %s8225_s27 = scalar_select %p618_p10, %s8196_s1, 1  ;;  %7140 = vmatprep.subr.mxu1 %v8059_v9  ;;  %7142 = vmatprep.mubr.msk.f32.mxu1 %vm8058_vm1, %v8059_v9 }
  0x30   : > { %s9390_s2 = smov 88   ;;  %s9380_s25 = smov 96  }
  0x31   : > { %s9369_s28 = sshll.u32 %s8225_s27, 3  ;;  %s9376_s26 = smov 120  }
  0x32   : > { %s9374_s29 = smov 112   ;;  %s9372_s22 = smov 72  }
  0x33   : > { %s621_s24 = scalar_lea.vmem %s9441_s23, %s9369_s28  ;;  %s9370_s23 = smov 104  }
  0x34   : > { %v8233_v0 = vld [vmem:[%s621_s24] sm:$0xff]  ;;  %v655_v4 = vld [vmem:[%s9442_s5 + $0x8] sm:$0xff]  ;;  %v656_v5 = vld [vmem:[%s9442_s5 + $0x10] sm:$0xff]  ;;  %s9378_s24 = smov 80   ;;  %s9444_s28 = sld [smem:[#allocation17_spill]] }
  0x35   : > { %v639_v1 = vmul.f32 %v8233_v0, %v8233_v0  ;;  %v654_v3 = vld [vmem:[%s9442_s5] sm:$0xff]  ;;  %v657_v8 = vld [vmem:[%s9442_s5 + $0x18] sm:$0xff]  ;;  %s9382_s20 = smov 40   ;;  %s9447_s6 = sld [smem:[#allocation21_spill]] }
  0x36   : > { %v7655_v7 = vpack.c.bf16 %v655_v4, %v654_v3  ;;  %v7658_v10 = vpack.c.bf16 %v657_v8, %v656_v5  ;;  %v6790_v15 = vld [vmem:[%s9443_s9] ss:$0 sm:$0xff]  ;;  %s9396_s0 = smov 8   ;;  %s9448_s7 = sld [smem:[#allocation22_spill]] }
  0x37   : > { %v641_v2 = vsel %vm640_vm0, %v639_v1, 0.0  ;;  %s9449_s8 = sld [smem:[#allocation23_spill]]  ;;  %s9454_s21 = smov 112  }
  0x38   : > { %642 = vadd.xlane.f32.xlu0 %v641_v2  ;;  %7656 = vmatpush3.bf16.msra.mxu0 %v7655_v7  ;;  %s9461_s19 = smov 8   ;;  %s9462_s16 = smov 16  }
  0x39   : > { %7657 = vmatprep.subr.bf16.mxu0 %v8057_v6  ;;  %s9463_s14 = smov 24   ;;  %s9464_s15 = sshll.u32 %s8225_s27, 3 }
  0x3a   : > { %s9465_s1 = sld [smem:[#allocation16_spill]]  ;;  %s9466_s4 = sld [smem:[#allocation19_spill]] }
  0x3b   : > { %s9470_s12 = sld [smem:[#allocation27_spill]]  ;;  %s9476_s13 = sld [smem:[#allocation9_spill]] }
  0x3c   : > { %7659 = vmatpush3.bf16.msra.mxu0 %v7658_v10 }
  0x3d   : > { %7160 = vmatprep.subr.mxu0 %v8059_v9 }
  0x40   : > { %s625_s3 = scalar_lea.vmem %s9465_s1, %s9464_s15  ;;  %s9467_s1 = sld [smem:[#allocation26_spill]] }
  0x41   : > { %s9471_s15 = sld [smem:[#allocation28_spill]]  ;;  %s6899_s30 = sshll.u32 %s9476_s13, 7 }
  0xc5   : > { %v643_v11 = vpop.xlane.xlu0 %642 }
  0xc6   : > { %v645_v12 = vmul.f32 0.03125, %v643_v11 }
  0xc8   : > { %v646_v13 = vadd.f32 1e-06, %v645_v12 }
  0xca   : > { %7872 = vrsqrt.f32 %v646_v13 }
  0xd4   : > { %v7873_v14 = vpop.eup %7872 }
  0xd5   : > { %v648_v16 = vmul.f32 %v7873_v14, %v8233_v0 }
  0xd7   : > { %v653_v17 = vmul.f32 %v6790_v15, %v648_v16 }
  0xd9   : > { %7138 = vmatmul.mubr.msk.f32.vlgmr.msra.gmra.mrb[0].mxu0 %vm640_vm0, %v653_v17 }
  0xda   : > { %7162 = vmatprep.mubr.msk.f32.mxu0 %vm8058_vm1, %v8059_v9 }
 0x1ac   : > { %v8265_v18 = vpop.f32.mrb[0].mxu0 }
 0x1ad   : > { %822 = vrot.lane.b32.xlu1 %v8265_v18, %s9390_s2  ;;  %743 = vrot.lane.b32.xlu0 %v8265_v18, %s9380_s25  ;;  %v7139_v19 = vpop.f32.mrb[1].mxu0  ;;  %s9392_s2 = smov 24   ;;  %s9457_s25 = smov 56  }
 0x1b1   : > { %820 = vrot.lane.b32.xlu1 %v8265_v18, %s9376_s26  ;;  %s9446_s26 = sld [smem:[#allocation18_spill]] }
 0x1b5   : > { %900 = vrot.lane.b32.xlu1 %v8265_v18, %s9378_s24  ;;  %s9451_s24 = smov 96  }
 0x1b7   : > { %v629_v28 = vld [vmem:[%s9446_s26] sm:$0xff]  ;;  %v630_v30 = vld [vmem:[%s9446_s26 + $0x8] sm:$0xff]  ;;  %v631_v36 = vld [vmem:[%s9446_s26 + $0x10] sm:$0xff] }
 0x1b8   : > { %v632_v45 = vld [vmem:[%s9446_s26 + $0x18] sm:$0xff]  ;;  %s9455_s26 = smov 72  }
 0x1b9   : > { %898 = vrot.lane.b32.xlu1 %v8265_v18, %s9374_s29  ;;  %s9386_s29 = smov 64  }
 0x1bd   : > { %978 = vrot.lane.b32.xlu1 %v8265_v18, %s9372_s22  ;;  %s9388_s22 = smov 56  }
 0x1c1   : > { %976 = vrot.lane.b32.xlu1 %v8265_v18, %s9370_s23  ;;  %s8306_s23 = scalar_lea.vmem %s9444_s28, %s8225_s27  ;;  %s9384_s28 = smov 48  }
 0x1c2   : > { %9445 = sst [smem:[#allocation14_spill]] %s8306_s23  ;;  %v6792_v27 = vld [vmem:[%s8306_s23] ss:$0 sm:$0xff] }
 0x1c3   : > { %v8312_v29 = vadd.f32 %v6792_v27, %v629_v28  ;;  %v8318_v34 = vadd.f32 %v6792_v27, %v630_v30  ;;  %v8325_v40 = vadd.f32 %v6792_v27, %v631_v36  ;;  %v8333_v47 = vadd.f32 %v6792_v27, %v632_v45  ;;  %v1423_v27 = vld [vmem:[%s9447_s6] sm:$0xff]  ;;  %v1424_v28 = vld [vmem:[%s9447_s6 + $0x8] sm:$0xff]  ;;  %v1425_v30 = vld [vmem:[%s9447_s6 + $0x10] sm:$0xff]  ;;  %s9468_s23 = sld [smem:[#allocation25_spill]] }
 0x21f   : > { %v823_v20 = vpop.permute.xlu1 %822  ;;  %v744_v21 = vpop.permute.xlu0 %743 }
 0x220   : > { %7141 = vmatpush3.xpose.msk.msra.mxu1 %vm745_vm2, %v744_v21 }
 0x221   : > { %7145 = vmatprep.subr.mxu1 %v8059_v9 }
 0x223   : > { %v821_v22 = vpop.permute.xlu1 %820  ;;  %7143 = vmatmul.mubr.msk.f32.vlgmr.msra.gmra.mrb[0].mxu1 %vm745_vm2, %v8265_v18 }
 0x224   : > { %7146 = vmatpush3.xpose.msk.msra.mxu1 %vm745_vm2, %v823_v20  ;;  %7147 = vmatprep.mubr.msk.f32.mxu1 %vm8058_vm1, %v8059_v9 }
 0x225   : > { %7150 = vmatprep.subr.mxu1 %v8059_v9 }
 0x227   : > { %v901_v23 = vpop.permute.xlu1 %900  ;;  %7148 = vmatmul.mubr.msk.f32.vlgmr.msra.gmra.mrb[2].mxu1 %vm745_vm2, %v821_v22 }
 0x228   : > { %7151 = vmatpush3.xpose.msk.msra.mxu1 %vm745_vm2, %v901_v23  ;;  %7152 = vmatprep.mubr.msk.f32.mxu1 %vm8058_vm1, %v8059_v9 }
 0x229   : > { %7155 = vmatprep.subr.mxu1 %v8059_v9 }
 0x22b   : > { %v899_v24 = vpop.permute.xlu1 %898 }
 0x22c   : > { %7153 = vmatmul.mubr.msk.f32.vlgmr.msra.gmra.mrb[4].mxu1 %vm745_vm2, %v899_v24 }
 0x22d   : > { %7157 = vmatprep.mubr.msk.f32.mxu1 %vm8058_vm1, %v8059_v9 }
 0x22f   : > { %v979_v25 = vpop.permute.xlu1 %978 }
 0x230   : > { %7156 = vmatpush3.xpose.msk.msra.mxu1 %vm745_vm2, %v979_v25 }
 0x231   : > { %7165 = vmatprep.subr.mxu1 %v8059_v9 }
 0x233   : > { %v977_v26 = vpop.permute.xlu1 %976 }
 0x234   : > { %7158 = vmatmul.mubr.msk.f32.vlgmr.msra.gmra.mrb[6].mxu1 %vm745_vm2, %v977_v26 }
 0x235   : > { %7167 = vmatprep.mubr.msk.f32.mxu1 %vm8058_vm1, %v8059_v9 }
 0x2f6   : > { %v816_v31 = vpop.f32.mrb[0].mxu1 }
 0x2f7   : > { %v1054_v32 = vadd.f32 %v816_v31, %v8312_v29  ;;  %v7144_v33 = vpop.f32.mrb[1].mxu1  ;;  %v7661_v31 = vpack.c.bf16 %v1424_v28, %v1423_v27  ;;  %v1690_v27 = vld [vmem:[%s9442_s5 + $0x20] sm:$0xff]  ;;  %v1691_v28 = vld [vmem:[%s9442_s5 + $0x28] sm:$0xff] }
 0x2f9   : > { %v1058_v35 = vsel %vm745_vm2, %v1054_v32, -inf }
 0x2fa   : > { %1059 = vmax.xlane.f32.xlu1 %v1058_v35  ;;  %v894_v37 = vpop.f32.mrb[2].mxu1 }
 0x2fb   : > { %v1055_v38 = vadd.f32 %v894_v37, %v8318_v34  ;;  %v7149_v39 = vpop.f32.mrb[3].mxu1 }
 0x2fd   : > { %v1061_v41 = vsel %vm745_vm2, %v1055_v38, -inf }
 0x2fe   : > { %1062 = vmax.xlane.f32.xlu0 %v1061_v41 }
 0x2ff   : > { %v972_v42 = vpop.f32.mrb[4].mxu1 }
 0x300   : > { %v1056_v43 = vadd.f32 %v972_v42, %v8325_v40  ;;  %v7154_v44 = vpop.f32.mrb[5].mxu1 }
 0x302   : > { %v1064_v46 = vsel %vm745_vm2, %v1056_v43, -inf }
 0x303   : > { %1065 = vmax.xlane.f32.xlu0 %v1064_v46 }
 0x307   : > { %v1050_v48 = vpop.f32.mrb[6].mxu1 }
 0x308   : > { %v1057_v49 = vadd.f32 %v1050_v48, %v8333_v47  ;;  %v7159_v50 = vpop.f32.mrb[7].mxu1 }
 0x30a   : > { %v1067_v51 = vsel %vm745_vm2, %v1057_v49, -inf }
 0x30b   : > { %1068 = vmax.xlane.f32.xlu1 %v1067_v51 }
 0x319   : > { %1102 = vrot.lane.b32.xlu0 %v8265_v18, %s9386_s29  ;;  %s9394_s29 = smov 16  }
 0x31c   : > { %1178 = vrot.lane.b32.xlu1 %v8265_v18, %s9388_s22  ;;  %s9452_s22 = smov 80  }
 0x387   : > { %v1060_v52 = vpop.xlane.xlu1 %1059 }
 0x388   : > { %v1070_v53 = vsub.f32 %v1054_v32, %v1060_v52  ;;  %v1426_v32 = vld [vmem:[%s9447_s6 + $0x18] sm:$0xff] }
 0x389   : > { %v7664_v35 = vpack.c.bf16 %v1426_v32, %v1425_v30  ;;  %v7685_v30 = vpack.c.bf16 %v1691_v28, %v1690_v27  ;;  %v1693_v32 = vld [vmem:[%s9442_s5 + $0x38] sm:$0xff] }
 0x38a   : > { %v1074_v54 = vmul.f32 1.442695, %v1070_v53 }
 0x38b   : > { %v1063_v55 = vpop.xlane.xlu0 %1062 }
 0x38c   : > { %7874 = vpow2.f32 %v1074_v54  ;;  %v1071_v56 = vsub.f32 %v1055_v38, %v1063_v55 }
 0x38e   : > { %v1076_v57 = vmul.f32 1.442695, %v1071_v56  ;;  %v1515_v56 = vld [vmem:[%s9448_s7] sm:$0xff] }
 0x390   : > { %7876 = vpow2.f32 %v1076_v57  ;;  %v1066_v58 = vpop.xlane.xlu0 %1065  ;;  %v1516_v57 = vld [vmem:[%s9448_s7 + $0x8] sm:$0xff] }
 0x391   : > { %v1072_v59 = vsub.f32 %v1056_v43, %v1066_v58  ;;  %v7667_v58 = vpack.c.bf16 %v1516_v57, %v1515_v56 }
 0x393   : > { %v1078_v60 = vmul.f32 1.442695, %v1072_v59  ;;  %v1518_v59 = vld [vmem:[%s9448_s7 + $0x18] sm:$0xff] }
 0x394   : > { %v1103_v61 = vpop.permute.xlu0 %1102 }
 0x395   : > { %7878 = vpow2.f32 %v1078_v60  ;;  %7161 = vmatpush3.msra.mxu0 %v1103_v61  ;;  %v1593_v61 = vld [vmem:[%s9449_s8] sm:$0xff] }
 0x396   : > { %v7875_v62 = vpop.eup %7874  ;;  %7170 = vmatprep.subr.mxu0 %v8059_v9 }
 0x397   : > { %v1082_v63 = vsel %vm745_vm2, %v7875_v62, 0.0 }
 0x398   : > { %1083 = vadd.xlane.f32.xlu0 %v1082_v63  ;;  %v1069_v1 = vpop.xlane.xlu1 %1068  ;;  %v1595_v63 = vld [vmem:[%s9449_s8 + $0x10] sm:$0xff] }
 0x399   : > { %v1073_v2 = vsub.f32 %v1057_v49, %v1069_v1 }
 0x39a   : > { %v7877_v3 = vpop.eup %7876 }
 0x39b   : > { %v1080_v4 = vmul.f32 1.442695, %v1073_v2  ;;  %v1085_v5 = vsel %vm745_vm2, %v7877_v3, 0.0  ;;  %v1596_v2 = vld [vmem:[%s9449_s8 + $0x18] sm:$0xff] }
 0x39c   : > { %1086 = vadd.xlane.f32.xlu1 %v1085_v5  ;;  %v1179_v7 = vpop.permute.xlu1 %1178  ;;  %v1598_v5 = vld [vmem:[%s9449_s8 + $0x28] sm:$0xff] }
 0x39d   : > { %7880 = vpow2.f32 %v1080_v4  ;;  %7166 = vmatpush3.msra.mxu1 %v1179_v7  ;;  %v1597_v4 = vld [vmem:[%s9449_s8 + $0x20] sm:$0xff] }
 0x39e   : > { %7175 = vmatprep.subr.mxu1 %v8059_v9  ;;  %v7679_v7 = vpack.c.bf16 %v1598_v5, %v1597_v4 }
 0x39f   : > { %v7879_v8 = vpop.eup %7878 }
 0x3a0   : > { %v1088_v10 = vsel %vm745_vm2, %v7879_v8, 0.0 }
 0x3a1   : > { %1089 = vadd.xlane.f32.xlu0 %v1088_v10 }
 0x3a7   : > { %v7881_v11 = vpop.eup %7880 }
 0x3a8   : > { %v1091_v12 = vsel %vm745_vm2, %v7881_v11, 0.0 }
 0x3a9   : > { %1092 = vadd.xlane.f32.xlu1 %v1091_v12 }
 0x3b7   : > { %1330 = vrot.lane.b32.xlu0 %v8265_v18, %s9382_s20  ;;  %s9453_s20 = smov 120  }
 0x3ba   : > { %1254 = vrot.lane.b32.xlu1 %v8265_v18, %s9384_s28  ;;  %s9456_s28 = smov 104  }
 0x425   : > { %v1084_v13 = vpop.xlane.xlu0 %1083 }
 0x426   : > { %7882 = vrcp.f32 %v1084_v13  ;;  %v6806_v13 = vld [vmem:[%s9443_s9 + $0x1] ss:$0 sm:$0xff] }
 0x429   : > { %v1087_v14 = vpop.xlane.xlu1 %1086 }
 0x42a   : > { %7884 = vrcp.f32 %v1087_v14 }
 0x42e   : > { %v1090_v15 = vpop.xlane.xlu0 %1089 }
 0x42f   : > { %7886 = vrcp.f32 %v1090_v15 }
 0x430   : > { %v7883_v16 = vpop.eup %7882 }
 0x431   : > { %v1098_v17 = vmul.f32 %v7883_v16, %v7875_v62  ;;  %v1594_v62 = vld [vmem:[%s9449_s8 + $0x8] sm:$0xff]  ;;  %v1599_v16 = vld [vmem:[%s9449_s8 + $0x30] sm:$0xff] }
 0x432   : > { %v1331_v22 = vpop.permute.xlu0 %1330  ;;  %v7673_v1 = vpack.c.bf16 %v1594_v62, %v1593_v61 }
 0x433   : > { %7163 = vmatmul.mubr.msk.f32.vlgmr.msra.gmra.mrb[2].mxu0 %vm745_vm2, %v1098_v17  ;;  %v1600_v17 = vld [vmem:[%s9449_s8 + $0x38] sm:$0xff] }
 0x434   : > { %v7885_v19 = vpop.eup %7884  ;;  %7172 = vmatprep.mubr.msk.f32.mxu0 %vm8058_vm1, %v8059_v9 }
 0x435   : > { %v1099_v20 = vmul.f32 %v7885_v19, %v7877_v3  ;;  %v7676_v3 = vpack.c.bf16 %v1596_v2, %v1595_v63  ;;  %v7682_v19 = vpack.c.bf16 %v1600_v17, %v1599_v16 }
 0x436   : > { %v1093_v21 = vpop.xlane.xlu1 %1092 }
 0x437   : > { %7888 = vrcp.f32 %v1093_v21  ;;  %7168 = vmatmul.mubr.msk.f32.vlgmr.msra.gmra.mrb[8].mxu1 %vm745_vm2, %v1099_v20 }
 0x438   : > { %7176 = vmatpush3.msra.mxu1 %v1331_v22  ;;  %7177 = vmatprep.mubr.msk.f32.mxu1 %vm8058_vm1, %v8059_v9 }
 0x439   : > { %v7887_v18 = vpop.eup %7886  ;;  %7666 = vmatprep.subr.bf16.mxu1 %v8057_v6 }
 0x43a   : > { %v1255_v23 = vpop.permute.xlu1 %1254  ;;  %v1100_v24 = vmul.f32 %v7887_v18, %v7879_v8 }
 0x43b   : > { %7171 = vmatpush3.msra.mxu0 %v1255_v23 }
 0x43c   : > { %7173 = vmatmul.mubr.msk.f32.vlgmr.msra.gmra.mrb[4].mxu0 %vm745_vm2, %v1100_v24  ;;  %7660 = vmatprep.subr.bf16.mxu0 %v8057_v6 }
 0x43d   : > { %7188 = vmatprep.mubr.msk.f32.mxu0 %vm8058_vm1, %v8059_v9  ;;  %7662 = vmatpush3.bf16.msra.mxu0 %v7661_v31  ;;  %v1692_v31 = vld [vmem:[%s9442_s5 + $0x30] sm:$0xff]  ;;  %s9460_s5 = smov 40  }
 0x43e   : > { %7663 = vmatprep.subr.bf16.mxu0 %v8057_v6 }
 0x441   : > { %v7889_v25 = vpop.eup %7888  ;;  %7665 = vmatpush3.bf16.msra.mxu0 %v7664_v35 }
 0x442   : > { %v1101_v26 = vmul.f32 %v7889_v25, %v7881_v11  ;;  %7672 = vmatprep.subr.bf16.mxu0 %v8057_v6 }
 0x444   : > { %7178 = vmatmul.mubr.msk.f32.vlgmr.msra.gmra.mrb[10].mxu1 %vm745_vm2, %v1101_v26 }
 0x445   : > { %7199 = vmatprep.mubr.msk.f32.mxu1 %vm8058_vm1, %v8059_v9  ;;  %7668 = vmatpush3.bf16.msra.mxu1 %v7667_v58 }
 0x446   : > { %7669 = vmatprep.subr.bf16.mxu1 %v8057_v6 }
 0x506   : > { %v1174_v33 = vpop.f32.mrb[2].mxu0 }
 0x507   : > { %v7164_v36 = vpop.f32.mrb[3].mxu0 }
 0x50a   : > { %v1250_v37 = vpop.f32.mrb[8].mxu1 }
 0x50b   : > { %1407 = vrot.lane.b32.xlu1 %v1250_v37, %s9396_s0  ;;  %v7169_v38 = vpop.f32.mrb[9].mxu1  ;;  %s9459_s0 = smov 48  }
 0x50f   : > { %v1326_v39 = vpop.f32.mrb[4].mxu0 }
 0x510   : > { %1411 = vrot.lane.b32.xlu0 %v1326_v39, %s9394_s29  ;;  %v7174_v41 = vpop.f32.mrb[5].mxu0  ;;  %v6809_v39 = vld [vmem:[%s9443_s9 + $0x2] ss:$0 sm:$0xff]  ;;  %s9450_s29 = smov 88  }
 0x517   : > { %v1402_v42 = vpop.f32.mrb[10].mxu1 }
 0x518   : > { %1415 = vrot.lane.b32.xlu1 %v1402_v42, %s9392_s2  ;;  %v7179_v43 = vpop.f32.mrb[11].mxu1  ;;  %s9458_s2 = smov 64  }
 0x57d   : > { %v1408_v44 = vpop.permute.xlu1 %1407 }
 0x57e   : > { %v1418_v46 = vsel %vm745_vm2, %v1174_v33, %v1408_v44  ;;  %v7688_v33 = vpack.c.bf16 %v1693_v32, %v1692_v31 }
 0x582   : > { %v1412_v45 = vpop.permute.xlu0 %1411 }
 0x583   : > { %v1420_v48 = vsel %vm1419_vm3, %v1418_v46, %v1412_v45 }
 0x58a   : > { %v1416_v49 = vpop.permute.xlu1 %1415 }
 0x58b   : > { %v1422_v50 = vsel %vm1421_vm4, %v1420_v48, %v1416_v49 }
 0x58c   : > { %7189 = vmatmul.mubr.msk.f32.vlgmr.msra.gmra.mrb[6].mxu0 %vm640_vm0, %v1422_v50 }
 0x58d   : > { %7218 = vmatprep.mubr.msk.f32.mxu0 %vm8058_vm1, %v8059_v9  ;;  %7674 = vmatpush3.bf16.msra.mxu0 %v7673_v1 }
 0x58e   : > { %7675 = vmatprep.subr.bf16.mxu0 %v8057_v6 }
 0x591   : > { %7677 = vmatpush3.bf16.msra.mxu0 %v7676_v3 }
 0x592   : > { %7678 = vmatprep.subr.bf16.mxu0 %v8057_v6 }
 0x595   : > { %7680 = vmatpush3.bf16.msra.mxu0 %v7679_v7 }
 0x596   : > { %7681 = vmatprep.subr.bf16.mxu0 %v8057_v6 }
 0x599   : > { %7683 = vmatpush3.bf16.msra.mxu0 %v7682_v19 }
 0x59a   : > { %7242 = vmatprep.subr.mxu0 %v8059_v9 }
 0x65f   : > { %v1496_v51 = vpop.f32.mrb[6].mxu0 }
 0x660   : > { %v1500_v52 = vadd.f32 %v1496_v51, %v8233_v0  ;;  %v7190_v53 = vpop.f32.mrb[7].mxu0  ;;  %v1517_v0 = vld [vmem:[%s9448_s7 + $0x10] sm:$0xff] }
 0x661   : > { %v7670_v60 = vpack.c.bf16 %v1518_v59, %v1517_v0 }
 0x662   : > { %v1502_v54 = vmul.f32 %v1500_v52, %v1500_v52 }
 0x663   : > { %7671 = vmatpush3.bf16.msra.mxu1 %v7670_v60 }
 0x664   : > { %v1503_v55 = vsel %vm640_vm0, %v1502_v54, 0.0  ;;  %7684 = vmatprep.subr.bf16.mxu1 %v8057_v6 }
 0x665   : > { %1504 = vadd.xlane.f32.xlu0 %v1503_v55 }
 0x6f2   : > { %v1505_v8 = vpop.xlane.xlu0 %1504 }
 0x6f3   : > { %v1506_v10 = vmul.f32 0.03125, %v1505_v8 }
 0x6f5   : > { %v1507_v11 = vadd.f32 1e-06, %v1506_v10 }
 0x6f7   : > { %7890 = vrsqrt.f32 %v1507_v11 }
 0x701   : > { %v7891_v12 = vpop.eup %7890 }
 0x702   : > { %v1509_v14 = vmul.f32 %v7891_v12, %v1500_v52 }
 0x704   : > { %v1514_v15 = vmul.f32 %v6806_v13, %v1509_v14 }
 0x706   : > { %7200 = vmatmul.mubr.msk.f32.vlgmr.msra.gmra.mrb[12].mxu1 %vm640_vm0, %v1514_v15 }
 0x707   : > { %7229 = vmatprep.mubr.msk.f32.mxu1 %vm8058_vm1, %v8059_v9  ;;  %7686 = vmatpush3.bf16.msra.mxu1 %v7685_v30 }
 0x708   : > { %7687 = vmatprep.subr.bf16.mxu1 %v8057_v6 }
 0x70b   : > { %7689 = vmatpush3.bf16.msra.mxu1 %v7688_v33 }
 0x70c   : > { %7232 = vmatprep.subr.mxu1 %v8059_v9 }
 0x7d9   : > { %v1588_v20 = vpop.f32.mrb[12].mxu1 }
 0x7da   : > { %v1592_v21 = vmax.f32 %v1588_v20, 0.0  ;;  %v7201_v22 = vpop.f32.mrb[13].mxu1 }
 0x7dc   : > { %7219 = vmatmul.mubr.msk.f32.vlgmr.msra.gmra.mrb[8].mxu0 %vm1601_vm5, %v1592_v21 }
 0x7dd   : > { %7244 = vmatprep.mubr.msk.f32.mxu0 %vm8058_vm1, %v8059_v9 }
 0x8af   : > { %v1671_v18 = vpop.f32.mrb[8].mxu0 }
 0x8b0   : > { %v8441_v23 = vadd.f32 %v1671_v18, %v1500_v52  ;;  %v7220_v24 = vpop.f32.mrb[9].mxu0 }
 0x8b2   : > { %v1677_v25 = vmul.f32 %v8441_v23, %v8441_v23 }
 0x8b4   : > { %v1678_v26 = vsel %vm640_vm0, %v1677_v25, 0.0 }
 0x8b5   : > { %1679 = vadd.xlane.f32.xlu1 %v1678_v26 }
 0x942   : > { %v1680_v35 = vpop.xlane.xlu1 %1679 }
 0x943   : > { %v1681_v36 = vmul.f32 0.03125, %v1680_v35 }
 0x945   : > { %v1682_v37 = vadd.f32 1e-06, %v1681_v36 }
 0x947   : > { %7892 = vrsqrt.f32 %v1682_v37 }
 0x951   : > { %v7893_v38 = vpop.eup %7892 }
 0x952   : > { %v1684_v41 = vmul.f32 %v7893_v38, %v8441_v23 }
 0x954   : > { %v1689_v42 = vmul.f32 %v6809_v39, %v1684_v41 }
 0x956   : > { %7230 = vmatmul.mubr.msk.f32.vlgmr.msra.gmra.mrb[14].mxu1 %vm640_vm0, %v1689_v42 }
 0x957   : > { %7234 = vmatprep.mubr.msk.f32.mxu1 %vm8058_vm1, %v8059_v9 }
 0xa29   : > { %v8467_v43 = vpop.f32.mrb[14].mxu1 }
 0xa2a   : > { %1846 = vrot.lane.b32.xlu1 %v8467_v43, %s9450_s29  ;;  %1768 = vrot.lane.b32.xlu0 %v8467_v43, %s9451_s24  ;;  %v7231_v44 = vpop.f32.mrb[15].mxu1 }
 0xa2b   : > { %v2446_v44 = vld [vmem:[%s9447_s6 + $0x28] sm:$0xff] }
 0xa2e   : > { %1924 = vrot.lane.b32.xlu1 %v8467_v43, %s9452_s22  ;;  %1844 = vrot.lane.b32.xlu0 %v8467_v43, %s9453_s20 }
 0xa32   : > { %1922 = vrot.lane.b32.xlu1 %v8467_v43, %s9454_s21  ;;  %2002 = vrot.lane.b32.xlu0 %v8467_v43, %s9455_s26 }
 0xa36   : > { %2000 = vrot.lane.b32.xlu0 %v8467_v43, %s9456_s28 }
 0xa9c   : > { %v1847_v45 = vpop.permute.xlu1 %1846  ;;  %v1769_v46 = vpop.permute.xlu0 %1768 }
 0xa9d   : > { %7233 = vmatpush3.xpose.msk.msra.mxu1 %vm745_vm2, %v1769_v46  ;;  %v2447_v46 = vld [vmem:[%s9447_s6 + $0x30] sm:$0xff] }
 0xa9e   : > { %7237 = vmatprep.subr.mxu1 %v8059_v9 }
 0xaa0   : > { %v1925_v48 = vpop.permute.xlu1 %1924  ;;  %7235 = vmatmul.mubr.msk.f32.vlgmr.msra.gmra.mrb[16].mxu1 %vm745_vm2, %v8467_v43  ;;  %v1845_v49 = vpop.permute.xlu0 %1844 }
 0xaa1   : > { %7238 = vmatpush3.xpose.msk.msra.mxu1 %vm745_vm2, %v1847_v45  ;;  %7243 = vmatpush3.xpose.msk.msra.mxu0 %vm745_vm2, %v1925_v48  ;;  %v2448_v48 = vld [vmem:[%s9447_s6 + $0x38] sm:$0xff] }
 0xaa2   : > { %7239 = vmatprep.mubr.msk.f32.mxu1 %vm8058_vm1, %v8059_v9  ;;  %7247 = vmatprep.subr.mxu1 %v8059_v9 }
 0xaa3   : > { %7252 = vmatprep.subr.mxu0 %v8059_v9 }
 0xaa4   : > { %v1923_v50 = vpop.permute.xlu1 %1922  ;;  %7240 = vmatmul.mubr.msk.f32.vlgmr.msra.gmra.mrb[18].mxu1 %vm745_vm2, %v1845_v49  ;;  %v2003_v51 = vpop.permute.xlu0 %2002  ;;  %v7694_v49 = vpack.c.bf16 %v2448_v48, %v2447_v46 }
 0xaa5   : > { %7245 = vmatmul.mubr.msk.f32.vlgmr.msra.gmra.mrb[10].mxu0 %vm745_vm2, %v1923_v50  ;;  %7248 = vmatpush3.xpose.msk.msra.mxu1 %vm745_vm2, %v2003_v51 }
 0xaa6   : > { %7249 = vmatprep.mubr.msk.f32.mxu1 %vm8058_vm1, %v8059_v9  ;;  %7257 = vmatprep.subr.mxu1 %v8059_v9 }
 0xaa7   : > { %7254 = vmatprep.mubr.msk.f32.mxu0 %vm8058_vm1, %v8059_v9 }
 0xaa8   : > { %v2001_v52 = vpop.permute.xlu0 %2000 }
 0xaa9   : > { %7250 = vmatmul.mubr.msk.f32.vlgmr.msra.gmra.mrb[20].mxu1 %vm745_vm2, %v2001_v52 }
 0xaaa   : > { %7259 = vmatprep.mubr.msk.f32.mxu1 %vm8058_vm1, %v8059_v9 }
 0xb73   : > { %v1840_v53 = vpop.f32.mrb[16].mxu1 }
 0xb74   : > { %v2078_v54 = vadd.f32 %v1840_v53, %v8312_v29  ;;  %v7236_v55 = vpop.f32.mrb[17].mxu1 }
 0xb76   : > { %v2082_v56 = vsel %vm745_vm2, %v2078_v54, -inf }
 0xb77   : > { %2083 = vmax.xlane.f32.xlu1 %v2082_v56  ;;  %v1918_v57 = vpop.f32.mrb[18].mxu1 }
 0xb78   : > { %v2079_v58 = vadd.f32 %v1918_v57, %v8318_v34  ;;  %v7241_v0 = vpop.f32.mrb[19].mxu1  ;;  %v1996_v59 = vpop.f32.mrb[10].mxu0 }
 0xb79   : > { %v7246_v60 = vpop.f32.mrb[11].mxu0  ;;  %v2080_v61 = vadd.f32 %v1996_v59, %v8325_v40 }
 0xb7a   : > { %v2085_v62 = vsel %vm745_vm2, %v2079_v58, -inf }
 0xb7b   : > { %2086 = vmax.xlane.f32.xlu0 %v2085_v62  ;;  %v2088_v29 = vsel %vm745_vm2, %v2080_v61, -inf }
 0xb7c   : > { %v2074_v63 = vpop.f32.mrb[20].mxu1 }
 0xb7d   : > { %v2081_v1 = vadd.f32 %v2074_v63, %v8333_v47  ;;  %v7251_v2 = vpop.f32.mrb[21].mxu1  ;;  %v8568_v63 = vld [vmem:[%s625_s3] sm:$0xff]  ;;  %s9469_s3 = sld [smem:[#allocation14_spill]] }
 0xb7f   : > { %2089 = vmax.xlane.f32.xlu0 %v2088_v29  ;;  %v2091_v3 = vsel %vm745_vm2, %v2081_v1, -inf }
 0xb80   : > { %2092 = vmax.xlane.f32.xlu1 %v2091_v3 }
 0xb91   : > { %2202 = vrot.lane.b32.xlu1 %v8467_v43, %s9457_s25 }
 0xb95   : > { %2126 = vrot.lane.b32.xlu0 %v8467_v43, %s9458_s2 }
 0xc04   : > { %v2084_v34 = vpop.xlane.xlu1 %2083 }
 0xc05   : > { %v2094_v40 = vsub.f32 %v2078_v54, %v2084_v34 }
 0xc07   : > { %v2098_v4 = vmul.f32 1.442695, %v2094_v40 }
 0xc08   : > { %v2087_v5 = vpop.xlane.xlu0 %2086 }
 0xc09   : > { %7894 = vpow2.f32 %v2098_v4  ;;  %v2095_v7 = vsub.f32 %v2079_v58, %v2087_v5  ;;  %v2537_v5 = vld [vmem:[%s9448_s7 + $0x20] sm:$0xff] }
 0xc0b   : > { %v2100_v47 = vmul.f32 1.442695, %v2095_v7  ;;  %v2538_v7 = vld [vmem:[%s9448_s7 + $0x28] sm:$0xff] }
 0xc0c   : > { %v2090_v8 = vpop.xlane.xlu0 %2089 }
 0xc0d   : > { %7896 = vpow2.f32 %v2100_v47  ;;  %v2096_v10 = vsub.f32 %v2080_v61, %v2090_v8  ;;  %v2093_v11 = vpop.xlane.xlu1 %2092  ;;  %v7697_v47 = vpack.c.bf16 %v2538_v7, %v2537_v5  ;;  %v2540_v8 = vld [vmem:[%s9448_s7 + $0x38] sm:$0xff] }
 0xc0e   : > { %v2097_v12 = vsub.f32 %v2081_v1, %v2093_v11  ;;  %v2713_v1 = vmul.f32 %v8568_v63, %v8568_v63  ;;  %v2615_v11 = vld [vmem:[%s9449_s8 + $0x40] sm:$0xff] }
 0xc0f   : > { %v2102_v13 = vmul.f32 1.442695, %v2096_v10 }
 0xc10   : > { %v2104_v14 = vmul.f32 1.442695, %v2097_v12  ;;  %v2127_v15 = vpop.permute.xlu0 %2126  ;;  %v2714_v2 = vsel %vm640_vm0, %v2713_v1, 0.0  ;;  %v2616_v12 = vld [vmem:[%s9449_s8 + $0x48] sm:$0xff] }
 0xc11   : > { %7898 = vpow2.f32 %v2102_v13  ;;  %v2203_v16 = vpop.permute.xlu1 %2202  ;;  %7253 = vmatpush3.msra.mxu0 %v2127_v15  ;;  %v2617_v13 = vld [vmem:[%s9449_s8 + $0x50] sm:$0xff]  ;;  %v2618_v15 = vld [vmem:[%s9449_s8 + $0x58] sm:$0xff] }
 0xc12   : > { %7900 = vpow2.f32 %v2104_v14  ;;  %7258 = vmatpush3.msra.mxu1 %v2203_v16  ;;  %7262 = vmatprep.subr.mxu0 %v8059_v9  ;;  %v7703_v14 = vpack.c.bf16 %v2616_v12, %v2615_v11  ;;  %v7706_v16 = vpack.c.bf16 %v2618_v15, %v2617_v13  ;;  %v8714_v11 = vld [vmem:[%s9466_s4 + $0x18] sm:$0xff] }
 0xc13   : > { %v7895_v17 = vpop.eup %7894  ;;  %7267 = vmatprep.subr.mxu1 %v8059_v9 }
 0xc14   : > { %v2106_v19 = vsel %vm745_vm2, %v7895_v17, 0.0 }
 0xc15   : > { %2107 = vadd.xlane.f32.xlu0 %v2106_v19  ;;  %v2620_v19 = vld [vmem:[%s9449_s8 + $0x68] sm:$0xff] }
 0xc17   : > { %v7897_v20 = vpop.eup %7896 }
 0xc18   : > { %v2109_v21 = vsel %vm745_vm2, %v7897_v20, 0.0 }
 0xc19   : > { %2110 = vadd.xlane.f32.xlu1 %v2109_v21 }
 0xc1b   : > { %v7899_v22 = vpop.eup %7898 }
 0xc1c   : > { %v7901_v18 = vpop.eup %7900  ;;  %v2112_v24 = vsel %vm745_vm2, %v7899_v22, 0.0 }
 0xc1d   : > { %2113 = vadd.xlane.f32.xlu0 %v2112_v24  ;;  %v2115_v25 = vsel %vm745_vm2, %v7901_v18, 0.0 }
 0xc1e   : > { %2116 = vadd.xlane.f32.xlu1 %v2115_v25 }
 0xc2f   : > { %2278 = vrot.lane.b32.xlu1 %v8467_v43, %s9459_s0 }
 0xc33   : > { %2354 = vrot.lane.b32.xlu0 %v8467_v43, %s9460_s5  ;;  %v2445_v43 = vld [vmem:[%s9447_s6 + $0x20] sm:$0xff] }
 0xc34   : > { %v7691_v45 = vpack.c.bf16 %v2446_v44, %v2445_v43  ;;  %v2621_v44 = vld [vmem:[%s9449_s8 + $0x70] sm:$0xff] }
 0xca2   : > { %v2108_v26 = vpop.xlane.xlu0 %2107 }
 0xca3   : > { %7902 = vrcp.f32 %v2108_v26 }
 0xca6   : > { %v2111_v27 = vpop.xlane.xlu1 %2110 }
 0xca7   : > { %7904 = vrcp.f32 %v2111_v27  ;;  %v2726_v27 = vld [vmem:[%s9353_s10] sm:$0xff] }
 0xcaa   : > { %v2114_v28 = vpop.xlane.xlu0 %2113 }
 0xcab   : > { %7906 = vrcp.f32 %v2114_v28  ;;  %v2117_v30 = vpop.xlane.xlu1 %2116  ;;  %v2727_v28 = vld [vmem:[%s9353_s10 + $0x8] sm:$0xff] }
 0xcac   : > { %7908 = vrcp.f32 %v2117_v30 }
 0xcad   : > { %v7903_v31 = vpop.eup %7902 }
 0xcae   : > { %v2122_v32 = vmul.f32 %v7903_v31, %v7895_v17  ;;  %v2355_v37 = vpop.permute.xlu0 %2354  ;;  %v2619_v17 = vld [vmem:[%s9449_s8 + $0x60] sm:$0xff] }
 0xcaf   : > { %v2279_v33 = vpop.permute.xlu1 %2278  ;;  %v6824_v31 = vld [vmem:[%s9443_s9 + $0x3] ss:$0 sm:$0xff] }
 0xcb0   : > { %7255 = vmatmul.mubr.msk.f32.vlgmr.msra.gmra.mrb[12].mxu0 %vm745_vm2, %v2122_v32 }
 0xcb1   : > { %v7905_v35 = vpop.eup %7904  ;;  %7263 = vmatpush3.msra.mxu0 %v2279_v33  ;;  %7264 = vmatprep.mubr.msk.f32.mxu0 %vm8058_vm1, %v8059_v9 }
 0xcb2   : > { %v2123_v36 = vmul.f32 %v7905_v35, %v7897_v20  ;;  %7690 = vmatprep.subr.bf16.mxu0 %v8057_v6  ;;  %v7709_v20 = vpack.c.bf16 %v2620_v19, %v2619_v17  ;;  %v7715_v35 = vpack.c.bf16 %v2727_v28, %v2726_v27 }
 0xcb4   : > { %7260 = vmatmul.mubr.msk.f32.vlgmr.msra.gmra.mrb[22].mxu1 %vm745_vm2, %v2123_v36 }
 0xcb5   : > { %v7907_v38 = vpop.eup %7906  ;;  %7268 = vmatpush3.msra.mxu1 %v2355_v37  ;;  %7269 = vmatprep.mubr.msk.f32.mxu1 %vm8058_vm1, %v8059_v9  ;;  %v2728_v37 = vld [vmem:[%s9353_s10 + $0x10] sm:$0xff] }
 0xcb6   : > { %v7909_v39 = vpop.eup %7908  ;;  %v2124_v41 = vmul.f32 %v7907_v38, %v7899_v22  ;;  %7696 = vmatprep.subr.bf16.mxu1 %v8057_v6  ;;  %v2729_v38 = vld [vmem:[%s9353_s10 + $0x18] sm:$0xff] }
 0xcb7   : > { %v2125_v42 = vmul.f32 %v7909_v39, %v7901_v18 }
 0xcb8   : > { %7265 = vmatmul.mubr.msk.f32.vlgmr.msra.gmra.mrb[14].mxu0 %vm745_vm2, %v2124_v41  ;;  %v7718_v41 = vpack.c.bf16 %v2729_v38, %v2728_v37 }
 0xcb9   : > { %7270 = vmatmul.mubr.msk.f32.vlgmr.msra.gmra.mrb[24].mxu1 %vm745_vm2, %v2125_v42  ;;  %7280 = vmatprep.mubr.msk.f32.mxu0 %vm8058_vm1, %v8059_v9  ;;  %v6828_v42 = vld [vmem:[%s9360_s17] ss:$0 sm:$0xff] }
 0xcba   : > { %7291 = vmatprep.mubr.msk.f32.mxu1 %vm8058_vm1, %v8059_v9  ;;  %7692 = vmatpush3.bf16.msra.mxu0 %v7691_v45  ;;  %v2622_v45 = vld [vmem:[%s9449_s8 + $0x78] sm:$0xff]  ;;  %s9472_s8 = sld [smem:[#allocation29_spill]] }
 0xcbb   : > { %7693 = vmatprep.subr.bf16.mxu0 %v8057_v6  ;;  %7698 = vmatpush3.bf16.msra.mxu1 %v7697_v47  ;;  %v7712_v46 = vpack.c.bf16 %v2622_v45, %v2621_v44 }
 0xcbc   : > { %7699 = vmatprep.subr.bf16.mxu1 %v8057_v6 }
 0xcbe   : > { %7695 = vmatpush3.bf16.msra.mxu0 %v7694_v49 }
 0xcbf   : > { %7702 = vmatprep.subr.bf16.mxu0 %v8057_v6 }
 0xd83   : > { %v2198_v50 = vpop.f32.mrb[12].mxu0 }
 0xd84   : > { %v7256_v51 = vpop.f32.mrb[13].mxu0 }
 0xd87   : > { %v2274_v52 = vpop.f32.mrb[22].mxu1 }
 0xd88   : > { %2431 = vrot.lane.b32.xlu1 %v2274_v52, %s9461_s19  ;;  %v7261_v53 = vpop.f32.mrb[23].mxu1 }
 0xd8b   : > { %v2350_v54 = vpop.f32.mrb[14].mxu0 }
 0xd8c   : > { %v2426_v55 = vpop.f32.mrb[24].mxu1  ;;  %2435 = vrot.lane.b32.xlu0 %v2350_v54, %s9462_s16  ;;  %v7266_v56 = vpop.f32.mrb[15].mxu0 }
 0xd8d   : > { %2439 = vrot.lane.b32.xlu1 %v2426_v55, %s9463_s14  ;;  %v7271_v57 = vpop.f32.mrb[25].mxu1 }
 0xdb1   : > { %2715 = vadd.xlane.f32.xlu1 %v2714_v2 }
 0xdfa   : > { %v2432_v58 = vpop.permute.xlu1 %2431 }
 0xdfb   : > { %v2442_v0 = vsel %vm745_vm2, %v2198_v50, %v2432_v58 }
 0xdfe   : > { %v2436_v59 = vpop.permute.xlu0 %2435 }
 0xdff   : > { %v2443_v60 = vsel %vm1419_vm3, %v2442_v0, %v2436_v59  ;;  %v2440_v61 = vpop.permute.xlu1 %2439 }
 0xe00   : > { %v2444_v62 = vsel %vm1421_vm4, %v2443_v60, %v2440_v61  ;;  %v8694_v61 = vld [vmem:[%s9466_s4] sm:$0xff] }
 0xe01   : > { %7281 = vmatmul.mubr.msk.f32.vlgmr.msra.gmra.mrb[16].mxu0 %vm640_vm0, %v2444_v62 }
 0xe02   : > { %7310 = vmatprep.mubr.msk.f32.mxu0 %vm8058_vm1, %v8059_v9  ;;  %7704 = vmatpush3.bf16.msra.mxu0 %v7703_v14 }
 0xe03   : > { %7705 = vmatprep.subr.bf16.mxu0 %v8057_v6 }
 0xe06   : > { %7707 = vmatpush3.bf16.msra.mxu0 %v7706_v16 }
 0xe07   : > { %7708 = vmatprep.subr.bf16.mxu0 %v8057_v6 }
 0xe0a   : > { %7710 = vmatpush3.bf16.msra.mxu0 %v7709_v20 }
 0xe0b   : > { %7711 = vmatprep.subr.bf16.mxu0 %v8057_v6 }
 0xe0e   : > { %7713 = vmatpush3.bf16.msra.mxu0 %v7712_v46 }
 0xe0f   : > { %7334 = vmatprep.subr.mxu0 %v8059_v9 }
 0xe3e   : > { %v2716_v21 = vpop.xlane.xlu1 %2715 }
 0xe3f   : > { %v2717_v22 = vmul.f32 0.03125, %v2716_v21 }
 0xe41   : > { %v2718_v26 = vadd.f32 1e-06, %v2717_v22 }
 0xed4   : > { %v2518_v29 = vpop.f32.mrb[16].mxu0 }
 0xed5   : > { %v8574_v3 = vadd.f32 %v2518_v29, %v8441_v23  ;;  %v7282_v34 = vpop.f32.mrb[17].mxu0  ;;  %v2539_v23 = vld [vmem:[%s9448_s7 + $0x30] sm:$0xff]  ;;  %v8700_v29 = vld [vmem:[%s9466_s4 + $0x8] sm:$0xff] }
 0xed6   : > { %v7700_v10 = vpack.c.bf16 %v2540_v8, %v2539_v23 }
 0xed7   : > { %v2524_v40 = vmul.f32 %v8574_v3, %v8574_v3 }
 0xed8   : > { %7701 = vmatpush3.bf16.msra.mxu1 %v7700_v10 }
 0xed9   : > { %v2525_v4 = vsel %vm640_vm0, %v2524_v40, 0.0  ;;  %7714 = vmatprep.subr.bf16.mxu1 %v8057_v6 }
 0xeda   : > { %2526 = vadd.xlane.f32.xlu0 %v2525_v4  ;;  %v8706_v4 = vld [vmem:[%s9466_s4 + $0x10] sm:$0xff] }
 0xf67   : > { %v2527_v18 = vpop.xlane.xlu0 %2526 }
 0xf68   : > { %v2528_v24 = vmul.f32 0.03125, %v2527_v18 }
 0xf6a   : > { %v2529_v25 = vadd.f32 1e-06, %v2528_v24 }
 0xf6c   : > { %7910 = vrsqrt.f32 %v2529_v25 }
 0xf6d   : > { %7912 = vrsqrt.f32 %v2718_v26 }
 0xf76   : > { %v7911_v30 = vpop.eup %7910 }
 0xf77   : > { %v2531_v32 = vmul.f32 %v7911_v30, %v8574_v3  ;;  %v7913_v33 = vpop.eup %7912 }
 0xf78   : > { %v2720_v39 = vmul.f32 %v7913_v33, %v8568_v63 }
 0xf79   : > { %v2536_v36 = vmul.f32 %v6824_v31, %v2531_v32 }
 0xf7a   : > { %v2725_v43 = vmul.f32 %v6828_v42, %v2720_v39 }
 0xf7b   : > { %7292 = vmatmul.mubr.msk.f32.vlgmr.msra.gmra.mrb[26].mxu1 %vm640_vm0, %v2536_v36 }
 0xf7c   : > { %7716 = vmatpush3.bf16.msra.mxu1 %v7715_v35  ;;  %7321 = vmatprep.mubr.msk.f32.mxu1 %vm8058_vm1, %v8059_v9 }
 0xf7d   : > { %7717 = vmatprep.subr.bf16.mxu1 %v8057_v6 }
 0xf80   : > { %7719 = vmatpush3.bf16.msra.mxu1 %v7718_v41 }
 0xf81   : > { %7324 = vmatprep.subr.mxu1 %v8059_v9 }
 0xf83   : > { %7322 = vmatmul.mubr.msk.f32.vlgmr.msra.gmra.mrb[28].mxu1 %vm640_vm0, %v2725_v43 }
 0xf84   : > { %7326 = vmatprep.mubr.msk.f32.mxu1 %vm8058_vm1, %v8059_v9 }
0x104e   : > { %v2610_v48 = vpop.f32.mrb[26].mxu1 }
0x104f   : > { %v2614_v49 = vmax.f32 %v2610_v48, 0.0  ;;  %v7293_v50 = vpop.f32.mrb[27].mxu1 }
0x1051   : > { %7311 = vmatmul.mubr.msk.f32.vlgmr.msra.gmra.mrb[18].mxu0 %vm1601_vm5, %v2614_v49 }
0x1052   : > { %7336 = vmatprep.mubr.msk.f32.mxu0 %vm8058_vm1, %v8059_v9 }
0x1056   : > { %v8652_v51 = vpop.f32.mrb[28].mxu1 }
0x1057   : > { %2882 = vrot.lane.b32.xlu1 %v8652_v51, %s9450_s29  ;;  %2804 = vrot.lane.b32.xlu0 %v8652_v51, %s9451_s24  ;;  %v7323_v52 = vpop.f32.mrb[29].mxu1 }
0x105b   : > { %2960 = vrot.lane.b32.xlu1 %v8652_v51, %s9452_s22  ;;  %2880 = vrot.lane.b32.xlu0 %v8652_v51, %s9453_s20 }
0x105f   : > { %2958 = vrot.lane.b32.xlu1 %v8652_v51, %s9454_s21  ;;  %3038 = vrot.lane.b32.xlu0 %v8652_v51, %s9455_s26 }
0x1063   : > { %3036 = vrot.lane.b32.xlu0 %v8652_v51, %s9456_s28 }
0x10c9   : > { %v2883_v53 = vpop.permute.xlu1 %2882  ;;  %v2805_v54 = vpop.permute.xlu0 %2804 }
0x10ca   : > { %7325 = vmatpush3.xpose.msk.msra.mxu1 %vm745_vm2, %v2805_v54 }
0x10cb   : > { %7329 = vmatprep.subr.mxu1 %v8059_v9 }
0x10cd   : > { %v2961_v55 = vpop.permute.xlu1 %2960  ;;  %7327 = vmatmul.mubr.msk.f32.vlgmr.msra.gmra.mrb[30].mxu1 %vm745_vm2, %v8652_v51  ;;  %v2881_v56 = vpop.permute.xlu0 %2880 }
0x10ce   : > { %7330 = vmatpush3.xpose.msk.msra.mxu1 %vm745_vm2, %v2883_v53  ;;  %7335 = vmatpush3.xpose.msk.msra.mxu0 %vm745_vm2, %v2961_v55 }
0x10cf   : > { %7331 = vmatprep.mubr.msk.f32.mxu1 %vm8058_vm1, %v8059_v9  ;;  %7339 = vmatprep.subr.mxu1 %v8059_v9 }
0x10d0   : > { %7344 = vmatprep.subr.mxu0 %v8059_v9 }
0x10d1   : > { %v2959_v57 = vpop.permute.xlu1 %2958  ;;  %7332 = vmatmul.mubr.msk.f32.vlgmr.msra.gmra.mrb[32].mxu1 %vm745_vm2, %v2881_v56  ;;  %v3039_v58 = vpop.permute.xlu0 %3038 }
0x10d2   : > { %7337 = vmatmul.mubr.msk.f32.vlgmr.msra.gmra.mrb[20].mxu0 %vm745_vm2, %v2959_v57  ;;  %7340 = vmatpush3.xpose.msk.msra.mxu1 %vm745_vm2, %v3039_v58  ;;  %v3481_v58 = vld [vmem:[%s9354_s11] sm:$0xff] }
0x10d3   : > { %7341 = vmatprep.mubr.msk.f32.mxu1 %vm8058_vm1, %v8059_v9  ;;  %7349 = vmatprep.subr.mxu1 %v8059_v9 }
0x10d4   : > { %7346 = vmatprep.mubr.msk.f32.mxu0 %vm8058_vm1, %v8059_v9 }
0x10d5   : > { %v3037_v0 = vpop.permute.xlu0 %3036 }
0x10d6   : > { %7342 = vmatmul.mubr.msk.f32.vlgmr.msra.gmra.mrb[34].mxu1 %vm745_vm2, %v3037_v0  ;;  %v3482_v0 = vld [vmem:[%s9354_s11 + $0x8] sm:$0xff] }
0x10d7   : > { %7351 = vmatprep.mubr.msk.f32.mxu1 %vm8058_vm1, %v8059_v9 }
0x1124   : > { %v8689_v59 = vpop.f32.mrb[18].mxu0 }
0x1125   : > { %v7312_v60 = vpop.f32.mrb[19].mxu0 }
0x1126   : > { %v7721_v60 = vpack.c.bf16 %v3482_v0, %v3481_v58 }
0x11a0   : > { %v2876_v62 = vpop.f32.mrb[30].mxu1 }
0x11a1   : > { %v3114_v1 = vadd.f32 %v2876_v62, %v8694_v61  ;;  %v7328_v2 = vpop.f32.mrb[31].mxu1  ;;  %v3483_v62 = vld [vmem:[%s9354_s11 + $0x10] sm:$0xff] }
0x11a3   : > { %v3118_v34 = vsel %vm745_vm2, %v3114_v1, -inf }
0x11a4   : > { %3119 = vmax.xlane.f32.xlu1 %v3118_v34  ;;  %v2954_v40 = vpop.f32.mrb[32].mxu1 }
0x11a5   : > { %v3115_v5 = vadd.f32 %v2954_v40, %v8700_v29  ;;  %v7333_v7 = vpop.f32.mrb[33].mxu1  ;;  %v3032_v47 = vpop.f32.mrb[20].mxu0 }
0x11a6   : > { %v7338_v23 = vpop.f32.mrb[21].mxu0  ;;  %v3116_v8 = vadd.f32 %v3032_v47, %v8706_v4 }
0x11a7   : > { %v3121_v10 = vsel %vm745_vm2, %v3115_v5, -inf }
0x11a8   : > { %3122 = vmax.xlane.f32.xlu0 %v3121_v10  ;;  %v3124_v15 = vsel %vm745_vm2, %v3116_v8, -inf }
0x11a9   : > { %v3110_v12 = vpop.f32.mrb[34].mxu1 }
0x11aa   : > { %v3117_v13 = vadd.f32 %v3110_v12, %v8714_v11  ;;  %v7343_v14 = vpop.f32.mrb[35].mxu1  ;;  %v2696_v12 = vadd.f32 %v8689_v59, %v8574_v3  ;;  %v3652_v59 = vld [vmem:[%s9467_s1 + $0x10] sm:$0xff] }
0x11ac   : > { %3125 = vmax.xlane.f32.xlu0 %v3124_v15  ;;  %v3127_v16 = vsel %vm745_vm2, %v3117_v13, -inf }
0x11ad   : > { %3128 = vmax.xlane.f32.xlu1 %v3127_v16  ;;  %v3650_v16 = vld [vmem:[%s9467_s1] sm:$0xff] }
0x11be   : > { %3238 = vrot.lane.b32.xlu1 %v8652_v51, %s9457_s25 }
0x11c2   : > { %3162 = vrot.lane.b32.xlu0 %v8652_v51, %s9458_s2 }
0x1231   : > { %v3120_v17 = vpop.xlane.xlu1 %3119 }
0x1232   : > { %v3130_v19 = vsub.f32 %v3114_v1, %v3120_v17  ;;  %v3484_v1 = vld [vmem:[%s9354_s11 + $0x18] sm:$0xff]  ;;  %v3651_v17 = vld [vmem:[%s9467_s1 + $0x8] sm:$0xff] }
0x1233   : > { %v7724_v2 = vpack.c.bf16 %v3484_v1, %v3483_v62 }
0x1234   : > { %v3134_v20 = vmul.f32 1.442695, %v3130_v19 }
0x1235   : > { %v3123_v21 = vpop.xlane.xlu0 %3122 }
0x1236   : > { %7914 = vpow2.f32 %v3134_v20  ;;  %v3131_v22 = vsub.f32 %v3115_v5, %v3123_v21  ;;  %v7733_v21 = vpack.c.bf16 %v3651_v17, %v3650_v16 }
0x1238   : > { %v3136_v18 = vmul.f32 1.442695, %v3131_v22 }
0x1239   : > { %v3126_v24 = vpop.xlane.xlu0 %3125 }
0x123a   : > { %7916 = vpow2.f32 %v3136_v18  ;;  %v3132_v25 = vsub.f32 %v3116_v8, %v3126_v24  ;;  %v3129_v26 = vpop.xlane.xlu1 %3128  ;;  %v3653_v18 = vld [vmem:[%s9467_s1 + $0x18] sm:$0xff] }
0x123b   : > { %v3133_v27 = vsub.f32 %v3117_v13, %v3129_v26  ;;  %v2698_v13 = vmul.f32 %v2696_v12, %v2696_v12 }
0x123c   : > { %v3138_v28 = vmul.f32 1.442695, %v3132_v25  ;;  %v7736_v25 = vpack.c.bf16 %v3653_v18, %v3652_v59 }
0x123d   : > { %v3140_v30 = vmul.f32 1.442695, %v3133_v27  ;;  %v3163_v31 = vpop.permute.xlu0 %3162  ;;  %v2699_v14 = vsel %vm640_vm0, %v2698_v13, 0.0 }
0x123e   : > { %7918 = vpow2.f32 %v3138_v28  ;;  %v3239_v32 = vpop.permute.xlu1 %3238  ;;  %7345 = vmatpush3.msra.mxu0 %v3163_v31  ;;  %v6827_v31 = vld [vmem:[%s9443_s9 + $0x4] ss:$0 sm:$0xff] }
0x123f   : > { %7920 = vpow2.f32 %v3140_v30  ;;  %7350 = vmatpush3.msra.mxu1 %v3239_v32  ;;  %7354 = vmatprep.subr.mxu0 %v8059_v9 }
0x1240   : > { %v7915_v33 = vpop.eup %7914  ;;  %7359 = vmatprep.subr.mxu1 %v8059_v9 }
0x1241   : > { %v3142_v35 = vsel %vm745_vm2, %v7915_v33, 0.0 }
0x1242   : > { %3143 = vadd.xlane.f32.xlu0 %v3142_v35 }
0x1244   : > { %v7917_v36 = vpop.eup %7916 }
0x1245   : > { %v3145_v37 = vsel %vm745_vm2, %v7917_v36, 0.0 }
0x1246   : > { %3146 = vadd.xlane.f32.xlu1 %v3145_v37 }
0x1248   : > { %v7919_v38 = vpop.eup %7918 }
0x1249   : > { %v7921_v39 = vpop.eup %7920  ;;  %v3148_v41 = vsel %vm745_vm2, %v7919_v38, 0.0 }
0x124a   : > { %3149 = vadd.xlane.f32.xlu0 %v3148_v41  ;;  %v3151_v42 = vsel %vm745_vm2, %v7921_v39, 0.0  ;;  %v3573_v41 = vld [vmem:[%s9468_s23] sm:$0xff] }
0x124b   : > { %3152 = vadd.xlane.f32.xlu1 %v3151_v42  ;;  %v3574_v42 = vld [vmem:[%s9468_s23 + $0x8] sm:$0xff] }
0x125c   : > { %3314 = vrot.lane.b32.xlu1 %v8652_v51, %s9459_s0 }
0x1260   : > { %3390 = vrot.lane.b32.xlu0 %v8652_v51, %s9460_s5 }
0x12cf   : > { %v3144_v43 = vpop.xlane.xlu0 %3143 }
0x12d0   : > { %7922 = vrcp.f32 %v3144_v43  ;;  %v7727_v43 = vpack.c.bf16 %v3574_v42, %v3573_v41 }
0x12d3   : > { %v3147_v44 = vpop.xlane.xlu1 %3146 }
0x12d4   : > { %7924 = vrcp.f32 %v3147_v44  ;;  %v3576_v44 = vld [vmem:[%s9468_s23 + $0x18] sm:$0xff] }
0x12d7   : > { %v3150_v45 = vpop.xlane.xlu0 %3149 }
0x12d8   : > { %7926 = vrcp.f32 %v3150_v45  ;;  %v3153_v46 = vpop.xlane.xlu1 %3152 }
0x12d9   : > { %7928 = vrcp.f32 %v3153_v46 }
0x12da   : > { %v7923_v48 = vpop.eup %7922 }
0x12db   : > { %v3158_v49 = vmul.f32 %v7923_v48, %v7915_v33  ;;  %v3391_v51 = vpop.permute.xlu0 %3390 }
0x12dc   : > { %v3315_v50 = vpop.permute.xlu1 %3314 }
0x12dd   : > { %7347 = vmatmul.mubr.msk.f32.vlgmr.msra.gmra.mrb[22].mxu0 %vm745_vm2, %v3158_v49 }
0x12de   : > { %v7925_v52 = vpop.eup %7924  ;;  %7355 = vmatpush3.msra.mxu0 %v3315_v50  ;;  %7356 = vmatprep.mubr.msk.f32.mxu0 %vm8058_vm1, %v8059_v9 }
0x12df   : > { %v3159_v53 = vmul.f32 %v7925_v52, %v7917_v36  ;;  %7720 = vmatprep.subr.bf16.mxu0 %v8057_v6 }
0x12e1   : > { %7352 = vmatmul.mubr.msk.f32.vlgmr.msra.gmra.mrb[36].mxu1 %vm745_vm2, %v3159_v53 }
0x12e2   : > { %v7927_v54 = vpop.eup %7926  ;;  %7360 = vmatpush3.msra.mxu1 %v3391_v51  ;;  %7361 = vmatprep.mubr.msk.f32.mxu1 %vm8058_vm1, %v8059_v9  ;;  %v6843_v51 = vld [vmem:[%s9360_s17 + $0x1] ss:$0 sm:$0xff] }
0x12e3   : > { %v7929_v55 = vpop.eup %7928  ;;  %v3160_v56 = vmul.f32 %v7927_v54, %v7919_v38  ;;  %7726 = vmatprep.subr.bf16.mxu1 %v8057_v6 }
0x12e4   : > { %v3161_v57 = vmul.f32 %v7929_v55, %v7921_v39 }
0x12e5   : > { %7357 = vmatmul.mubr.msk.f32.vlgmr.msra.gmra.mrb[24].mxu0 %vm745_vm2, %v3160_v56 }
0x12e6   : > { %7362 = vmatmul.mubr.msk.f32.vlgmr.msra.gmra.mrb[38].mxu1 %vm745_vm2, %v3161_v57  ;;  %7372 = vmatprep.mubr.msk.f32.mxu0 %vm8058_vm1, %v8059_v9 }
0x12e7   : > { %7383 = vmatprep.mubr.msk.f32.mxu1 %vm8058_vm1, %v8059_v9  ;;  %7722 = vmatpush3.bf16.msra.mxu0 %v7721_v60 }
0x12e8   : > { %7723 = vmatprep.subr.bf16.mxu0 %v8057_v6  ;;  %7728 = vmatpush3.bf16.msra.mxu1 %v7727_v43 }
0x12e9   : > { %7729 = vmatprep.subr.bf16.mxu1 %v8057_v6 }
0x12eb   : > { %7725 = vmatpush3.bf16.msra.mxu0 %v7724_v2 }
0x12ec   : > { %7732 = vmatprep.subr.bf16.mxu0 %v8057_v6 }
0x13b0   : > { %v3234_v34 = vpop.f32.mrb[22].mxu0 }
0x13b1   : > { %v7348_v40 = vpop.f32.mrb[23].mxu0 }
0x13b2   : > { %v8856_v40 = vld [vmem:[%s9469_s3] ss:$0 sm:$0xff]  ;;  %s9475_s3 = sld [smem:[#allocation6_spill]] }
0x13b4   : > { %v3310_v5 = vpop.f32.mrb[36].mxu1 }
0x13b5   : > { %3467 = vrot.lane.b32.xlu1 %v3310_v5, %s9461_s19  ;;  %v7353_v7 = vpop.f32.mrb[37].mxu1 }
0x13b8   : > { %v3386_v47 = vpop.f32.mrb[24].mxu0 }
0x13b9   : > { %v3462_v23 = vpop.f32.mrb[38].mxu1  ;;  %3471 = vrot.lane.b32.xlu0 %v3386_v47, %s9462_s16  ;;  %v7358_v8 = vpop.f32.mrb[25].mxu0 }
0x13ba   : > { %3475 = vrot.lane.b32.xlu1 %v3462_v23, %s9463_s14  ;;  %v7363_v10 = vpop.f32.mrb[39].mxu1 }
0x13d8   : > { %2700 = vadd.xlane.f32.xlu0 %v2699_v14 }
0x1427   : > { %v3468_v15 = vpop.permute.xlu1 %3467 }
0x1428   : > { %v3478_v19 = vsel %vm745_vm2, %v3234_v34, %v3468_v15 }
0x142b   : > { %v3472_v20 = vpop.permute.xlu0 %3471 }
0x142c   : > { %v3479_v22 = vsel %vm1419_vm3, %v3478_v19, %v3472_v20  ;;  %v3476_v3 = vpop.permute.xlu1 %3475 }
0x142d   : > { %v3480_v24 = vsel %vm1421_vm4, %v3479_v22, %v3476_v3 }
0x142e   : > { %7373 = vmatmul.mubr.msk.f32.vlgmr.msra.gmra.mrb[26].mxu0 %vm640_vm0, %v3480_v24 }
0x142f   : > { %7734 = vmatpush3.bf16.msra.mxu0 %v7733_v21  ;;  %7394 = vmatprep.mubr.msk.f32.mxu0 %vm8058_vm1, %v8059_v9 }
0x1430   : > { %7735 = vmatprep.subr.bf16.mxu0 %v8057_v6 }
0x1433   : > { %7737 = vmatpush3.bf16.msra.mxu0 %v7736_v25 }
0x1434   : > { %7407 = vmatprep.subr.mxu0 %v8059_v9 }
0x1465   : > { %v2701_v26 = vpop.xlane.xlu0 %2700 }
0x1466   : > { %v2702_v27 = vmul.f32 0.03125, %v2701_v26 }
0x1468   : > { %v2703_v28 = vadd.f32 1e-06, %v2702_v27 }
0x146a   : > { %7930 = vrsqrt.f32 %v2703_v28 }
0x1474   : > { %v7931_v30 = vpop.eup %7930 }
0x1475   : > { %v2705_v32 = vmul.f32 %v7931_v30, %v2696_v12 }
0x1477   : > { %v8790_v33 = vmul.f32 %v6827_v31, %v2705_v32 }
0x1479   : > { %7395 = vmatmul.mubr.msk.f32.vlgmr.msra.gmra.mrb[28].mxu0 %vm640_vm0, %v8790_v33 }
0x147a   : > { %7409 = vmatprep.mubr.msk.f32.mxu0 %vm8058_vm1, %v8059_v9 }
0x1501   : > { %v3554_v35 = vpop.f32.mrb[26].mxu0 }
0x1502   : > { %v8797_v36 = vadd.f32 %v3554_v35, %v8568_v63  ;;  %v7374_v37 = vpop.f32.mrb[27].mxu0  ;;  %v3575_v63 = vld [vmem:[%s9468_s23 + $0x10] sm:$0xff] }
0x1503   : > { %v7730_v45 = vpack.c.bf16 %v3576_v44, %v3575_v63 }
0x1504   : > { %v3560_v38 = vmul.f32 %v8797_v36, %v8797_v36 }
0x1505   : > { %7731 = vmatpush3.bf16.msra.mxu1 %v7730_v45 }
0x1506   : > { %v3561_v39 = vsel %vm640_vm0, %v3560_v38, 0.0  ;;  %7397 = vmatprep.subr.mxu1 %v8059_v9 }
0x1507   : > { %3562 = vadd.xlane.f32.xlu1 %v3561_v39 }
0x154c   : > { %v8816_v46 = vpop.f32.mrb[28].mxu0 }
0x154d   : > { %3961 = vrot.lane.b32.xlu1 %v8816_v46, %s9456_s28  ;;  %3805 = vrot.lane.b32.xlu0 %v8816_v46, %s9453_s20  ;;  %v7396_v48 = vpop.f32.mrb[29].mxu0 }
0x1551   : > { %3883 = vrot.lane.b32.xlu0 %v8816_v46, %s9454_s21 }
0x1594   : > { %v3563_v49 = vpop.xlane.xlu1 %3562 }
0x1595   : > { %v3564_v50 = vmul.f32 0.03125, %v3563_v49 }
0x1597   : > { %v3565_v52 = vadd.f32 1e-06, %v3564_v50 }
0x1599   : > { %7932 = vrsqrt.f32 %v3565_v52 }
0x15a3   : > { %v7933_v53 = vpop.eup %7932 }
0x15a4   : > { %v3567_v54 = vmul.f32 %v7933_v53, %v8797_v36 }
0x15a6   : > { %v3572_v55 = vmul.f32 %v6843_v51, %v3567_v54 }
0x15a8   : > { %7384 = vmatmul.mubr.msk.f32.vlgmr.msra.gmra.mrb[40].mxu1 %vm640_vm0, %v3572_v55 }
0x15a9   : > { %7398 = vmatpush3.xpose.msk.msra.mxu1 %vm745_vm2, %v8816_v46  ;;  %7399 = vmatprep.mubr.msk.f32.mxu1 %vm8058_vm1, %v8059_v9 }
0x15aa   : > { %7402 = vmatprep.subr.mxu1 %v8059_v9 }
0x15bf   : > { %v3806_v56 = vpop.permute.xlu0 %3805  ;;  %v3962_v60 = vpop.permute.xlu1 %3961 }
0x15c3   : > { %v3884_v57 = vpop.permute.xlu0 %3883 }
0x15c4   : > { %7408 = vmatpush3.xpose.msk.msra.mxu0 %vm745_vm2, %v3884_v57 }
0x15c5   : > { %7417 = vmatprep.subr.mxu0 %v8059_v9 }
0x167b   : > { %v3646_v58 = vpop.f32.mrb[40].mxu1 }
0x167c   : > { %v7385_v0 = vpop.f32.mrb[41].mxu1  ;;  %3803 = vrot.lane.b32.xlu1 %v3646_v58, %s9453_s20  ;;  %3881 = vrot.lane.b32.xlu0 %v3646_v58, %s9454_s21 }
0x167d   : > { %7400 = vmatmul.mubr.msk.f32.vlgmr.msra.gmra.mrb[42].mxu1 %vm745_vm2, %v3646_v58 }
0x167e   : > { %7403 = vmatpush3.xpose.msk.msra.mxu1 %vm745_vm2, %v3806_v56  ;;  %7404 = vmatprep.mubr.msk.f32.mxu1 %vm8058_vm1, %v8059_v9 }
0x167f   : > { %7412 = vmatprep.subr.mxu1 %v8059_v9 }
0x1680   : > { %3959 = vrot.lane.b32.xlu1 %v3646_v58, %s9456_s28 }
0x16ee   : > { %v3804_v62 = vpop.permute.xlu1 %3803  ;;  %v3882_v1 = vpop.permute.xlu0 %3881 }
0x16ef   : > { %7405 = vmatmul.mubr.msk.f32.vlgmr.msra.gmra.mrb[44].mxu1 %vm745_vm2, %v3804_v62  ;;  %7410 = vmatmul.mubr.msk.f32.vlgmr.msra.gmra.mrb[30].mxu0 %vm745_vm2, %v3882_v1  ;;  %v4404_v62 = vld [vmem:[%s9470_s12] sm:$0xff]  ;;  %v4405_v1 = vld [vmem:[%s9470_s12 + $0x8] sm:$0xff] }
0x16f0   : > { %7413 = vmatpush3.xpose.msk.msra.mxu1 %vm745_vm2, %v3962_v60  ;;  %7414 = vmatprep.mubr.msk.f32.mxu1 %vm8058_vm1, %v8059_v9 }
0x16f1   : > { %7419 = vmatprep.mubr.msk.f32.mxu0 %vm8058_vm1, %v8059_v9  ;;  %7422 = vmatprep.subr.mxu1 %v8059_v9 }
0x16f2   : > { %v3960_v2 = vpop.permute.xlu1 %3959 }
0x16f3   : > { %7415 = vmatmul.mubr.msk.f32.vlgmr.msra.gmra.mrb[46].mxu1 %vm745_vm2, %v3960_v2  ;;  %v7739_v2 = vpack.c.bf16 %v4405_v1, %v4404_v62 }
0x16f4   : > { %7424 = vmatprep.mubr.msk.f32.mxu1 %vm8058_vm1, %v8059_v9 }
0x1750   : > { %v3799_v34 = vpop.f32.mrb[42].mxu1 }
0x1751   : > { %v4037_v5 = vadd.f32 %v8856_v40, %v3799_v34  ;;  %v7401_v7 = vpop.f32.mrb[43].mxu1 }
0x1752   : > { %v4406_v7 = vld [vmem:[%s9470_s12 + $0x10] sm:$0xff] }
0x1753   : > { %v4041_v47 = vsel %vm745_vm2, %v4037_v5, -inf }
0x1754   : > { %4042 = vmax.xlane.f32.xlu0 %v4041_v47  ;;  %v4407_v47 = vld [vmem:[%s9470_s12 + $0x18] sm:$0xff] }
0x17c2   : > { %v3877_v23 = vpop.f32.mrb[44].mxu1  ;;  %v3955_v8 = vpop.f32.mrb[30].mxu0 }
0x17c3   : > { %v4038_v10 = vadd.f32 %v8856_v40, %v3877_v23  ;;  %v4039_v12 = vadd.f32 %v8856_v40, %v3955_v8  ;;  %v7406_v13 = vpop.f32.mrb[45].mxu1  ;;  %v7411_v14 = vpop.f32.mrb[31].mxu0  ;;  %v7742_v23 = vpack.c.bf16 %v4407_v47, %v4406_v7  ;;  %v4672_v7 = vld [vmem:[%s9353_s10 + $0x30] sm:$0xff]  ;;  %v4673_v47 = vld [vmem:[%s9353_s10 + $0x38] sm:$0xff] }
0x17c5   : > { %v4044_v15 = vsel %vm745_vm2, %v4038_v10, -inf  ;;  %v4047_v16 = vsel %vm745_vm2, %v4039_v12, -inf }
0x17c6   : > { %4045 = vmax.xlane.f32.xlu1 %v4044_v15  ;;  %v4033_v17 = vpop.f32.mrb[46].mxu1  ;;  %4048 = vmax.xlane.f32.xlu0 %v4047_v16 }
0x17c7   : > { %v4040_v19 = vadd.f32 %v8856_v40, %v4033_v17  ;;  %v7416_v20 = vpop.f32.mrb[47].mxu1 }
0x17c9   : > { %v4050_v21 = vsel %vm745_vm2, %v4040_v19, -inf }
0x17ca   : > { %4051 = vmax.xlane.f32.xlu0 %v4050_v21 }
0x17d7   : > { %4085 = vrot.lane.b32.xlu1 %v8816_v46, %s9451_s24 }
0x17e1   : > { %v4043_v22 = vpop.xlane.xlu0 %4042 }
0x17e2   : > { %v4053_v3 = vsub.f32 %v4037_v5, %v4043_v22 }
0x17e4   : > { %v4057_v59 = vmul.f32 1.442695, %v4053_v3 }
0x17e6   : > { %7934 = vpow2.f32 %v4057_v59 }
0x17f0   : > { %v7935_v18 = vpop.eup %7934 }
0x17f1   : > { %v4065_v24 = vsel %vm745_vm2, %v7935_v18, 0.0 }
0x17fb   : > { %4066 = vadd.xlane.f32.xlu1 %v4065_v24 }
0x1853   : > { %v4046_v25 = vpop.xlane.xlu1 %4045  ;;  %v4049_v26 = vpop.xlane.xlu0 %4048 }
0x1854   : > { %v4054_v27 = vsub.f32 %v4038_v10, %v4046_v25  ;;  %v4055_v28 = vsub.f32 %v4039_v12, %v4049_v26  ;;  %v4496_v26 = vld [vmem:[%s9471_s15] sm:$0xff] }
0x1856   : > { %v4059_v30 = vmul.f32 1.442695, %v4054_v27  ;;  %v4061_v31 = vmul.f32 1.442695, %v4055_v28  ;;  %v4497_v27 = vld [vmem:[%s9471_s15 + $0x8] sm:$0xff] }
0x1857   : > { %v4086_v32 = vpop.permute.xlu1 %4085  ;;  %v4052_v35 = vpop.xlane.xlu0 %4051  ;;  %v7745_v28 = vpack.c.bf16 %v4497_v27, %v4496_v26 }
0x1858   : > { %7936 = vpow2.f32 %v4059_v30  ;;  %v4056_v37 = vsub.f32 %v4040_v19, %v4052_v35  ;;  %7418 = vmatpush3.msra.mxu0 %v4086_v32  ;;  %v4499_v30 = vld [vmem:[%s9471_s15 + $0x18] sm:$0xff]  ;;  %v4574_v32 = vld [vmem:[%s9472_s8] sm:$0xff]  ;;  %v4575_v35 = vld [vmem:[%s9472_s8 + $0x8] sm:$0xff] }
0x1859   : > { %7938 = vpow2.f32 %v4061_v31  ;;  %7427 = vmatprep.subr.mxu0 %v8059_v9 }
0x185a   : > { %v4063_v38 = vmul.f32 1.442695, %v4056_v37  ;;  %v4576_v37 = vld [vmem:[%s9472_s8 + $0x10] sm:$0xff] }
0x185c   : > { %7940 = vpow2.f32 %v4063_v38  ;;  %v7751_v38 = vpack.c.bf16 %v4575_v35, %v4574_v32 }
0x1862   : > { %v7937_v39 = vpop.eup %7936 }
0x1863   : > { %v7939_v41 = vpop.eup %7938  ;;  %v4068_v42 = vsel %vm745_vm2, %v7937_v39, 0.0 }
0x1864   : > { %4069 = vadd.xlane.f32.xlu0 %v4068_v42  ;;  %v4071_v43 = vsel %vm745_vm2, %v7939_v41, 0.0  ;;  %v4578_v42 = vld [vmem:[%s9472_s8 + $0x20] sm:$0xff] }
0x1865   : > { %4072 = vadd.xlane.f32.xlu1 %v4071_v43  ;;  %v4579_v43 = vld [vmem:[%s9472_s8 + $0x28] sm:$0xff] }
0x1866   : > { %v7941_v63 = vpop.eup %7940 }
0x1867   : > { %v4074_v44 = vsel %vm745_vm2, %v7941_v63, 0.0 }
0x1868   : > { %4075 = vadd.xlane.f32.xlu0 %v4074_v44 }
0x1876   : > { %4237 = vrot.lane.b32.xlu1 %v8816_v46, %s9452_s22 }
0x187a   : > { %4313 = vrot.lane.b32.xlu1 %v8816_v46, %s9455_s26 }
0x187e   : > { %4161 = vrot.lane.b32.xlu0 %v8816_v46, %s9450_s29 }
0x1888   : > { %v4067_v45 = vpop.xlane.xlu1 %4066 }
0x1889   : > { %7942 = vrcp.f32 %v4067_v45 }
0x1893   : > { %v7943_v48 = vpop.eup %7942 }
0x1894   : > { %v4081_v49 = vmul.f32 %v7943_v48, %v7935_v18 }
0x1896   : > { %7420 = vmatmul.mubr.msk.f32.vlgmr.msra.gmra.mrb[32].mxu0 %vm745_vm2, %v4081_v49 }
0x1897   : > { %7429 = vmatprep.mubr.msk.f32.mxu0 %vm8058_vm1, %v8059_v9 }
0x18f1   : > { %v4070_v50 = vpop.xlane.xlu0 %4069 }
0x18f2   : > { %v4073_v52 = vpop.xlane.xlu1 %4072  ;;  %7944 = vrcp.f32 %v4070_v50  ;;  %v6859_v50 = vld [vmem:[%s9360_s17 + $0x2] ss:$0 sm:$0xff] }
0x18f3   : > { %7946 = vrcp.f32 %v4073_v52 }
0x18f5   : > { %v4076_v53 = vpop.xlane.xlu0 %4075 }
0x18f6   : > { %v4238_v51 = vpop.permute.xlu1 %4237  ;;  %7948 = vrcp.f32 %v4076_v53 }
0x18f7   : > { %7428 = vmatpush3.msra.mxu0 %v4238_v51  ;;  %v4580_v51 = vld [vmem:[%s9472_s8 + $0x30] sm:$0xff] }
0x18f8   : > { %7738 = vmatprep.subr.bf16.mxu0 %v8057_v6 }
0x18f9   : > { %v4162_v46 = vpop.permute.xlu0 %4161 }
0x18fa   : > { %7423 = vmatpush3.msra.mxu1 %v4162_v46  ;;  %v4314_v58 = vpop.permute.xlu1 %4313  ;;  %v4581_v46 = vld [vmem:[%s9472_s8 + $0x38] sm:$0xff] }
0x18fb   : > { %7432 = vmatprep.subr.mxu1 %v8059_v9 }
0x18fc   : > { %v7945_v54 = vpop.eup %7944 }
0x18fd   : > { %v7947_v55 = vpop.eup %7946  ;;  %v4082_v56 = vmul.f32 %v7945_v54, %v7937_v39  ;;  %v4577_v39 = vld [vmem:[%s9472_s8 + $0x18] sm:$0xff]  ;;  %v7760_v54 = vpack.c.bf16 %v4581_v46, %v4580_v51 }
0x18fe   : > { %v4083_v57 = vmul.f32 %v7947_v55, %v7939_v41  ;;  %v7754_v41 = vpack.c.bf16 %v4577_v39, %v4576_v37 }
0x18ff   : > { %7425 = vmatmul.mubr.msk.f32.vlgmr.msra.gmra.mrb[48].mxu1 %vm745_vm2, %v4082_v56 }
0x1900   : > { %v7949_v0 = vpop.eup %7948  ;;  %7430 = vmatmul.mubr.msk.f32.vlgmr.msra.gmra.mrb[34].mxu0 %vm745_vm2, %v4083_v57  ;;  %7433 = vmatpush3.msra.mxu1 %v4314_v58 }
0x1901   : > { %v4084_v60 = vmul.f32 %v7949_v0, %v7941_v63  ;;  %7434 = vmatprep.mubr.msk.f32.mxu1 %vm8058_vm1, %v8059_v9  ;;  %7445 = vmatprep.mubr.msk.f32.mxu0 %vm8058_vm1, %v8059_v9  ;;  %v7757_v63 = vpack.c.bf16 %v4579_v43, %v4578_v42 }
0x1902   : > { %7744 = vmatprep.subr.bf16.mxu1 %v8057_v6  ;;  %7740 = vmatpush3.bf16.msra.mxu0 %v7739_v2  ;;  %v4670_v2 = vld [vmem:[%s9353_s10 + $0x20] sm:$0xff] }
0x1903   : > { %7435 = vmatmul.mubr.msk.f32.vlgmr.msra.gmra.mrb[50].mxu1 %vm745_vm2, %v4084_v60  ;;  %7741 = vmatprep.subr.bf16.mxu0 %v8057_v6 }
0x1904   : > { %7456 = vmatprep.mubr.msk.f32.mxu1 %vm8058_vm1, %v8059_v9  ;;  %7746 = vmatpush3.bf16.msra.mxu1 %v7745_v28 }
0x1905   : > { %7747 = vmatprep.subr.bf16.mxu1 %v8057_v6 }
0x1906   : > { %7743 = vmatpush3.bf16.msra.mxu0 %v7742_v23  ;;  %v7766_v23 = vpack.c.bf16 %v4673_v47, %v4672_v7 }
0x1907   : > { %7750 = vmatprep.subr.bf16.mxu0 %v8057_v6 }
0x1969   : > { %v4157_v34 = vpop.f32.mrb[32].mxu0 }
0x196a   : > { %v7421_v5 = vpop.f32.mrb[33].mxu0 }
0x19d2   : > { %v4233_v8 = vpop.f32.mrb[48].mxu1 }
0x19d3   : > { %v4309_v10 = vpop.f32.mrb[34].mxu0  ;;  %4390 = vrot.lane.b32.xlu0 %v4233_v8, %s9461_s19  ;;  %v7426_v12 = vpop.f32.mrb[49].mxu1 }
0x19d4   : > { %4394 = vrot.lane.b32.xlu1 %v4309_v10, %s9462_s16  ;;  %v7431_v13 = vpop.f32.mrb[35].mxu0 }
0x19d6   : > { %v4385_v14 = vpop.f32.mrb[50].mxu1 }
0x19d7   : > { %4398 = vrot.lane.b32.xlu0 %v4385_v14, %s9463_s14  ;;  %v7436_v15 = vpop.f32.mrb[51].mxu1  ;;  %v6862_v14 = vld [vmem:[%s9360_s17 + $0x3] ss:$0 sm:$0xff] }
0x1a45   : > { %v4391_v16 = vpop.permute.xlu0 %4390 }
0x1a46   : > { %v4401_v17 = vsel %vm745_vm2, %v4157_v34, %v4391_v16  ;;  %v4395_v19 = vpop.permute.xlu1 %4394  ;;  %v4671_v34 = vld [vmem:[%s9353_s10 + $0x28] sm:$0xff] }
0x1a47   : > { %v4402_v20 = vsel %vm1419_vm3, %v4401_v17, %v4395_v19  ;;  %v7763_v5 = vpack.c.bf16 %v4671_v34, %v4670_v2 }
0x1a49   : > { %v4399_v21 = vpop.permute.xlu0 %4398 }
0x1a4a   : > { %v4403_v22 = vsel %vm1421_vm4, %v4402_v20, %v4399_v21 }
0x1a4b   : > { %7446 = vmatmul.mubr.msk.f32.vlgmr.msra.gmra.mrb[36].mxu0 %vm640_vm0, %v4403_v22 }
0x1a4c   : > { %7475 = vmatprep.mubr.msk.f32.mxu0 %vm8058_vm1, %v8059_v9  ;;  %7752 = vmatpush3.bf16.msra.mxu0 %v7751_v38 }
0x1a4d   : > { %7753 = vmatprep.subr.bf16.mxu0 %v8057_v6 }
0x1a50   : > { %7755 = vmatpush3.bf16.msra.mxu0 %v7754_v41 }
0x1a51   : > { %7756 = vmatprep.subr.bf16.mxu0 %v8057_v6 }
0x1a54   : > { %7758 = vmatpush3.bf16.msra.mxu0 %v7757_v63 }
0x1a55   : > { %7759 = vmatprep.subr.bf16.mxu0 %v8057_v6 }
0x1a58   : > { %7761 = vmatpush3.bf16.msra.mxu0 %v7760_v54 }
0x1a59   : > { %7499 = vmatprep.subr.mxu0 %v8059_v9 }
0x1b1e   : > { %v4477_v3 = vpop.f32.mrb[36].mxu0 }
0x1b1f   : > { %v4481_v59 = vadd.f32 %v4477_v3, %v8797_v36  ;;  %v7447_v18 = vpop.f32.mrb[37].mxu0  ;;  %v4498_v36 = vld [vmem:[%s9471_s15 + $0x10] sm:$0xff] }
0x1b20   : > { %v7748_v31 = vpack.c.bf16 %v4499_v30, %v4498_v36 }
0x1b21   : > { %v4483_v24 = vmul.f32 %v4481_v59, %v4481_v59 }
0x1b22   : > { %7749 = vmatpush3.bf16.msra.mxu1 %v7748_v31 }
0x1b23   : > { %v4484_v25 = vsel %vm640_vm0, %v4483_v24, 0.0  ;;  %7762 = vmatprep.subr.bf16.mxu1 %v8057_v6 }
0x1b24   : > { %4485 = vadd.xlane.f32.xlu1 %v4484_v25 }
0x1bb1   : > { %v4486_v44 = vpop.xlane.xlu1 %4485 }
0x1bb2   : > { %v4487_v45 = vmul.f32 0.03125, %v4486_v44 }
0x1bb4   : > { %v4488_v48 = vadd.f32 1e-06, %v4487_v45 }
0x1bb6   : > { %7950 = vrsqrt.f32 %v4488_v48 }
0x1bc0   : > { %v7951_v49 = vpop.eup %7950 }
0x1bc1   : > { %v4490_v52 = vmul.f32 %v7951_v49, %v4481_v59 }
0x1bc3   : > { %v4495_v53 = vmul.f32 %v6859_v50, %v4490_v52 }
0x1bc5   : > { %7457 = vmatmul.mubr.msk.f32.vlgmr.msra.gmra.mrb[52].mxu1 %vm640_vm0, %v4495_v53 }
0x1bc6   : > { %7486 = vmatprep.mubr.msk.f32.mxu1 %vm8058_vm1, %v8059_v9  ;;  %7764 = vmatpush3.bf16.msra.mxu1 %v7763_v5 }
0x1bc7   : > { %7765 = vmatprep.subr.bf16.mxu1 %v8057_v6 }
0x1bca   : > { %7767 = vmatpush3.bf16.msra.mxu1 %v7766_v23 }
0x1bcb   : > { %7489 = vmatprep.subr.mxu1 %v8059_v9 }
0x1c98   : > { %v4569_v55 = vpop.f32.mrb[52].mxu1 }
0x1c99   : > { %v4573_v56 = vmax.f32 %v4569_v55, 0.0  ;;  %v7458_v57 = vpop.f32.mrb[53].mxu1 }
0x1c9b   : > { %7476 = vmatmul.mubr.msk.f32.vlgmr.msra.gmra.mrb[38].mxu0 %vm1601_vm5, %v4573_v56 }
0x1c9c   : > { %7501 = vmatprep.mubr.msk.f32.mxu0 %vm8058_vm1, %v8059_v9 }
0x1d6e   : > { %v4651_v58 = vpop.f32.mrb[38].mxu0 }
0x1d6f   : > { %v8970_v0 = vadd.f32 %v4651_v58, %v4481_v59  ;;  %v7477_v60 = vpop.f32.mrb[39].mxu0 }
0x1d71   : > { %v4657_v62 = vmul.f32 %v8970_v0, %v8970_v0 }
0x1d73   : > { %v4658_v1 = vsel %vm640_vm0, %v4657_v62, 0.0 }
0x1d74   : > { %4659 = vadd.xlane.f32.xlu0 %v4658_v1 }
0x1e01   : > { %v4660_v8 = vpop.xlane.xlu0 %4659 }
0x1e02   : > { %v4661_v10 = vmul.f32 0.03125, %v4660_v8 }
0x1e04   : > { %v4662_v12 = vadd.f32 1e-06, %v4661_v10 }
0x1e06   : > { %7952 = vrsqrt.f32 %v4662_v12 }
0x1e10   : > { %v7953_v13 = vpop.eup %7952 }
0x1e11   : > { %v4664_v15 = vmul.f32 %v7953_v13, %v8970_v0 }
0x1e13   : > { %v4669_v16 = vmul.f32 %v6862_v14, %v4664_v15 }
0x1e15   : > { %7487 = vmatmul.mubr.msk.f32.vlgmr.msra.gmra.mrb[54].mxu1 %vm640_vm0, %v4669_v16 }
0x1e16   : > { %7491 = vmatprep.mubr.msk.f32.mxu1 %vm8058_vm1, %v8059_v9 }
0x1ee8   : > { %v8996_v17 = vpop.f32.mrb[54].mxu1 }
0x1ee9   : > { %4826 = vrot.lane.b32.xlu1 %v8996_v17, %s9450_s29  ;;  %4748 = vrot.lane.b32.xlu0 %v8996_v17, %s9451_s24  ;;  %v7488_v19 = vpop.f32.mrb[55].mxu1 }
0x1eed   : > { %4824 = vrot.lane.b32.xlu1 %v8996_v17, %s9453_s20  ;;  %4904 = vrot.lane.b32.xlu0 %v8996_v17, %s9452_s22 }
0x1ef1   : > { %4982 = vrot.lane.b32.xlu1 %v8996_v17, %s9455_s26  ;;  %4902 = vrot.lane.b32.xlu0 %v8996_v17, %s9454_s21 }
0x1ef5   : > { %4980 = vrot.lane.b32.xlu1 %v8996_v17, %s9456_s28 }
0x1f5b   : > { %v4827_v20 = vpop.permute.xlu1 %4826  ;;  %v4749_v21 = vpop.permute.xlu0 %4748 }
0x1f5c   : > { %7490 = vmatpush3.xpose.msk.msra.mxu1 %vm745_vm2, %v4749_v21  ;;  %v5426_v21 = vld [vmem:[%s9354_s11 + $0x28] sm:$0xff] }
0x1f5d   : > { %7494 = vmatprep.subr.mxu1 %v8059_v9 }
0x1f5f   : > { %v4825_v22 = vpop.permute.xlu1 %4824  ;;  %7492 = vmatmul.mubr.msk.f32.vlgmr.msra.gmra.mrb[56].mxu1 %vm745_vm2, %v8996_v17  ;;  %v4905_v3 = vpop.permute.xlu0 %4904 }
0x1f60   : > { %7495 = vmatpush3.xpose.msk.msra.mxu1 %vm745_vm2, %v4827_v20  ;;  %7500 = vmatpush3.xpose.msk.msra.mxu0 %vm745_vm2, %v4905_v3  ;;  %v5425_v20 = vld [vmem:[%s9354_s11 + $0x20] sm:$0xff]  ;;  %v5427_v3 = vld [vmem:[%s9354_s11 + $0x30] sm:$0xff] }
0x1f61   : > { %7496 = vmatprep.mubr.msk.f32.mxu1 %vm8058_vm1, %v8059_v9  ;;  %7504 = vmatprep.subr.mxu1 %v8059_v9 }
0x1f62   : > { %7509 = vmatprep.subr.mxu0 %v8059_v9 }
0x1f63   : > { %v4983_v59 = vpop.permute.xlu1 %4982  ;;  %7497 = vmatmul.mubr.msk.f32.vlgmr.msra.gmra.mrb[58].mxu1 %vm745_vm2, %v4825_v22  ;;  %v4903_v18 = vpop.permute.xlu0 %4902  ;;  %v7769_v22 = vpack.c.bf16 %v5426_v21, %v5425_v20 }
0x1f64   : > { %7502 = vmatmul.mubr.msk.f32.vlgmr.msra.gmra.mrb[40].mxu0 %vm745_vm2, %v4903_v18  ;;  %7505 = vmatpush3.xpose.msk.msra.mxu1 %vm745_vm2, %v4983_v59  ;;  %v5428_v59 = vld [vmem:[%s9354_s11 + $0x38] sm:$0xff] }
0x1f65   : > { %7506 = vmatprep.mubr.msk.f32.mxu1 %vm8058_vm1, %v8059_v9  ;;  %7511 = vmatprep.mubr.msk.f32.mxu0 %vm8058_vm1, %v8059_v9  ;;  %v7772_v18 = vpack.c.bf16 %v5428_v59, %v5427_v3 }
0x1f66   : > { %7514 = vmatprep.subr.mxu1 %v8059_v9 }
0x1f67   : > { %v4981_v24 = vpop.permute.xlu1 %4980 }
0x1f68   : > { %7507 = vmatmul.mubr.msk.f32.vlgmr.msra.gmra.mrb[60].mxu1 %vm745_vm2, %v4981_v24 }
0x1f69   : > { %7516 = vmatprep.mubr.msk.f32.mxu1 %vm8058_vm1, %v8059_v9 }
0x2032   : > { %v4820_v25 = vpop.f32.mrb[56].mxu1 }
0x2033   : > { %v5058_v26 = vadd.f32 %v4820_v25, %v8694_v61  ;;  %v7493_v27 = vpop.f32.mrb[57].mxu1 }
0x2035   : > { %v5062_v28 = vsel %vm745_vm2, %v5058_v26, -inf }
0x2036   : > { %5063 = vmax.xlane.f32.xlu0 %v5062_v28  ;;  %v4898_v36 = vpop.f32.mrb[58].mxu1 }
0x2037   : > { %v5059_v30 = vadd.f32 %v4898_v36, %v8700_v29  ;;  %v7498_v31 = vpop.f32.mrb[59].mxu1  ;;  %v4976_v32 = vpop.f32.mrb[40].mxu0 }
0x2038   : > { %v5060_v35 = vadd.f32 %v4976_v32, %v8706_v4  ;;  %v7503_v37 = vpop.f32.mrb[41].mxu0 }
0x2039   : > { %v5065_v38 = vsel %vm745_vm2, %v5059_v30, -inf  ;;  %v5595_v37 = vld [vmem:[%s9467_s1 + $0x28] sm:$0xff] }
0x203a   : > { %5066 = vmax.xlane.f32.xlu1 %v5065_v38  ;;  %v5068_v39 = vsel %vm745_vm2, %v5060_v35, -inf }
0x203b   : > { %v5054_v41 = vpop.f32.mrb[60].mxu1  ;;  %5069 = vmax.xlane.f32.xlu0 %v5068_v39 }
0x203c   : > { %v5061_v61 = vadd.f32 %v5054_v41, %v8714_v11  ;;  %v7508_v42 = vpop.f32.mrb[61].mxu1 }
0x203e   : > { %v5071_v43 = vsel %vm745_vm2, %v5061_v61, -inf }
0x203f   : > { %5072 = vmax.xlane.f32.xlu0 %v5071_v43  ;;  %v5596_v43 = vld [vmem:[%s9467_s1 + $0x30] sm:$0xff] }
0x204b   : > { %5106 = vrot.lane.b32.xlu1 %v8996_v17, %s9458_s2  ;;  %s9474_s2 = sld [smem:[#allocation30_spill]] }
0x20c3   : > { %v5064_v29 = vpop.xlane.xlu0 %5063 }
0x20c4   : > { %v5074_v63 = vsub.f32 %v5058_v26, %v5064_v29  ;;  %v5597_v29 = vld [vmem:[%s9467_s1 + $0x38] sm:$0xff] }
0x20c6   : > { %v5078_v4 = vmul.f32 1.442695, %v5074_v63 }
0x20c7   : > { %v5067_v44 = vpop.xlane.xlu1 %5066 }
0x20c8   : > { %7954 = vpow2.f32 %v5078_v4  ;;  %v5075_v45 = vsub.f32 %v5059_v30, %v5067_v44  ;;  %v5070_v48 = vpop.xlane.xlu0 %5069  ;;  %v7784_v4 = vpack.c.bf16 %v5597_v29, %v5596_v43 }
0x20c9   : > { %v5076_v49 = vsub.f32 %v5060_v35, %v5070_v48  ;;  %v5594_v35 = vld [vmem:[%s9467_s1 + $0x20] sm:$0xff] }
0x20ca   : > { %v5080_v50 = vmul.f32 1.442695, %v5075_v45  ;;  %v7781_v41 = vpack.c.bf16 %v5595_v37, %v5594_v35 }
0x20cb   : > { %v5082_v52 = vmul.f32 1.442695, %v5076_v49  ;;  %v5107_v53 = vpop.permute.xlu1 %5106 }
0x20cc   : > { %7956 = vpow2.f32 %v5080_v50  ;;  %7510 = vmatpush3.msra.mxu0 %v5107_v53  ;;  %v5073_v11 = vpop.xlane.xlu0 %5072  ;;  %v5518_v53 = vld [vmem:[%s9468_s23 + $0x28] sm:$0xff] }
0x20cd   : > { %7958 = vpow2.f32 %v5082_v52  ;;  %v5077_v51 = vsub.f32 %v5061_v61, %v5073_v11  ;;  %7519 = vmatprep.subr.mxu0 %v8059_v9 }
0x20cf   : > { %v5084_v46 = vmul.f32 1.442695, %v5077_v51  ;;  %v5519_v51 = vld [vmem:[%s9468_s23 + $0x30] sm:$0xff] }
0x20d1   : > { %7960 = vpow2.f32 %v5084_v46  ;;  %v5520_v46 = vld [vmem:[%s9468_s23 + $0x38] sm:$0xff] }
0x20d2   : > { %v7955_v54 = vpop.eup %7954 }
0x20d3   : > { %v5086_v55 = vsel %vm745_vm2, %v7955_v54, 0.0 }
0x20d4   : > { %5087 = vadd.xlane.f32.xlu1 %v5086_v55 }
0x20d6   : > { %v7957_v56 = vpop.eup %7956 }
0x20d7   : > { %v7959_v57 = vpop.eup %7958  ;;  %v5089_v58 = vsel %vm745_vm2, %v7957_v56, 0.0 }
0x20d8   : > { %5090 = vadd.xlane.f32.xlu0 %v5089_v58  ;;  %v5092_v60 = vsel %vm745_vm2, %v7959_v57, 0.0 }
0x20d9   : > { %5093 = vadd.xlane.f32.xlu1 %v5092_v60 }
0x20db   : > { %v7961_v62 = vpop.eup %7960 }
0x20dc   : > { %v5095_v1 = vsel %vm745_vm2, %v7961_v62, 0.0 }
0x20dd   : > { %5096 = vadd.xlane.f32.xlu0 %v5095_v1  ;;  %v6877_v1 = vld [vmem:[%s9360_s17 + $0x4] ss:$0 sm:$0xff] }
0x20ea   : > { %5258 = vrot.lane.b32.xlu1 %v8996_v17, %s9459_s0  ;;  %s8074_s0 = smov [#allocation2]  }
0x20eb   : > { %s7997_s6 = sshll.u32 %s8074_s0, 4  ;;  %s7998_s6 = int_to_ptr.vmem [resolvable:$false] %s7997_s6 }
0x20ee   : > { %5334 = vrot.lane.b32.xlu1 %v8996_v17, %s9460_s5 }
0x20f3   : > { %5182 = vrot.lane.b32.xlu0 %v8996_v17, %s9457_s25 }
0x2161   : > { %v5088_v2 = vpop.xlane.xlu1 %5087 }
0x2162   : > { %7962 = vrcp.f32 %v5088_v2 }
0x2165   : > { %v5091_v34 = vpop.xlane.xlu0 %5090 }
0x2166   : > { %7964 = vrcp.f32 %v5091_v34  ;;  %v5094_v5 = vpop.xlane.xlu1 %5093 }
0x2167   : > { %7966 = vrcp.f32 %v5094_v5 }
0x216a   : > { %v5097_v7 = vpop.xlane.xlu0 %5096  ;;  %v5259_v8 = vpop.permute.xlu1 %5258 }
0x216b   : > { %7968 = vrcp.f32 %v5097_v7 }
0x216c   : > { %v7963_v47 = vpop.eup %7962 }
0x216d   : > { %v5102_v23 = vmul.f32 %v7963_v47, %v7955_v54  ;;  %v7778_v54 = vpack.c.bf16 %v5520_v46, %v5519_v51 }
0x216e   : > { %v5183_v10 = vpop.permute.xlu0 %5182  ;;  %v5335_v16 = vpop.permute.xlu1 %5334 }
0x216f   : > { %7512 = vmatmul.mubr.msk.f32.vlgmr.msra.gmra.mrb[42].mxu0 %vm745_vm2, %v5102_v23  ;;  %7515 = vmatpush3.msra.mxu1 %v5183_v10 }
0x2170   : > { %v7965_v12 = vpop.eup %7964  ;;  %7520 = vmatpush3.msra.mxu0 %v5259_v8  ;;  %7524 = vmatprep.subr.mxu1 %v8059_v9 }
0x2171   : > { %v7967_v13 = vpop.eup %7966  ;;  %v5103_v14 = vmul.f32 %v7965_v12, %v7957_v56  ;;  %7521 = vmatprep.mubr.msk.f32.mxu0 %vm8058_vm1, %v8059_v9  ;;  %7768 = vmatprep.subr.bf16.mxu0 %v8057_v6 }
0x2172   : > { %v5104_v15 = vmul.f32 %v7967_v13, %v7959_v57 }
0x2173   : > { %7517 = vmatmul.mubr.msk.f32.vlgmr.msra.gmra.mrb[62].mxu1 %vm745_vm2, %v5103_v14 }
0x2174   : > { %7525 = vmatpush3.msra.mxu1 %v5335_v16  ;;  %7522 = vmatmul.mubr.msk.f32.vlgmr.msra.gmra.mrb[44].mxu0 %vm745_vm2, %v5104_v15 }
0x2175   : > { %v7969_v17 = vpop.eup %7968  ;;  %7526 = vmatprep.mubr.msk.f32.mxu1 %vm8058_vm1, %v8059_v9  ;;  %7537 = vmatprep.mubr.msk.f32.mxu0 %vm8058_vm1, %v8059_v9 }
0x2176   : > { %v5105_v19 = vmul.f32 %v7969_v17, %v7961_v62  ;;  %7774 = vmatprep.subr.bf16.mxu1 %v8057_v6  ;;  %7770 = vmatpush3.bf16.msra.mxu0 %v7769_v22 }
0x2177   : > { %7771 = vmatprep.subr.bf16.mxu0 %v8057_v6 }
0x2178   : > { %7527 = vmatmul.mubr.msk.f32.vlgmr.msra.gmra.mrb[64].mxu1 %vm745_vm2, %v5105_v19 }
0x2179   : > { %7548 = vmatprep.mubr.msk.f32.mxu1 %vm8058_vm1, %v8059_v9 }
0x217a   : > { %7773 = vmatpush3.bf16.msra.mxu0 %v7772_v18 }
0x217b   : > { %7780 = vmatprep.subr.bf16.mxu0 %v8057_v6 }
0x2242   : > { %v5178_v24 = vpop.f32.mrb[42].mxu0 }
0x2243   : > { %v7513_v25 = vpop.f32.mrb[43].mxu0 }
0x2246   : > { %v5254_v26 = vpop.f32.mrb[62].mxu1 }
0x2247   : > { %5411 = vrot.lane.b32.xlu0 %v5254_v26, %s9461_s19  ;;  %v7518_v27 = vpop.f32.mrb[63].mxu1  ;;  %v5330_v28 = vpop.f32.mrb[44].mxu0 }
0x2248   : > { %5415 = vrot.lane.b32.xlu1 %v5330_v28, %s9462_s16  ;;  %v7523_v36 = vpop.f32.mrb[45].mxu0 }
0x224b   : > { %v5406_v30 = vpop.f32.mrb[64].mxu1 }
0x224c   : > { %5419 = vrot.lane.b32.xlu0 %v5406_v30, %s9463_s14  ;;  %v7528_v31 = vpop.f32.mrb[65].mxu1 }
0x22b9   : > { %v5412_v32 = vpop.permute.xlu0 %5411 }
0x22ba   : > { %v5422_v38 = vsel %vm745_vm2, %v5178_v24, %v5412_v32  ;;  %v5416_v39 = vpop.permute.xlu1 %5415 }
0x22bb   : > { %v5423_v61 = vsel %vm1419_vm3, %v5422_v38, %v5416_v39 }
0x22be   : > { %v5420_v42 = vpop.permute.xlu0 %5419 }
0x22bf   : > { %v5424_v63 = vsel %vm1421_vm4, %v5423_v61, %v5420_v42 }
0x22c0   : > { %7538 = vmatmul.mubr.msk.f32.vlgmr.msra.gmra.mrb[46].mxu0 %vm640_vm0, %v5424_v63 }
0x22c1   : > { %7782 = vmatpush3.bf16.msra.mxu0 %v7781_v41  ;;  %7559 = vmatprep.mubr.msk.f32.mxu0 %vm8058_vm1, %v8059_v9 }
0x22c2   : > { %7783 = vmatprep.subr.bf16.mxu0 %v8057_v6 }
0x22c5   : > { %7785 = vmatpush3.bf16.msra.mxu0 %v7784_v4 }
0x22c6   : > { %7572 = vmatprep.subr.mxu0 %v8059_v9 }
0x22c8   : > { %7560 = vmatmul.mubr.msk.f32.vlgmr.msra.gmra.mrb[48].mxu0 %vm640_vm0, %v8790_v33 }
0x22c9   : > { %7574 = vmatprep.mubr.msk.f32.mxu0 %vm8058_vm1, %v8059_v9 }
0x2393   : > { %v5498_v44 = vpop.f32.mrb[46].mxu0 }
0x2394   : > { %v9111_v45 = vadd.f32 %v5498_v44, %v8970_v0  ;;  %v7539_v48 = vpop.f32.mrb[47].mxu0  ;;  %v5517_v0 = vld [vmem:[%s9468_s23 + $0x20] sm:$0xff] }
0x2395   : > { %v7775_v11 = vpack.c.bf16 %v5518_v53, %v5517_v0 }
0x2396   : > { %v5504_v49 = vmul.f32 %v9111_v45, %v9111_v45 }
0x2397   : > { %7776 = vmatpush3.bf16.msra.mxu1 %v7775_v11 }
0x2398   : > { %v5505_v50 = vsel %vm640_vm0, %v5504_v49, 0.0  ;;  %7777 = vmatprep.subr.bf16.mxu1 %v8057_v6 }
0x2399   : > { %5506 = vadd.xlane.f32.xlu1 %v5505_v50 }
0x239b   : > { %v9116_v52 = vpop.f32.mrb[48].mxu0  ;;  %7779 = vmatpush3.bf16.msra.mxu1 %v7778_v54 }
0x239c   : > { %5746 = vrot.lane.b32.xlu0 %v9116_v52, %s9453_s20  ;;  %v7561_v33 = vpop.f32.mrb[49].mxu0  ;;  %7562 = vmatprep.subr.mxu1 %v8059_v9 }
0x23a0   : > { %5824 = vrot.lane.b32.xlu0 %v9116_v52, %s9454_s21 }
0x23a4   : > { %5902 = vrot.lane.b32.xlu0 %v9116_v52, %s9456_s28 }
0x240e   : > { %v5747_v55 = vpop.permute.xlu0 %5746 }
0x2412   : > { %v5825_v56 = vpop.permute.xlu0 %5824 }
0x2413   : > { %7573 = vmatpush3.xpose.msk.msra.mxu0 %vm745_vm2, %v5825_v56 }
0x2414   : > { %7582 = vmatprep.subr.mxu0 %v8059_v9 }
0x2416   : > { %v5903_v47 = vpop.permute.xlu0 %5902 }
0x2426   : > { %v5507_v57 = vpop.xlane.xlu1 %5506 }
0x2427   : > { %v5508_v58 = vmul.f32 0.03125, %v5507_v57 }
0x2429   : > { %v5509_v60 = vadd.f32 1e-06, %v5508_v58 }
0x242b   : > { %7970 = vrsqrt.f32 %v5509_v60 }
0x2435   : > { %v7971_v62 = vpop.eup %7970 }
0x2436   : > { %v5511_v2 = vmul.f32 %v7971_v62, %v9111_v45 }
0x2438   : > { %v5516_v34 = vmul.f32 %v6877_v1, %v5511_v2 }
0x243a   : > { %7549 = vmatmul.mubr.msk.f32.vlgmr.msra.gmra.mrb[66].mxu1 %vm640_vm0, %v5516_v34 }
0x243b   : > { %7563 = vmatpush3.xpose.msk.msra.mxu1 %vm745_vm2, %v9116_v52  ;;  %7564 = vmatprep.mubr.msk.f32.mxu1 %vm8058_vm1, %v8059_v9 }
0x243c   : > { %7567 = vmatprep.subr.mxu1 %v8059_v9 }
0x250d   : > { %v5590_v5 = vpop.f32.mrb[66].mxu1 }
0x250e   : > { %v7550_v7 = vpop.f32.mrb[67].mxu1  ;;  %5744 = vrot.lane.b32.xlu0 %v5590_v5, %s9453_s20  ;;  %7565 = vmatmul.mubr.msk.f32.vlgmr.msra.gmra.mrb[68].mxu1 %vm745_vm2, %v5590_v5  ;;  %s615_s20 = sand.u32 1, %s9475_s3   ;;  %s7999_s3 = scalar_lea.vmem %s7998_s6, 256 }
0x250f   : > { %7568 = vmatpush3.xpose.msk.msra.mxu1 %vm745_vm2, %v5747_v55  ;;  %7569 = vmatprep.mubr.msk.f32.mxu1 %vm8058_vm1, %v8059_v9  ;;  %s6690_s5 = scalar_lea.sflag [#allocation3], %s615_s20 }
0x2510   : > { %7577 = vmatprep.subr.mxu1 %v8059_v9 }
0x2512   : > { %5822 = vrot.lane.b32.xlu0 %v5590_v5, %s9454_s21  ;;  %s6787_s21 = sshll.u32 %s615_s20, 3 }
0x2516   : > { %5900 = vrot.lane.b32.xlu0 %v5590_v5, %s9456_s28 }
0x2580   : > { %v5745_v23 = vpop.permute.xlu0 %5744 }
0x2581   : > { %7570 = vmatmul.mubr.msk.f32.vlgmr.msra.gmra.mrb[70].mxu1 %vm745_vm2, %v5745_v23 }
0x2582   : > { %7578 = vmatpush3.xpose.msk.msra.mxu1 %vm745_vm2, %v5903_v47  ;;  %7579 = vmatprep.mubr.msk.f32.mxu1 %vm8058_vm1, %v8059_v9 }
0x2583   : > { %7587 = vmatprep.subr.mxu1 %v8059_v9 }
0x2584   : > { %v5823_v8 = vpop.permute.xlu0 %5822 }
0x2585   : > { %7575 = vmatmul.mubr.msk.f32.vlgmr.msra.gmra.mrb[50].mxu0 %vm745_vm2, %v5823_v8 }
0x2586   : > { %7584 = vmatprep.mubr.msk.f32.mxu0 %vm8058_vm1, %v8059_v9 }
0x2588   : > { %v5901_v10 = vpop.permute.xlu0 %5900 }
0x2589   : > { %7580 = vmatmul.mubr.msk.f32.vlgmr.msra.gmra.mrb[72].mxu1 %vm745_vm2, %v5901_v10 }
0x258a   : > { %7589 = vmatprep.mubr.msk.f32.mxu1 %vm8058_vm1, %v8059_v9 }
0x25e1   : > { %v5740_v12 = vpop.f32.mrb[68].mxu1 }
0x25e2   : > { %v5978_v13 = vadd.f32 %v8856_v40, %v5740_v12  ;;  %v7566_v14 = vpop.f32.mrb[69].mxu1 }
0x25e4   : > { %v5982_v15 = vsel %vm745_vm2, %v5978_v13, -inf }
0x25e5   : > { %5983 = vmax.xlane.f32.xlu0 %v5982_v15 }
0x2654   : > { %v5818_v16 = vpop.f32.mrb[70].mxu1 }
0x2655   : > { %v5979_v17 = vadd.f32 %v8856_v40, %v5818_v16  ;;  %v7571_v19 = vpop.f32.mrb[71].mxu1 }
0x2657   : > { %v5985_v20 = vsel %vm745_vm2, %v5979_v17, -inf }
0x2658   : > { %5986 = vmax.xlane.f32.xlu1 %v5985_v20  ;;  %v5896_v21 = vpop.f32.mrb[50].mxu0 }
0x2659   : > { %v5980_v22 = vadd.f32 %v8856_v40, %v5896_v21  ;;  %v7576_v3 = vpop.f32.mrb[51].mxu0 }
0x265b   : > { %v5988_v59 = vsel %vm745_vm2, %v5980_v22, -inf }
0x265c   : > { %v5974_v18 = vpop.f32.mrb[72].mxu1  ;;  %5989 = vmax.xlane.f32.xlu1 %v5988_v59 }
0x265d   : > { %v5981_v24 = vadd.f32 %v8856_v40, %v5974_v18  ;;  %v7581_v25 = vpop.f32.mrb[73].mxu1 }
0x265f   : > { %v5991_v26 = vsel %vm745_vm2, %v5981_v24, -inf }
0x2660   : > { %5992 = vmax.xlane.f32.xlu1 %v5991_v26 }
0x2671   : > { %6026 = vrot.lane.b32.xlu1 %v9116_v52, %s9451_s24 }
0x2672   : > { %v5984_v27 = vpop.xlane.xlu0 %5983 }
0x2673   : > { %v5994_v28 = vsub.f32 %v5978_v13, %v5984_v27  ;;  %v6437_v27 = vld [vmem:[%s9471_s15 + $0x20] sm:$0xff] }
0x2675   : > { %v5998_v36 = vmul.f32 1.442695, %v5994_v28  ;;  %v6438_v28 = vld [vmem:[%s9471_s15 + $0x28] sm:$0xff] }
0x2677   : > { %7972 = vpow2.f32 %v5998_v36  ;;  %v7793_v36 = vpack.c.bf16 %v6438_v28, %v6437_v27 }
0x2681   : > { %v7973_v30 = vpop.eup %7972 }
0x2682   : > { %v6006_v31 = vsel %vm745_vm2, %v7973_v30, 0.0 }
0x2695   : > { %6007 = vadd.xlane.f32.xlu1 %v6006_v31 }
0x26e5   : > { %v5987_v32 = vpop.xlane.xlu1 %5986 }
0x26e6   : > { %v5995_v35 = vsub.f32 %v5979_v17, %v5987_v32  ;;  %v6515_v32 = vld [vmem:[%s9472_s8 + $0x40] sm:$0xff] }
0x26e8   : > { %v6000_v37 = vmul.f32 1.442695, %v5995_v35  ;;  %v6516_v35 = vld [vmem:[%s9472_s8 + $0x48] sm:$0xff] }
0x26e9   : > { %v5990_v38 = vpop.xlane.xlu1 %5989 }
0x26ea   : > { %7974 = vpow2.f32 %v6000_v37  ;;  %v5996_v40 = vsub.f32 %v5980_v22, %v5990_v38  ;;  %v6517_v37 = vld [vmem:[%s9472_s8 + $0x50] sm:$0xff]  ;;  %v7799_v38 = vpack.c.bf16 %v6516_v35, %v6515_v32 }
0x26ec   : > { %v6002_v39 = vmul.f32 1.442695, %v5996_v40  ;;  %v6518_v40 = vld [vmem:[%s9472_s8 + $0x58] sm:$0xff] }
0x26ed   : > { %v5993_v41 = vpop.xlane.xlu1 %5992 }
0x26ee   : > { %7976 = vpow2.f32 %v6002_v39  ;;  %v5997_v61 = vsub.f32 %v5981_v24, %v5993_v41  ;;  %v7802_v39 = vpack.c.bf16 %v6518_v40, %v6517_v37  ;;  %v6519_v41 = vld [vmem:[%s9472_s8 + $0x60] sm:$0xff] }
0x26f0   : > { %v6004_v42 = vmul.f32 1.442695, %v5997_v61  ;;  %v6520_v61 = vld [vmem:[%s9472_s8 + $0x68] sm:$0xff] }
0x26f1   : > { %v6027_v43 = vpop.permute.xlu1 %6026 }
0x26f2   : > { %7978 = vpow2.f32 %v6004_v42  ;;  %7583 = vmatpush3.msra.mxu0 %v6027_v43  ;;  %v7805_v42 = vpack.c.bf16 %v6520_v61, %v6519_v41 }
0x26f3   : > { %7592 = vmatprep.subr.mxu0 %v8059_v9 }
0x26f4   : > { %v7975_v29 = vpop.eup %7974 }
0x26f5   : > { %v6009_v63 = vsel %vm745_vm2, %v7975_v29, 0.0 }
0x26f6   : > { %6010 = vadd.xlane.f32.xlu1 %v6009_v63 }
0x26f8   : > { %v7977_v4 = vpop.eup %7976 }
0x26f9   : > { %v6012_v44 = vsel %vm745_vm2, %v7977_v4, 0.0 }
0x26fa   : > { %6013 = vadd.xlane.f32.xlu1 %v6012_v44  ;;  %v6893_v44 = vld [vmem:[%s9360_s17 + $0x5] ss:$0 sm:$0xff] }
0x26fc   : > { %v7979_v48 = vpop.eup %7978 }
0x26fd   : > { %v6015_v49 = vsel %vm745_vm2, %v7979_v48, 0.0 }
0x26fe   : > { %6016 = vadd.xlane.f32.xlu0 %v6015_v49 }
0x270b   : > { %6178 = vrot.lane.b32.xlu1 %v9116_v52, %s9452_s22  ;;  %s9473_s22 = sld [smem:[#allocation27_spill]] }
0x270f   : > { %6254 = vrot.lane.b32.xlu1 %v9116_v52, %s9455_s26  ;;  %s617_s26 = scalar_lea.vmem [#allocation2], %s6787_s21 }
0x2710   : > { %s6703_s28 = sshll.u32 %s617_s26, 4  ;;  %s9298_s28 = int_to_ptr.vmem [resolvable:$true] %s6703_s28 }
0x2711   : > { %v6345_v34 = vld [vmem:[%s9473_s22 + $0x20] sm:$0xff]  ;;  %v6346_v5 = vld [vmem:[%s9473_s22 + $0x28] sm:$0xff]  ;;  %v6347_v47 = vld [vmem:[%s9473_s22 + $0x30] sm:$0xff]  ;;  %s7993_s25 = scalar_lea.vmem %s9298_s28, 128  ;;  %p8000_p0 = scmp.lt.s32.totalorder %s9298_s28, %s7998_s6 }
0x2712   : > { %v7787_v7 = vpack.c.bf16 %v6346_v5, %v6345_v34  ;;  %v6348_v23 = vld [vmem:[%s9473_s22 + $0x38] sm:$0xff]  ;;  %p7994_p11 = scmp.ne.s32.totalorder %s9298_s28, %s7993_s25  ;;  %p8001_p1 = scmp.lt.s32.totalorder %s7999_s3, %s7993_s25 }
0x2713   : > { %v7790_v8 = vpack.c.bf16 %v6348_v23, %v6347_v47 }
0x2714   : > { %6102 = vrot.lane.b32.xlu0 %v9116_v52, %s9450_s29  ;;  %p7995_p12 = pnand %p7994_p11, %p8213_p5  ;;  %p8002_p2 = por %p8001_p1, %p8000_p0 }
0x2716   : > { %p7996_p13 = pneg %p7995_p12 }
0x2718   : > { %p8003_p3 = pnand %p8002_p2, %p7996_p13 }
0x2722   : > { %v6008_v50 = vpop.xlane.xlu1 %6007 }
0x2723   : > { %7980 = vrcp.f32 %v6008_v50  ;;  %v6521_v50 = vld [vmem:[%s9472_s8 + $0x70] sm:$0xff] }
0x272d   : > { %v7981_v33 = vpop.eup %7980 }
0x272e   : > { %v6022_v0 = vmul.f32 %v7981_v33, %v7973_v30  ;;  %v6440_v30 = vld [vmem:[%s9471_s15 + $0x38] sm:$0xff] }
0x272f   : > { %v6522_v33 = vld [vmem:[%s9472_s8 + $0x78] sm:$0xff] }
0x2730   : > { %7585 = vmatmul.mubr.msk.f32.vlgmr.msra.gmra.mrb[52].mxu0 %vm745_vm2, %v6022_v0  ;;  %v7808_v0 = vpack.c.bf16 %v6522_v33, %v6521_v50 }
0x2731   : > { %7594 = vmatprep.mubr.msk.f32.mxu0 %vm8058_vm1, %v8059_v9 }
0x2783   : > { %v6011_v53 = vpop.xlane.xlu1 %6010 }
0x2784   : > { %7982 = vrcp.f32 %v6011_v53 }
0x2787   : > { %v6014_v11 = vpop.xlane.xlu1 %6013 }
0x2788   : > { %7984 = vrcp.f32 %v6014_v11 }
0x278b   : > { %v6017_v51 = vpop.xlane.xlu0 %6016  ;;  %v6179_v46 = vpop.permute.xlu1 %6178 }
0x278c   : > { %7986 = vrcp.f32 %v6017_v51  ;;  %7593 = vmatpush3.msra.mxu0 %v6179_v46 }
0x278d   : > { %7786 = vmatprep.subr.bf16.mxu0 %v8057_v6 }
0x278e   : > { %v7983_v52 = vpop.eup %7982 }
0x278f   : > { %v6023_v54 = vmul.f32 %v7983_v52, %v7975_v29  ;;  %v6103_v55 = vpop.permute.xlu0 %6102  ;;  %v6255_v56 = vpop.permute.xlu1 %6254 }
0x2790   : > { %7588 = vmatpush3.msra.mxu1 %v6103_v55 }
0x2791   : > { %7590 = vmatmul.mubr.msk.f32.vlgmr.msra.gmra.mrb[74].mxu1 %vm745_vm2, %v6023_v54  ;;  %7597 = vmatprep.subr.mxu1 %v8059_v9 }
0x2792   : > { %v7985_v57 = vpop.eup %7984  ;;  %7598 = vmatpush3.msra.mxu1 %v6255_v56  ;;  %7599 = vmatprep.mubr.msk.f32.mxu1 %vm8058_vm1, %v8059_v9  ;;  %v6611_v56 = vld [vmem:[%s9474_s2] sm:$0xff] }
0x2793   : > { %v6024_v58 = vmul.f32 %v7985_v57, %v7977_v4  ;;  %7792 = vmatprep.subr.bf16.mxu1 %v8057_v6  ;;  %v6612_v57 = vld [vmem:[%s9474_s2 + $0x8] sm:$0xff] }
0x2795   : > { %7595 = vmatmul.mubr.msk.f32.vlgmr.msra.gmra.mrb[54].mxu0 %vm745_vm2, %v6024_v58  ;;  %v7811_v58 = vpack.c.bf16 %v6612_v57, %v6611_v56 }
0x2796   : > { %v7987_v60 = vpop.eup %7986  ;;  %7610 = vmatprep.mubr.msk.f32.mxu0 %vm8058_vm1, %v8059_v9  ;;  %7788 = vmatpush3.bf16.msra.mxu0 %v7787_v7 }
0x2797   : > { %v6025_v62 = vmul.f32 %v7987_v60, %v7979_v48  ;;  %7789 = vmatprep.subr.bf16.mxu0 %v8057_v6  ;;  %v6613_v60 = vld [vmem:[%s9474_s2 + $0x10] sm:$0xff] }
0x2799   : > { %7600 = vmatmul.mubr.msk.f32.vlgmr.msra.gmra.mrb[76].mxu1 %vm745_vm2, %v6025_v62  ;;  %v6614_v62 = vld [vmem:[%s9474_s2 + $0x18] sm:$0xff] }
0x279a   : > { %7621 = vmatprep.mubr.msk.f32.mxu1 %vm8058_vm1, %v8059_v9  ;;  %7791 = vmatpush3.bf16.msra.mxu0 %v7790_v8 }
0x279b   : > { %7798 = vmatprep.subr.bf16.mxu0 %v8057_v6  ;;  %7794 = vmatpush3.bf16.msra.mxu1 %v7793_v36 }
0x279c   : > { %7795 = vmatprep.subr.bf16.mxu1 %v8057_v6 }
0x2803   : > { %v6098_v1 = vpop.f32.mrb[52].mxu0 }
0x2804   : > { %v7586_v2 = vpop.f32.mrb[53].mxu0 }
0x2864   : > { %v6174_v10 = vpop.f32.mrb[74].mxu1 }
0x2865   : > { %6331 = vrot.lane.b32.xlu0 %v6174_v10, %s9461_s19  ;;  %v7591_v12 = vpop.f32.mrb[75].mxu1 }
0x2868   : > { %v6250_v13 = vpop.f32.mrb[54].mxu0 }
0x2869   : > { %6335 = vrot.lane.b32.xlu1 %v6250_v13, %s9462_s16  ;;  %v7596_v14 = vpop.f32.mrb[55].mxu0  ;;  %s9478_s16 = sld [smem:[#allocation31_spill]] }
0x286c   : > { %v6326_v15 = vpop.f32.mrb[76].mxu1 }
0x286d   : > { %6339 = vrot.lane.b32.xlu0 %v6326_v15, %s9463_s14  ;;  %v7601_v16 = vpop.f32.mrb[77].mxu1 }
0x286f   : > { %s9303_s14 = scalar_lea.hbm %s9478_s16, %s6899_s30 }
0x28d7   : > { %v6332_v17 = vpop.permute.xlu0 %6331 }
0x28d8   : > { %v6342_v20 = vsel %vm745_vm2, %v6098_v1, %v6332_v17  ;;  %v7814_v1 = vpack.c.bf16 %v6614_v62, %v6613_v60 }
0x28db   : > { %v6336_v19 = vpop.permute.xlu1 %6335 }
0x28dc   : > { %v6343_v21 = vsel %vm1419_vm3, %v6342_v20, %v6336_v19 }
0x28df   : > { %v6340_v22 = vpop.permute.xlu0 %6339 }
0x28e0   : > { %v6344_v3 = vsel %vm1421_vm4, %v6343_v21, %v6340_v22 }
0x28e1   : > { %7611 = vmatmul.mubr.msk.f32.vlgmr.msra.gmra.mrb[56].mxu0 %vm640_vm0, %v6344_v3 }
0x28e2   : > { %7640 = vmatprep.mubr.msk.f32.mxu0 %vm8058_vm1, %v8059_v9  ;;  %7800 = vmatpush3.bf16.msra.mxu0 %v7799_v38 }
0x28e3   : > { %7801 = vmatprep.subr.bf16.mxu0 %v8057_v6 }
0x28e6   : > { %7803 = vmatpush3.bf16.msra.mxu0 %v7802_v39 }
0x28e7   : > { %7804 = vmatprep.subr.bf16.mxu0 %v8057_v6 }
0x28ea   : > { %7806 = vmatpush3.bf16.msra.mxu0 %v7805_v42 }
0x28eb   : > { %7807 = vmatprep.subr.bf16.mxu0 %v8057_v6 }
0x28ee   : > { %7809 = vmatpush3.bf16.msra.mxu0 %v7808_v0 }
0x29b4   : > { %v6418_v59 = vpop.f32.mrb[56].mxu0 }
0x29b5   : > { %v6422_v18 = vadd.f32 %v6418_v59, %v9111_v45  ;;  %v7612_v24 = vpop.f32.mrb[57].mxu0  ;;  %v6439_v45 = vld [vmem:[%s9471_s15 + $0x30] sm:$0xff] }
0x29b6   : > { %v7796_v31 = vpack.c.bf16 %v6440_v30, %v6439_v45 }
0x29b7   : > { %v6424_v25 = vmul.f32 %v6422_v18, %v6422_v18 }
0x29b8   : > { %7797 = vmatpush3.bf16.msra.mxu1 %v7796_v31 }
0x29b9   : > { %v6425_v26 = vsel %vm640_vm0, %v6424_v25, 0.0  ;;  %7810 = vmatprep.subr.bf16.mxu1 %v8057_v6 }
0x29ba   : > { %6426 = vadd.xlane.f32.xlu1 %v6425_v26 }
0x2a47   : > { %v6427_v43 = vpop.xlane.xlu1 %6426 }
0x2a48   : > { %v6428_v29 = vmul.f32 0.03125, %v6427_v43 }
0x2a4a   : > { %v6429_v63 = vadd.f32 1e-06, %v6428_v29 }
0x2a4c   : > { %7988 = vrsqrt.f32 %v6429_v63 }
0x2a56   : > { %v7989_v4 = vpop.eup %7988 }
0x2a57   : > { %v6431_v48 = vmul.f32 %v7989_v4, %v6422_v18 }
0x2a59   : > { %v6436_v49 = vmul.f32 %v6893_v44, %v6431_v48 }
0x2a5b   : > { %7622 = vmatmul.mubr.msk.f32.vlgmr.msra.gmra.mrb[78].mxu1 %vm640_vm0, %v6436_v49 }
0x2a5c   : > { %7651 = vmatprep.mubr.msk.f32.mxu1 %vm8058_vm1, %v8059_v9  ;;  %7812 = vmatpush3.bf16.msra.mxu1 %v7811_v58 }
0x2a5d   : > { %7813 = vmatprep.subr.bf16.mxu1 %v8057_v6  ;;  %v6896_v6 = vld [vmem:[%s9360_s17 + $0x6] ss:$0 sm:$0xff] }
0x2a60   : > { %7815 = vmatpush3.bf16.msra.mxu1 %v7814_v1 }
0x2b2e   : > { %v6510_v53 = vpop.f32.mrb[78].mxu1 }
0x2b2f   : > { %v6514_v11 = vmax.f32 %v6510_v53, 0.0  ;;  %v7623_v51 = vpop.f32.mrb[79].mxu1 }
0x2b31   : > { %7641 = vmatmul.mubr.msk.f32.vlgmr.msra.gmra.mrb[58].mxu0 %vm1601_vm5, %v6514_v11 }
0x2c04   : > { %v6592_v46 = vpop.f32.mrb[58].mxu0 }
0x2c05   : > { %v6596_v52 = vadd.f32 %v6592_v46, %v6422_v18  ;;  %v7642_v54 = vpop.f32.mrb[59].mxu0 }
0x2c07   : > { %v6598_v55 = vmul.f32 %v6596_v52, %v6596_v52 }
0x2c09   : > { %v6599_v9 = vsel %vm640_vm0, %v6598_v55, 0.0 }
0x2c0a   : > { %6600 = vadd.xlane.f32.xlu0 %v6599_v9 }
0x2c97   : > { %v6601_v2 = vpop.xlane.xlu0 %6600 }
0x2c98   : > { %v6602_v34 = vmul.f32 0.03125, %v6601_v2 }
0x2c9a   : > { %v6603_v5 = vadd.f32 1e-06, %v6602_v34 }
0x2c9c   : > { %7990 = vrsqrt.f32 %v6603_v5 }
0x2ca6   : > { %v7991_v7 = vpop.eup %7990 }
0x2ca7   : > { %v6605_v47 = vmul.f32 %v7991_v7, %v6596_v52 }
0x2ca9   : > { %v6610_v23 = vmul.f32 %v6896_v6, %v6605_v47 }
0x2cab   : > { %7652 = vmatmul.mubr.msk.f32.vlgmr.msra.gmra.mrb[80].mxu1 %vm640_vm0, %v6610_v23 }
0x2d7e   : > { %v6684_v8 = vpop.f32.mrb[80].mxu1 }
0x2d7f   : > { %6688 = vst [vmem:[%s617_s26] sm:$0xff] %v6684_v8  ;;  %v7653_v10 = vpop.f32.mrb[81].mxu1 }
0x2d80   : > { %8006 = shalt.err (!%p8003_p3)
}
0x2d81   : > { %s8007_s4 = scalar_lea.hbm %s9303_s14, 128  ;;  %s8011_s12 = scalar_lea.hbm %s9478_s16, 256 }
0x2d82   : > { %p8008_p4 = scmp.ne.s32.totalorder %s9303_s14, %s8007_s4  ;;  %p8012_p9 = scmp.lt.u32.totalorder %s9303_s14, %s9478_s16 }
0x2d83   : > { %p8013_p10 = scmp.lt.u32.totalorder %s8011_s12, %s8007_s4  ;;  %p8015_p12 = scmp.lt.u32.totalorder %s8007_s4, %s9303_s14 }
0x2d84   : > { %p8009_p7 = pnand %p8008_p4, %p8213_p5 }
0x2d85   : > { %p8014_p11 = por %p8013_p10, %p8012_p9 }
0x2d86   : > { %p8010_p8 = pneg %p8009_p7 }
0x2d87   : > { %p8016_p13 = por %p8015_p12, %p8014_p11 }
0x2d89   : > { %p8017_p0 = pnand %p8016_p13, %p8010_p8 }
0x2d8b   : > { %8020 = shalt.err (!%p8017_p0)
}
0x2d8c   : > { %7816 = dma.vmem_to_hbm [thread:$0]  (%p8213_p5), %s9298_s28, 128, %s9303_s14, %s6690_s5  }
0x2d8d PF: > { %s9479_s29 = sld [smem:[#allocation8_spill]]  ;;  %s9480_s20 = sld [smem:[#allocation5_spill]] }
0x2d93   : > { %p7822_p1 = scmp.ge.s32.totalorder %s9479_s29, 2  ;;  %s6715_s26 = sand.u32 1, %s9480_s20  }
0x2d94   : > { %s6716_s30 = scalar_lea.sflag [#allocation3], %s6715_s26 }
0x2d95   : > { %p7819_p2 = pnand %p7822_p1, %p8217_p6 }
0x2d97   : > { %8038 = dma.done.wait (!%p7819_p2), %s6716_s30, 128  }
0x2d98   : > { %8040 = vsyncadd (!%p7819_p2), %s6716_s30, 4294967168  ;;  %s9482_s21 = sld [smem:[#allocation10_spill]]  ;;  %s9483_s0 = sld [smem:[#allocation6_spill]] }
0x2d99   : > { %s9484_s30 = sld [smem:[#allocation7_spill]]  ;;  %s9485_s20 = sld [smem:[#allocation11_spill]] }
0x2d9e   : > { %p29_p3 = scmp.ge.s32.totalorder %s9482_s21, 4  }
0x2da0   :  { %31 = sbr.rel (!%p29_p3) target bundleno = 21 (0x15), region = 137 }
0x2da7   :  { %6721 = vsyncpa [#allocation3], 1 }
0x2da8   :  { %6723 = vsyncpa [#allocation3 + $0x1], 1 }

</bundles_post_ra>
